<compile_context>
chip_gen: v5e
topology: v5e:2x2
jax: 0.10.0
libtpu: 0.0.40
codegen_flags: <defaults>
</compile_context>

<pallas_src>
import functools

import jax
import jax.numpy as jnp
from jax.experimental import pallas as pl
from jax.experimental.pallas import tpu as pltpu

_BF16 = jnp.bfloat16
_F32 = jnp.float32


# ------------------------------ fused kernel --------------------------------

def _transformer_kernel(
    # activations (one batch block per grid step)
    src_ref, tgt_ref,
    # packed encoder weights
    e_wqkv, e_bqkv, e_wo, e_w1, e_b1, e_w2, e_vec,
    # packed decoder weights
    d_sa_wqkv, d_sa_bqkv, d_ca_wq, d_ca_bq, d_ca_wkv, d_ca_bkv,
    d_wo, d_w1, d_b1, d_w2, d_vec,
    # output
    out_ref, *, eps):

    bb, S, D = src_ref.shape
    L, H = e_wqkv.shape[0], e_wqkv.shape[1]
    dh = D // H

    # Causal mask built ONCE per kernel invocation (hoisted out of the
    # decoder-layer loop; JAX does not CSE broadcast_in_dim).
    row = jax.lax.broadcasted_iota(jnp.int32, (1, S, S), 1)
    col = jax.lax.broadcasted_iota(jnp.int32, (1, S, S), 2)
    causal = col <= row                                    # (1, S, S)

    def layer_norm(x, g, b):                               # f32 math
        mu = jnp.mean(x, axis=-1, keepdims=True)
        xc = x - mu
        var = jnp.mean(xc * xc, axis=-1, keepdims=True)
        return xc * jax.lax.rsqrt(var + eps) * g + b

    def softmax(s):                                        # f32 math, EUP recip
        m = jnp.max(s, axis=-1, keepdims=True)
        p = jnp.exp(s - m)
        return p * pl.reciprocal(jnp.sum(p, axis=-1, keepdims=True), approx=True)

    def heads(x):                                          # (S,D) f32 -> (H,S,D) bf16
        return jnp.broadcast_to(x.astype(_BF16)[None, :, :], (H, S, D))

    def proj(xh, w, bias):                                 # batched head projection
        return jnp.einsum('hsd,hde->hse', xh, w,
                          preferred_element_type=_F32) + bias

    def attend(q, k, v, wo, bo, mask):
        # q/k/v: (H, S, dh) f32;  wo: (H, dh, D) bf16;  bo: (1, D) f32.
        # 1/sqrt(dh) is already folded into the Q weights/biases.
        s = jnp.einsum('hqd,hkd->hqk', q.astype(_BF16), k.astype(_BF16),
                       preferred_element_type=_F32)        # (H, S, S)
        if mask is not None:
            s = jnp.where(mask, s, _F32(-1e9))
        p = softmax(s)
        o = jnp.einsum('hqk,hkd->hqd', p.astype(_BF16), v.astype(_BF16),
                       preferred_element_type=_F32).astype(_BF16)
        # Head merge fused into the output projection: accumulate per-head
        # matmuls into an f32 (S, D) accumulator (no cross-lane concat).
        acc = jnp.dot(o[0], wo[0], preferred_element_type=_F32)
        for h in range(1, H):
            acc = acc + jnp.dot(o[h], wo[h], preferred_element_type=_F32)
        return acc + bo

    def run_one(b):
        # ---------------- encoder stack ----------------
        x = src_ref[b]                                     # (S, D) f32
        for l in range(L):
            vec = e_vec[l]                                 # (6, D) f32
            qkv = proj(heads(x), e_wqkv[l], e_bqkv[l])     # (H, S, 3*dh)
            a = attend(qkv[..., :dh], qkv[..., dh:2 * dh], qkv[..., 2 * dh:],
                       e_wo[l], vec[0:1], None)
            x = layer_norm(x + a, vec[2:3], vec[3:4])
            hdn = jnp.maximum(
                jnp.dot(x.astype(_BF16), e_w1[l],
                        preferred_element_type=_F32) + e_b1[l], 0.0)
            f = jnp.dot(hdn.astype(_BF16), e_w2[l],
                        preferred_element_type=_F32) + vec[1:2]
            x = layer_norm(x + f, vec[4:5], vec[5:6])

        enc_h = heads(x)             # hoisted: reused by every decoder layer

        # ---------------- decoder stack ----------------
        y = tgt_ref[b]
        for l in range(L):
            vec = d_vec[l]                                 # (9, D) f32
            qkv = proj(heads(y), d_sa_wqkv[l], d_sa_bqkv[l])
            a = attend(qkv[..., :dh], qkv[..., dh:2 * dh], qkv[..., 2 * dh:],
                       d_wo[l, 0], vec[0:1], causal)
            y = layer_norm(y + a, vec[3:4], vec[4:5])

            q = proj(heads(y), d_ca_wq[l], d_ca_bq[l])     # (H, S, dh)
            kv = proj(enc_h, d_ca_wkv[l], d_ca_bkv[l])     # (H, S, 2*dh)
            c = attend(q, kv[..., :dh], kv[..., dh:],
                       d_wo[l, 1], vec[1:2], None)
            y = layer_norm(y + c, vec[5:6], vec[6:7])

            hdn = jnp.maximum(
                jnp.dot(y.astype(_BF16), d_w1[l],
                        preferred_element_type=_F32) + d_b1[l], 0.0)
            f = jnp.dot(hdn.astype(_BF16), d_w2[l],
                        preferred_element_type=_F32) + vec[2:3]
            y = layer_norm(y + f, vec[7:8], vec[8:9])

        out_ref[b] = y

    for b in range(bb):
        run_one(b)


# ------------------------------ params & packing -----------------------------

_PACK_ORDER = (
    "e_wqkv", "e_bqkv", "e_wo", "e_w1", "e_b1", "e_w2", "e_vec",
    "d_sa_wqkv", "d_sa_bqkv", "d_ca_wq", "d_ca_bq", "d_ca_wkv", "d_ca_bkv",
    "d_wo", "d_w1", "d_b1", "d_w2", "d_vec")


def init_transformer(key, embed_dim, num_layers, d_ff):
    """Standard (PyTorch-like) parameter layout."""
    D, L, Dff = embed_dim, num_layers, d_ff
    keys = iter(jax.random.split(key, 16))

    def W(shape):
        return jax.random.normal(next(keys), shape, jnp.float32) * 0.02

    def zeros(shape):
        return jnp.zeros(shape, jnp.float32)

    def ones(shape):
        return jnp.ones(shape, jnp.float32)

    enc = {
        "wqkv": W((L, D, 3 * D)), "bqkv": zeros((L, 1, 3 * D)),
        "wo": W((L, D, D)), "bo": zeros((L, 1, D)),
        "w1": W((L, D, Dff)), "b1": zeros((L, 1, Dff)),
        "w2": W((L, Dff, D)), "b2": zeros((L, 1, D)),
        "ln1_g": ones((L, 1, D)), "ln1_b": zeros((L, 1, D)),
        "ln2_g": ones((L, 1, D)), "ln2_b": zeros((L, 1, D)),
    }
    dec = {
        "sa_wqkv": W((L, D, 3 * D)), "sa_bqkv": zeros((L, 1, 3 * D)),
        "sa_wo": W((L, D, D)), "sa_bo": zeros((L, 1, D)),
        "ca_wq": W((L, D, D)), "ca_bq": zeros((L, 1, D)),
        "ca_wkv": W((L, D, 2 * D)), "ca_bkv": zeros((L, 1, 2 * D)),
        "ca_wo": W((L, D, D)), "ca_bo": zeros((L, 1, D)),
        "w1": W((L, D, Dff)), "b1": zeros((L, 1, Dff)),
        "w2": W((L, Dff, D)), "b2": zeros((L, 1, D)),
        "ln1_g": ones((L, 1, D)), "ln1_b": zeros((L, 1, D)),
        "ln2_g": ones((L, 1, D)), "ln2_b": zeros((L, 1, D)),
        "ln3_g": ones((L, 1, D)), "ln3_b": zeros((L, 1, D)),
    }
    return {"encoder": enc, "decoder": dec}


def pack_params(params, num_heads):
    """One-time weight preprocessing: head-major layout, 1/sqrt(dh) folded
    into Q, matmul weights cast to bf16, vectors concatenated into slabs."""
    enc, dec = params["encoder"], params["decoder"]
    L, D, _ = enc["wqkv"].shape
    H = num_heads
    dh = D // H
    scale = 1.0 / float(dh) ** 0.5

    def hm_w(w, parts, scale_q=False):
        # (L, D, parts*D) -> (L, H, D, parts*dh) bf16
        if scale_q:
            w = jnp.concatenate([w[..., :D] * scale, w[..., D:]], axis=-1)
        w = w.reshape(L, D, parts, H, dh).transpose(0, 3, 1, 2, 4)
        return w.reshape(L, H, D, parts * dh).astype(_BF16)

    def hm_b(b, parts, scale_q=False):
        # (L, 1, parts*D) -> (L, H, 1, parts*dh) f32
        if scale_q:
            b = jnp.concatenate([b[..., :D] * scale, b[..., D:]], axis=-1)
        b = b.reshape(L, parts, H, dh).transpose(0, 2, 1, 3)
        return b.reshape(L, H, 1, parts * dh)

    def hm_wo(w):
        # (L, D, D) -> (L, H, dh, D) bf16 (row blocks per head)
        return w.reshape(L, H, dh, D).astype(_BF16)

    return {
        "e_wqkv": hm_w(enc["wqkv"], 3, scale_q=True),
        "e_bqkv": hm_b(enc["bqkv"], 3, scale_q=True),
        "e_wo": hm_wo(enc["wo"]),
        "e_w1": enc["w1"].astype(_BF16),
        "e_b1": enc["b1"],
        "e_w2": enc["w2"].astype(_BF16),
        "e_vec": jnp.concatenate(
            [enc["bo"], enc["b2"], enc["ln1_g"], enc["ln1_b"],
             enc["ln2_g"], enc["ln2_b"]], axis=1),                 # (L, 6, D)
        "d_sa_wqkv": hm_w(dec["sa_wqkv"], 3, scale_q=True),
        "d_sa_bqkv": hm_b(dec["sa_bqkv"], 3, scale_q=True),
        "d_ca_wq": hm_w(dec["ca_wq"], 1, scale_q=True),
        "d_ca_bq": hm_b(dec["ca_bq"], 1, scale_q=True),
        "d_ca_wkv": hm_w(dec["ca_wkv"], 2),
        "d_ca_bkv": hm_b(dec["ca_bkv"], 2),
        "d_wo": jnp.stack([hm_wo(dec["sa_wo"]), hm_wo(dec["ca_wo"])],
                          axis=1),                                  # (L, 2, H, dh, D)
        "d_w1": dec["w1"].astype(_BF16),
        "d_b1": dec["b1"],
        "d_w2": dec["w2"].astype(_BF16),
        "d_vec": jnp.concatenate(
            [dec["sa_bo"], dec["ca_bo"], dec["b2"],
             dec["ln1_g"], dec["ln1_b"], dec["ln2_g"], dec["ln2_b"],
             dec["ln3_g"], dec["ln3_b"]], axis=1),                  # (L, 9, D)
    }


# --------------------------------- wrapper -----------------------------------

def _single_tensorcore_chip():
    """True for v5e / v6e (1 TensorCore): fold the batch into one grid step."""
    try:
        kind = jax.devices()[0].device_kind.lower()
    except Exception:
        return False
    return any(t in kind for t in
               ("v5e", "v5 lite", "v5lite", "v6e", "v6 lite", "v6lite"))


def transformer_forward(packed, source, target, *, batch_block=None, eps=1e-5):
    B, S, D = source.shape

    if batch_block is None:
        # Single-TC chips: one grid step, batch loop in-kernel.
        # Multi-TC chips (v7x): grid over batch, one element per TensorCore.
        batch_block = B if _single_tensorcore_chip() else 1
    batch_block = max(1, min(int(batch_block), B))
    while B % batch_block:
        batch_block -= 1

    weights = [packed[name] for name in _PACK_ORDER]

    act_spec = pl.BlockSpec((batch_block, S, D), lambda i: (i, 0, 0))

    def const_spec(arr):
        zeros = (0,) * arr.ndim
        return pl.BlockSpec(arr.shape, lambda i, z=zeros: z)   # VMEM-resident

    kernel = functools.partial(_transformer_kernel, eps=eps)

    return pl.pallas_call(
        kernel,
        out_shape=jax.ShapeDtypeStruct((B, S, D), jnp.float32),
        grid=(B // batch_block,),
        in_specs=[act_spec, act_spec] + [const_spec(w) for w in weights],
        out_specs=pl.BlockSpec((batch_block, S, D), lambda i: (i, 0, 0)),
        compiler_params=pltpu.CompilerParams(
            dimension_semantics=("parallel",)),   # megacore split over batch
    )(source, target, *weights)


# --------------------------------- Driver ------------------------------------

if __name__ == "__main__":
    # Small shapes consistent with the module: block_size=8 (seq), embed_dim=32,
    # num_of_heads=4, num_of_layers=2, batch=2, d_ff=64.
    B, S, D, H, L, D_FF = 2, 8, 32, 4, 2, 64

    key = jax.random.PRNGKey(0)
    k_src, k_tgt, k_par = jax.random.split(key, 3)
    source = jax.random.normal(k_src, (B, S, D), jnp.float32)
    target = jax.random.normal(k_tgt, (B, S, D), jnp.float32)

    params = init_transformer(k_par, D, L, D_FF)
    packed = pack_params(params, H)

    out = transformer_forward(packed, source, target)
    out = jax.block_until_ready(out)

    assert out.shape == (B, S, D)
    assert bool(jnp.all(jnp.isfinite(out)))
    print("KERNEL_OK")
</pallas_src>

<mosaic_0001>
module attributes {stable_mosaic.version = 11 : i64} {
  func.func @_transformer_kernel(%arg0: i32, %arg1: memref<1x8x32xf32, #tpu.memory_space<vmem>>, %arg2: memref<1x8x32xf32, #tpu.memory_space<vmem>>, %arg3: memref<2x4x32x24xbf16, #tpu.memory_space<vmem>>, %arg4: memref<2x4x1x24xf32, #tpu.memory_space<vmem>>, %arg5: memref<2x4x8x32xbf16, #tpu.memory_space<vmem>>, %arg6: memref<2x32x64xbf16, #tpu.memory_space<vmem>>, %arg7: memref<2x1x64xf32, #tpu.memory_space<vmem>>, %arg8: memref<2x64x32xbf16, #tpu.memory_space<vmem>>, %arg9: memref<2x6x32xf32, #tpu.memory_space<vmem>>, %arg10: memref<2x4x32x24xbf16, #tpu.memory_space<vmem>>, %arg11: memref<2x4x1x24xf32, #tpu.memory_space<vmem>>, %arg12: memref<2x4x32x8xbf16, #tpu.memory_space<vmem>>, %arg13: memref<2x4x1x8xf32, #tpu.memory_space<vmem>>, %arg14: memref<2x4x32x16xbf16, #tpu.memory_space<vmem>>, %arg15: memref<2x4x1x16xf32, #tpu.memory_space<vmem>>, %arg16: memref<2x2x4x8x32xbf16, #tpu.memory_space<vmem>>, %arg17: memref<2x32x64xbf16, #tpu.memory_space<vmem>>, %arg18: memref<2x1x64xf32, #tpu.memory_space<vmem>>, %arg19: memref<2x64x32xbf16, #tpu.memory_space<vmem>>, %arg20: memref<2x9x32xf32, #tpu.memory_space<vmem>>, %arg21: memref<1x8x32xf32, #tpu.memory_space<vmem>>) attributes {dimension_semantics = [#tpu.dimension_semantics<parallel>], iteration_bounds = array<i64: 2>, scalar_prefetch = 0 : i64, scratch_operands = 0 : i64, tpu.core_type = #tpu.core_type<tc>, window_params = [{transform_indices = @transform_0, window_bounds = array<i64: 1, 8, 32>}, {transform_indices = @transform_1, window_bounds = array<i64: 1, 8, 32>}, {pipeline_mode = #tpu.pipeline_mode<synchronous>, transform_indices = @transform_2, window_bounds = array<i64: 2, 4, 32, 24>}, {pipeline_mode = #tpu.pipeline_mode<synchronous>, transform_indices = @transform_3, window_bounds = array<i64: 2, 4, 1, 24>}, {pipeline_mode = #tpu.pipeline_mode<synchronous>, transform_indices = @transform_4, window_bounds = array<i64: 2, 4, 8, 32>}, {pipeline_mode = #tpu.pipeline_mode<synchronous>, transform_indices = @transform_5, window_bounds = array<i64: 2, 32, 64>}, {pipeline_mode = #tpu.pipeline_mode<synchronous>, transform_indices = @transform_6, window_bounds = array<i64: 2, 1, 64>}, {pipeline_mode = #tpu.pipeline_mode<synchronous>, transform_indices = @transform_7, window_bounds = array<i64: 2, 64, 32>}, {pipeline_mode = #tpu.pipeline_mode<synchronous>, transform_indices = @transform_8, window_bounds = array<i64: 2, 6, 32>}, {pipeline_mode = #tpu.pipeline_mode<synchronous>, transform_indices = @transform_9, window_bounds = array<i64: 2, 4, 32, 24>}, {pipeline_mode = #tpu.pipeline_mode<synchronous>, transform_indices = @transform_10, window_bounds = array<i64: 2, 4, 1, 24>}, {pipeline_mode = #tpu.pipeline_mode<synchronous>, transform_indices = @transform_11, window_bounds = array<i64: 2, 4, 32, 8>}, {pipeline_mode = #tpu.pipeline_mode<synchronous>, transform_indices = @transform_12, window_bounds = array<i64: 2, 4, 1, 8>}, {pipeline_mode = #tpu.pipeline_mode<synchronous>, transform_indices = @transform_13, window_bounds = array<i64: 2, 4, 32, 16>}, {pipeline_mode = #tpu.pipeline_mode<synchronous>, transform_indices = @transform_14, window_bounds = array<i64: 2, 4, 1, 16>}, {pipeline_mode = #tpu.pipeline_mode<synchronous>, transform_indices = @transform_15, window_bounds = array<i64: 2, 2, 4, 8, 32>}, {pipeline_mode = #tpu.pipeline_mode<synchronous>, transform_indices = @transform_16, window_bounds = array<i64: 2, 32, 64>}, {pipeline_mode = #tpu.pipeline_mode<synchronous>, transform_indices = @transform_17, window_bounds = array<i64: 2, 1, 64>}, {pipeline_mode = #tpu.pipeline_mode<synchronous>, transform_indices = @transform_18, window_bounds = array<i64: 2, 64, 32>}, {pipeline_mode = #tpu.pipeline_mode<synchronous>, transform_indices = @transform_19, window_bounds = array<i64: 2, 9, 32>}, {transform_indices = @transform_20, window_bounds = array<i64: 1, 8, 32>}]} {
    %0 = tpu.iota {dimensions = array<i32: 1>} : vector<1x8x8xi32>
    %1 = tpu.iota {dimensions = array<i32: 2>} : vector<1x8x8xi32>
    %2 = arith.cmpi sle, %1, %0 : vector<1x8x8xi32>
    %c0 = arith.constant 0 : index
    %c0_0 = arith.constant 0 : index
    %c0_1 = arith.constant 0 : index
    %3 = vector.load %arg1[%c0, %c0_0, %c0_1] : memref<1x8x32xf32, #tpu.memory_space<vmem>>, vector<1x8x32xf32>
    %4 = vector.shape_cast %3 : vector<1x8x32xf32> to vector<8x32xf32>
    %c0_2 = arith.constant 0 : index
    %c0_3 = arith.constant 0 : index
    %c0_4 = arith.constant 0 : index
    %5 = vector.load %arg9[%c0_2, %c0_3, %c0_4] : memref<2x6x32xf32, #tpu.memory_space<vmem>>, vector<1x6x32xf32>
    %6 = vector.shape_cast %5 : vector<1x6x32xf32> to vector<6x32xf32>
    %7 = arith.truncf %4 : vector<8x32xf32> to vector<8x32xbf16>
    %8 = vector.shape_cast %7 : vector<8x32xbf16> to vector<1x8x32xbf16>
    %9 = vector.shape_cast %8 : vector<1x8x32xbf16> to vector<1x8x32xbf16>
    %10 = vector.broadcast %9 : vector<1x8x32xbf16> to vector<4x8x32xbf16>
    %c0_5 = arith.constant 0 : index
    %c0_6 = arith.constant 0 : index
    %c0_7 = arith.constant 0 : index
    %c0_8 = arith.constant 0 : index
    %11 = vector.load %arg3[%c0_5, %c0_6, %c0_7, %c0_8] : memref<2x4x32x24xbf16, #tpu.memory_space<vmem>>, vector<1x4x32x24xbf16>
    %12 = vector.shape_cast %11 : vector<1x4x32x24xbf16> to vector<4x32x24xbf16>
    %c0_9 = arith.constant 0 : index
    %c0_10 = arith.constant 0 : index
    %c0_11 = arith.constant 0 : index
    %c0_12 = arith.constant 0 : index
    %13 = vector.load %arg4[%c0_9, %c0_10, %c0_11, %c0_12] : memref<2x4x1x24xf32, #tpu.memory_space<vmem>>, vector<1x4x1x24xf32>
    %14 = vector.shape_cast %13 : vector<1x4x1x24xf32> to vector<4x1x24xf32>
    "tpu.trace_start"() <{level = 10 : i32, message = "hsd,hde->hse"}> : () -> ()
    %cst = arith.constant dense<0.000000e+00> : vector<4x8x24xf32>
    %15 = tpu.matmul %10, %12, %cst {dimension_numbers = #tpu.dot_dimension_numbers<[2], [1], [1], [2], [0, 0, 0, 1, 1, 2], [0], [0]>} : vector<4x8x32xbf16>, vector<4x32x24xbf16>, vector<4x8x24xf32> -> vector<4x8x24xf32>
    "tpu.trace_stop"() : () -> ()
    %16 = vector.broadcast %14 : vector<4x1x24xf32> to vector<4x8x24xf32>
    %17 = arith.addf %15, %16 : vector<4x8x24xf32>
    %18 = vector.extract_strided_slice %17 {offsets = [0, 0, 0], sizes = [4, 8, 8], strides = [1, 1, 1]} : vector<4x8x24xf32> to vector<4x8x8xf32>
    %19 = vector.extract_strided_slice %17 {offsets = [0, 0, 8], sizes = [4, 8, 8], strides = [1, 1, 1]} : vector<4x8x24xf32> to vector<4x8x8xf32>
    %20 = vector.extract_strided_slice %17 {offsets = [0, 0, 16], sizes = [4, 8, 8], strides = [1, 1, 1]} : vector<4x8x24xf32> to vector<4x8x8xf32>
    %c0_13 = arith.constant 0 : index
    %c0_14 = arith.constant 0 : index
    %c0_15 = arith.constant 0 : index
    %c0_16 = arith.constant 0 : index
    %21 = vector.load %arg5[%c0_13, %c0_14, %c0_15, %c0_16] : memref<2x4x8x32xbf16, #tpu.memory_space<vmem>>, vector<1x4x8x32xbf16>
    %22 = vector.shape_cast %21 : vector<1x4x8x32xbf16> to vector<4x8x32xbf16>
    %23 = vector.extract_strided_slice %6 {offsets = [0, 0], sizes = [1, 32], strides = [1, 1]} : vector<6x32xf32> to vector<1x32xf32>
    %24 = arith.truncf %18 : vector<4x8x8xf32> to vector<4x8x8xbf16>
    %25 = arith.truncf %19 : vector<4x8x8xf32> to vector<4x8x8xbf16>
    "tpu.trace_start"() <{level = 10 : i32, message = "hqd,hkd->hqk"}> : () -> ()
    %cst_17 = arith.constant dense<0.000000e+00> : vector<4x8x8xf32>
    %26 = tpu.matmul %24, %25, %cst_17 {dimension_numbers = #tpu.dot_dimension_numbers<[2], [2], [1], [1], [0, 0, 0, 1, 1, 1], [0], [0]>} : vector<4x8x8xbf16>, vector<4x8x8xbf16>, vector<4x8x8xf32> -> vector<4x8x8xf32>
    "tpu.trace_stop"() : () -> ()
    %cst_18 = arith.constant dense<0xFF800000> : vector<4x8xf32>
    %27 = vector.multi_reduction <maximumf>, %26, %cst_18 [2] : vector<4x8x8xf32> to vector<4x8xf32>
    %28 = vector.shape_cast %27 : vector<4x8xf32> to vector<4x8x1xf32>
    %29 = vector.broadcast %28 : vector<4x8x1xf32> to vector<4x8x8xf32>
    %30 = arith.subf %26, %29 : vector<4x8x8xf32>
    %31 = math.exp %30 : vector<4x8x8xf32>
    %cst_19 = arith.constant dense<0.000000e+00> : vector<4x8xf32>
    %32 = vector.multi_reduction <add>, %31, %cst_19 [2] : vector<4x8x8xf32> to vector<4x8xf32>
    %33 = vector.shape_cast %32 : vector<4x8xf32> to vector<4x8x1xf32>
    %34 = tpu.reciprocal %33 {approx = true} : vector<4x8x1xf32> -> vector<4x8x1xf32>
    %35 = vector.broadcast %34 : vector<4x8x1xf32> to vector<4x8x8xf32>
    %36 = arith.mulf %31, %35 : vector<4x8x8xf32>
    %37 = arith.truncf %36 : vector<4x8x8xf32> to vector<4x8x8xbf16>
    %38 = arith.truncf %20 : vector<4x8x8xf32> to vector<4x8x8xbf16>
    "tpu.trace_start"() <{level = 10 : i32, message = "hqk,hkd->hqd"}> : () -> ()
    %cst_20 = arith.constant dense<0.000000e+00> : vector<4x8x8xf32>
    %39 = tpu.matmul %37, %38, %cst_20 {dimension_numbers = #tpu.dot_dimension_numbers<[2], [1], [1], [2], [0, 0, 0, 1, 1, 2], [0], [0]>} : vector<4x8x8xbf16>, vector<4x8x8xbf16>, vector<4x8x8xf32> -> vector<4x8x8xf32>
    "tpu.trace_stop"() : () -> ()
    %40 = arith.truncf %39 : vector<4x8x8xf32> to vector<4x8x8xbf16>
    %41 = vector.extract_strided_slice %40 {offsets = [0, 0, 0], sizes = [1, 8, 8], strides = [1, 1, 1]} : vector<4x8x8xbf16> to vector<1x8x8xbf16>
    %42 = vector.shape_cast %41 : vector<1x8x8xbf16> to vector<8x8xbf16>
    %43 = vector.extract_strided_slice %22 {offsets = [0, 0, 0], sizes = [1, 8, 32], strides = [1, 1, 1]} : vector<4x8x32xbf16> to vector<1x8x32xbf16>
    %44 = vector.shape_cast %43 : vector<1x8x32xbf16> to vector<8x32xbf16>
    %cst_21 = arith.constant dense<0.000000e+00> : vector<8x32xf32>
    %45 = tpu.matmul %42, %44, %cst_21 {dimension_numbers = #tpu.dot_dimension_numbers<[1], [0], [0], [1], [0, 0, 1, 1], [], []>} : vector<8x8xbf16>, vector<8x32xbf16>, vector<8x32xf32> -> vector<8x32xf32>
    %46 = vector.extract_strided_slice %40 {offsets = [1, 0, 0], sizes = [1, 8, 8], strides = [1, 1, 1]} : vector<4x8x8xbf16> to vector<1x8x8xbf16>
    %47 = vector.shape_cast %46 : vector<1x8x8xbf16> to vector<8x8xbf16>
    %48 = vector.extract_strided_slice %22 {offsets = [1, 0, 0], sizes = [1, 8, 32], strides = [1, 1, 1]} : vector<4x8x32xbf16> to vector<1x8x32xbf16>
    %49 = vector.shape_cast %48 : vector<1x8x32xbf16> to vector<8x32xbf16>
    %cst_22 = arith.constant dense<0.000000e+00> : vector<8x32xf32>
    %50 = tpu.matmul %47, %49, %cst_22 {dimension_numbers = #tpu.dot_dimension_numbers<[1], [0], [0], [1], [0, 0, 1, 1], [], []>} : vector<8x8xbf16>, vector<8x32xbf16>, vector<8x32xf32> -> vector<8x32xf32>
    %51 = arith.addf %45, %50 : vector<8x32xf32>
    %52 = vector.extract_strided_slice %40 {offsets = [2, 0, 0], sizes = [1, 8, 8], strides = [1, 1, 1]} : vector<4x8x8xbf16> to vector<1x8x8xbf16>
    %53 = vector.shape_cast %52 : vector<1x8x8xbf16> to vector<8x8xbf16>
    %54 = vector.extract_strided_slice %22 {offsets = [2, 0, 0], sizes = [1, 8, 32], strides = [1, 1, 1]} : vector<4x8x32xbf16> to vector<1x8x32xbf16>
    %55 = vector.shape_cast %54 : vector<1x8x32xbf16> to vector<8x32xbf16>
    %cst_23 = arith.constant dense<0.000000e+00> : vector<8x32xf32>
    %56 = tpu.matmul %53, %55, %cst_23 {dimension_numbers = #tpu.dot_dimension_numbers<[1], [0], [0], [1], [0, 0, 1, 1], [], []>} : vector<8x8xbf16>, vector<8x32xbf16>, vector<8x32xf32> -> vector<8x32xf32>
    %57 = arith.addf %51, %56 : vector<8x32xf32>
    %58 = vector.extract_strided_slice %40 {offsets = [3, 0, 0], sizes = [1, 8, 8], strides = [1, 1, 1]} : vector<4x8x8xbf16> to vector<1x8x8xbf16>
    %59 = vector.shape_cast %58 : vector<1x8x8xbf16> to vector<8x8xbf16>
    %60 = vector.extract_strided_slice %22 {offsets = [3, 0, 0], sizes = [1, 8, 32], strides = [1, 1, 1]} : vector<4x8x32xbf16> to vector<1x8x32xbf16>
    %61 = vector.shape_cast %60 : vector<1x8x32xbf16> to vector<8x32xbf16>
    %cst_24 = arith.constant dense<0.000000e+00> : vector<8x32xf32>
    %62 = tpu.matmul %59, %61, %cst_24 {dimension_numbers = #tpu.dot_dimension_numbers<[1], [0], [0], [1], [0, 0, 1, 1], [], []>} : vector<8x8xbf16>, vector<8x32xbf16>, vector<8x32xf32> -> vector<8x32xf32>
    %63 = arith.addf %57, %62 : vector<8x32xf32>
    %64 = vector.broadcast %23 : vector<1x32xf32> to vector<8x32xf32>
    %65 = arith.addf %63, %64 : vector<8x32xf32>
    %66 = arith.addf %4, %65 : vector<8x32xf32>
    %67 = vector.extract_strided_slice %6 {offsets = [2, 0], sizes = [1, 32], strides = [1, 1]} : vector<6x32xf32> to vector<1x32xf32>
    %68 = vector.extract_strided_slice %6 {offsets = [3, 0], sizes = [1, 32], strides = [1, 1]} : vector<6x32xf32> to vector<1x32xf32>
    %cst_25 = arith.constant dense<0.000000e+00> : vector<8xf32>
    %69 = vector.multi_reduction <add>, %66, %cst_25 [1] : vector<8x32xf32> to vector<8xf32>
    %70 = vector.shape_cast %69 : vector<8xf32> to vector<8x1xf32>
    %cst_26 = arith.constant 3.200000e+01 : f32
    %71 = vector.broadcast %cst_26 : f32 to vector<8x1xf32>
    %72 = arith.divf %70, %71 : vector<8x1xf32>
    %73 = vector.broadcast %72 : vector<8x1xf32> to vector<8x32xf32>
    %74 = arith.subf %66, %73 : vector<8x32xf32>
    %75 = arith.mulf %74, %74 : vector<8x32xf32>
    %cst_27 = arith.constant dense<0.000000e+00> : vector<8xf32>
    %76 = vector.multi_reduction <add>, %75, %cst_27 [1] : vector<8x32xf32> to vector<8xf32>
    %77 = vector.shape_cast %76 : vector<8xf32> to vector<8x1xf32>
    %cst_28 = arith.constant 3.200000e+01 : f32
    %78 = vector.broadcast %cst_28 : f32 to vector<8x1xf32>
    %79 = arith.divf %77, %78 : vector<8x1xf32>
    %cst_29 = arith.constant 9.99999974E-6 : f32
    %80 = vector.broadcast %cst_29 : f32 to vector<8x1xf32>
    %81 = arith.addf %79, %80 : vector<8x1xf32>
    %82 = math.rsqrt %81 : vector<8x1xf32>
    %83 = vector.broadcast %82 : vector<8x1xf32> to vector<8x32xf32>
    %84 = arith.mulf %74, %83 : vector<8x32xf32>
    %85 = vector.broadcast %67 : vector<1x32xf32> to vector<8x32xf32>
    %86 = arith.mulf %84, %85 : vector<8x32xf32>
    %87 = vector.broadcast %68 : vector<1x32xf32> to vector<8x32xf32>
    %88 = arith.addf %86, %87 : vector<8x32xf32>
    %89 = arith.truncf %88 : vector<8x32xf32> to vector<8x32xbf16>
    %c0_30 = arith.constant 0 : index
    %c0_31 = arith.constant 0 : index
    %c0_32 = arith.constant 0 : index
    %90 = vector.load %arg6[%c0_30, %c0_31, %c0_32] : memref<2x32x64xbf16, #tpu.memory_space<vmem>>, vector<1x32x64xbf16>
    %91 = vector.shape_cast %90 : vector<1x32x64xbf16> to vector<32x64xbf16>
    %cst_33 = arith.constant dense<0.000000e+00> : vector<8x64xf32>
    %92 = tpu.matmul %89, %91, %cst_33 {dimension_numbers = #tpu.dot_dimension_numbers<[1], [0], [0], [1], [0, 0, 1, 1], [], []>} : vector<8x32xbf16>, vector<32x64xbf16>, vector<8x64xf32> -> vector<8x64xf32>
    %c0_34 = arith.constant 0 : index
    %c0_35 = arith.constant 0 : index
    %c0_36 = arith.constant 0 : index
    %93 = vector.load %arg7[%c0_34, %c0_35, %c0_36] : memref<2x1x64xf32, #tpu.memory_space<vmem>>, vector<1x1x64xf32>
    %94 = vector.shape_cast %93 : vector<1x1x64xf32> to vector<1x64xf32>
    %95 = vector.broadcast %94 : vector<1x64xf32> to vector<8x64xf32>
    %96 = arith.addf %92, %95 : vector<8x64xf32>
    %cst_37 = arith.constant 0.000000e+00 : f32
    %97 = vector.broadcast %cst_37 : f32 to vector<8x64xf32>
    %98 = arith.maximumf %96, %97 : vector<8x64xf32>
    %99 = arith.truncf %98 : vector<8x64xf32> to vector<8x64xbf16>
    %c0_38 = arith.constant 0 : index
    %c0_39 = arith.constant 0 : index
    %c0_40 = arith.constant 0 : index
    %100 = vector.load %arg8[%c0_38, %c0_39, %c0_40] : memref<2x64x32xbf16, #tpu.memory_space<vmem>>, vector<1x64x32xbf16>
    %101 = vector.shape_cast %100 : vector<1x64x32xbf16> to vector<64x32xbf16>
    %cst_41 = arith.constant dense<0.000000e+00> : vector<8x32xf32>
    %102 = tpu.matmul %99, %101, %cst_41 {dimension_numbers = #tpu.dot_dimension_numbers<[1], [0], [0], [1], [0, 0, 1, 1], [], []>} : vector<8x64xbf16>, vector<64x32xbf16>, vector<8x32xf32> -> vector<8x32xf32>
    %103 = vector.extract_strided_slice %6 {offsets = [1, 0], sizes = [1, 32], strides = [1, 1]} : vector<6x32xf32> to vector<1x32xf32>
    %104 = vector.broadcast %103 : vector<1x32xf32> to vector<8x32xf32>
    %105 = arith.addf %102, %104 : vector<8x32xf32>
    %106 = arith.addf %88, %105 : vector<8x32xf32>
    %107 = vector.extract_strided_slice %6 {offsets = [4, 0], sizes = [1, 32], strides = [1, 1]} : vector<6x32xf32> to vector<1x32xf32>
    %108 = vector.extract_strided_slice %6 {offsets = [5, 0], sizes = [1, 32], strides = [1, 1]} : vector<6x32xf32> to vector<1x32xf32>
    %cst_42 = arith.constant dense<0.000000e+00> : vector<8xf32>
    %109 = vector.multi_reduction <add>, %106, %cst_42 [1] : vector<8x32xf32> to vector<8xf32>
    %110 = vector.shape_cast %109 : vector<8xf32> to vector<8x1xf32>
    %cst_43 = arith.constant 3.200000e+01 : f32
    %111 = vector.broadcast %cst_43 : f32 to vector<8x1xf32>
    %112 = arith.divf %110, %111 : vector<8x1xf32>
    %113 = vector.broadcast %112 : vector<8x1xf32> to vector<8x32xf32>
    %114 = arith.subf %106, %113 : vector<8x32xf32>
    %115 = arith.mulf %114, %114 : vector<8x32xf32>
    %cst_44 = arith.constant dense<0.000000e+00> : vector<8xf32>
    %116 = vector.multi_reduction <add>, %115, %cst_44 [1] : vector<8x32xf32> to vector<8xf32>
    %117 = vector.shape_cast %116 : vector<8xf32> to vector<8x1xf32>
    %cst_45 = arith.constant 3.200000e+01 : f32
    %118 = vector.broadcast %cst_45 : f32 to vector<8x1xf32>
    %119 = arith.divf %117, %118 : vector<8x1xf32>
    %cst_46 = arith.constant 9.99999974E-6 : f32
    %120 = vector.broadcast %cst_46 : f32 to vector<8x1xf32>
    %121 = arith.addf %119, %120 : vector<8x1xf32>
    %122 = math.rsqrt %121 : vector<8x1xf32>
    %123 = vector.broadcast %122 : vector<8x1xf32> to vector<8x32xf32>
    %124 = arith.mulf %114, %123 : vector<8x32xf32>
    %125 = vector.broadcast %107 : vector<1x32xf32> to vector<8x32xf32>
    %126 = arith.mulf %124, %125 : vector<8x32xf32>
    %127 = vector.broadcast %108 : vector<1x32xf32> to vector<8x32xf32>
    %128 = arith.addf %126, %127 : vector<8x32xf32>
    %c1 = arith.constant 1 : index
    %c0_47 = arith.constant 0 : index
    %c0_48 = arith.constant 0 : index
    %129 = vector.load %arg9[%c1, %c0_47, %c0_48] : memref<2x6x32xf32, #tpu.memory_space<vmem>>, vector<1x6x32xf32>
    %130 = vector.shape_cast %129 : vector<1x6x32xf32> to vector<6x32xf32>
    %131 = arith.truncf %128 : vector<8x32xf32> to vector<8x32xbf16>
    %132 = vector.shape_cast %131 : vector<8x32xbf16> to vector<1x8x32xbf16>
    %133 = vector.shape_cast %132 : vector<1x8x32xbf16> to vector<1x8x32xbf16>
    %134 = vector.broadcast %133 : vector<1x8x32xbf16> to vector<4x8x32xbf16>
    %c1_49 = arith.constant 1 : index
    %c0_50 = arith.constant 0 : index
    %c0_51 = arith.constant 0 : index
    %c0_52 = arith.constant 0 : index
    %135 = vector.load %arg3[%c1_49, %c0_50, %c0_51, %c0_52] : memref<2x4x32x24xbf16, #tpu.memory_space<vmem>>, vector<1x4x32x24xbf16>
    %136 = vector.shape_cast %135 : vector<1x4x32x24xbf16> to vector<4x32x24xbf16>
    %c1_53 = arith.constant 1 : index
    %c0_54 = arith.constant 0 : index
    %c0_55 = arith.constant 0 : index
    %c0_56 = arith.constant 0 : index
    %137 = vector.load %arg4[%c1_53, %c0_54, %c0_55, %c0_56] : memref<2x4x1x24xf32, #tpu.memory_space<vmem>>, vector<1x4x1x24xf32>
    %138 = vector.shape_cast %137 : vector<1x4x1x24xf32> to vector<4x1x24xf32>
    "tpu.trace_start"() <{level = 10 : i32, message = "hsd,hde->hse"}> : () -> ()
    %cst_57 = arith.constant dense<0.000000e+00> : vector<4x8x24xf32>
    %139 = tpu.matmul %134, %136, %cst_57 {dimension_numbers = #tpu.dot_dimension_numbers<[2], [1], [1], [2], [0, 0, 0, 1, 1, 2], [0], [0]>} : vector<4x8x32xbf16>, vector<4x32x24xbf16>, vector<4x8x24xf32> -> vector<4x8x24xf32>
    "tpu.trace_stop"() : () -> ()
    %140 = vector.broadcast %138 : vector<4x1x24xf32> to vector<4x8x24xf32>
    %141 = arith.addf %139, %140 : vector<4x8x24xf32>
    %142 = vector.extract_strided_slice %141 {offsets = [0, 0, 0], sizes = [4, 8, 8], strides = [1, 1, 1]} : vector<4x8x24xf32> to vector<4x8x8xf32>
    %143 = vector.extract_strided_slice %141 {offsets = [0, 0, 8], sizes = [4, 8, 8], strides = [1, 1, 1]} : vector<4x8x24xf32> to vector<4x8x8xf32>
    %144 = vector.extract_strided_slice %141 {offsets = [0, 0, 16], sizes = [4, 8, 8], strides = [1, 1, 1]} : vector<4x8x24xf32> to vector<4x8x8xf32>
    %c1_58 = arith.constant 1 : index
    %c0_59 = arith.constant 0 : index
    %c0_60 = arith.constant 0 : index
    %c0_61 = arith.constant 0 : index
    %145 = vector.load %arg5[%c1_58, %c0_59, %c0_60, %c0_61] : memref<2x4x8x32xbf16, #tpu.memory_space<vmem>>, vector<1x4x8x32xbf16>
    %146 = vector.shape_cast %145 : vector<1x4x8x32xbf16> to vector<4x8x32xbf16>
    %147 = vector.extract_strided_slice %130 {offsets = [0, 0], sizes = [1, 32], strides = [1, 1]} : vector<6x32xf32> to vector<1x32xf32>
    %148 = arith.truncf %142 : vector<4x8x8xf32> to vector<4x8x8xbf16>
    %149 = arith.truncf %143 : vector<4x8x8xf32> to vector<4x8x8xbf16>
    "tpu.trace_start"() <{level = 10 : i32, message = "hqd,hkd->hqk"}> : () -> ()
    %cst_62 = arith.constant dense<0.000000e+00> : vector<4x8x8xf32>
    %150 = tpu.matmul %148, %149, %cst_62 {dimension_numbers = #tpu.dot_dimension_numbers<[2], [2], [1], [1], [0, 0, 0, 1, 1, 1], [0], [0]>} : vector<4x8x8xbf16>, vector<4x8x8xbf16>, vector<4x8x8xf32> -> vector<4x8x8xf32>
    "tpu.trace_stop"() : () -> ()
    %cst_63 = arith.constant dense<0xFF800000> : vector<4x8xf32>
    %151 = vector.multi_reduction <maximumf>, %150, %cst_63 [2] : vector<4x8x8xf32> to vector<4x8xf32>
    %152 = vector.shape_cast %151 : vector<4x8xf32> to vector<4x8x1xf32>
    %153 = vector.broadcast %152 : vector<4x8x1xf32> to vector<4x8x8xf32>
    %154 = arith.subf %150, %153 : vector<4x8x8xf32>
    %155 = math.exp %154 : vector<4x8x8xf32>
    %cst_64 = arith.constant dense<0.000000e+00> : vector<4x8xf32>
    %156 = vector.multi_reduction <add>, %155, %cst_64 [2] : vector<4x8x8xf32> to vector<4x8xf32>
    %157 = vector.shape_cast %156 : vector<4x8xf32> to vector<4x8x1xf32>
    %158 = tpu.reciprocal %157 {approx = true} : vector<4x8x1xf32> -> vector<4x8x1xf32>
    %159 = vector.broadcast %158 : vector<4x8x1xf32> to vector<4x8x8xf32>
    %160 = arith.mulf %155, %159 : vector<4x8x8xf32>
    %161 = arith.truncf %160 : vector<4x8x8xf32> to vector<4x8x8xbf16>
    %162 = arith.truncf %144 : vector<4x8x8xf32> to vector<4x8x8xbf16>
    "tpu.trace_start"() <{level = 10 : i32, message = "hqk,hkd->hqd"}> : () -> ()
    %cst_65 = arith.constant dense<0.000000e+00> : vector<4x8x8xf32>
    %163 = tpu.matmul %161, %162, %cst_65 {dimension_numbers = #tpu.dot_dimension_numbers<[2], [1], [1], [2], [0, 0, 0, 1, 1, 2], [0], [0]>} : vector<4x8x8xbf16>, vector<4x8x8xbf16>, vector<4x8x8xf32> -> vector<4x8x8xf32>
    "tpu.trace_stop"() : () -> ()
    %164 = arith.truncf %163 : vector<4x8x8xf32> to vector<4x8x8xbf16>
    %165 = vector.extract_strided_slice %164 {offsets = [0, 0, 0], sizes = [1, 8, 8], strides = [1, 1, 1]} : vector<4x8x8xbf16> to vector<1x8x8xbf16>
    %166 = vector.shape_cast %165 : vector<1x8x8xbf16> to vector<8x8xbf16>
    %167 = vector.extract_strided_slice %146 {offsets = [0, 0, 0], sizes = [1, 8, 32], strides = [1, 1, 1]} : vector<4x8x32xbf16> to vector<1x8x32xbf16>
    %168 = vector.shape_cast %167 : vector<1x8x32xbf16> to vector<8x32xbf16>
    %cst_66 = arith.constant dense<0.000000e+00> : vector<8x32xf32>
    %169 = tpu.matmul %166, %168, %cst_66 {dimension_numbers = #tpu.dot_dimension_numbers<[1], [0], [0], [1], [0, 0, 1, 1], [], []>} : vector<8x8xbf16>, vector<8x32xbf16>, vector<8x32xf32> -> vector<8x32xf32>
    %170 = vector.extract_strided_slice %164 {offsets = [1, 0, 0], sizes = [1, 8, 8], strides = [1, 1, 1]} : vector<4x8x8xbf16> to vector<1x8x8xbf16>
    %171 = vector.shape_cast %170 : vector<1x8x8xbf16> to vector<8x8xbf16>
    %172 = vector.extract_strided_slice %146 {offsets = [1, 0, 0], sizes = [1, 8, 32], strides = [1, 1, 1]} : vector<4x8x32xbf16> to vector<1x8x32xbf16>
    %173 = vector.shape_cast %172 : vector<1x8x32xbf16> to vector<8x32xbf16>
    %cst_67 = arith.constant dense<0.000000e+00> : vector<8x32xf32>
    %174 = tpu.matmul %171, %173, %cst_67 {dimension_numbers = #tpu.dot_dimension_numbers<[1], [0], [0], [1], [0, 0, 1, 1], [], []>} : vector<8x8xbf16>, vector<8x32xbf16>, vector<8x32xf32> -> vector<8x32xf32>
    %175 = arith.addf %169, %174 : vector<8x32xf32>
    %176 = vector.extract_strided_slice %164 {offsets = [2, 0, 0], sizes = [1, 8, 8], strides = [1, 1, 1]} : vector<4x8x8xbf16> to vector<1x8x8xbf16>
    %177 = vector.shape_cast %176 : vector<1x8x8xbf16> to vector<8x8xbf16>
    %178 = vector.extract_strided_slice %146 {offsets = [2, 0, 0], sizes = [1, 8, 32], strides = [1, 1, 1]} : vector<4x8x32xbf16> to vector<1x8x32xbf16>
    %179 = vector.shape_cast %178 : vector<1x8x32xbf16> to vector<8x32xbf16>
    %cst_68 = arith.constant dense<0.000000e+00> : vector<8x32xf32>
    %180 = tpu.matmul %177, %179, %cst_68 {dimension_numbers = #tpu.dot_dimension_numbers<[1], [0], [0], [1], [0, 0, 1, 1], [], []>} : vector<8x8xbf16>, vector<8x32xbf16>, vector<8x32xf32> -> vector<8x32xf32>
    %181 = arith.addf %175, %180 : vector<8x32xf32>
    %182 = vector.extract_strided_slice %164 {offsets = [3, 0, 0], sizes = [1, 8, 8], strides = [1, 1, 1]} : vector<4x8x8xbf16> to vector<1x8x8xbf16>
    %183 = vector.shape_cast %182 : vector<1x8x8xbf16> to vector<8x8xbf16>
    %184 = vector.extract_strided_slice %146 {offsets = [3, 0, 0], sizes = [1, 8, 32], strides = [1, 1, 1]} : vector<4x8x32xbf16> to vector<1x8x32xbf16>
    %185 = vector.shape_cast %184 : vector<1x8x32xbf16> to vector<8x32xbf16>
    %cst_69 = arith.constant dense<0.000000e+00> : vector<8x32xf32>
    %186 = tpu.matmul %183, %185, %cst_69 {dimension_numbers = #tpu.dot_dimension_numbers<[1], [0], [0], [1], [0, 0, 1, 1], [], []>} : vector<8x8xbf16>, vector<8x32xbf16>, vector<8x32xf32> -> vector<8x32xf32>
    %187 = arith.addf %181, %186 : vector<8x32xf32>
    %188 = vector.broadcast %147 : vector<1x32xf32> to vector<8x32xf32>
    %189 = arith.addf %187, %188 : vector<8x32xf32>
    %190 = arith.addf %128, %189 : vector<8x32xf32>
    %191 = vector.extract_strided_slice %130 {offsets = [2, 0], sizes = [1, 32], strides = [1, 1]} : vector<6x32xf32> to vector<1x32xf32>
    %192 = vector.extract_strided_slice %130 {offsets = [3, 0], sizes = [1, 32], strides = [1, 1]} : vector<6x32xf32> to vector<1x32xf32>
    %cst_70 = arith.constant dense<0.000000e+00> : vector<8xf32>
    %193 = vector.multi_reduction <add>, %190, %cst_70 [1] : vector<8x32xf32> to vector<8xf32>
    %194 = vector.shape_cast %193 : vector<8xf32> to vector<8x1xf32>
    %cst_71 = arith.constant 3.200000e+01 : f32
    %195 = vector.broadcast %cst_71 : f32 to vector<8x1xf32>
    %196 = arith.divf %194, %195 : vector<8x1xf32>
    %197 = vector.broadcast %196 : vector<8x1xf32> to vector<8x32xf32>
    %198 = arith.subf %190, %197 : vector<8x32xf32>
    %199 = arith.mulf %198, %198 : vector<8x32xf32>
    %cst_72 = arith.constant dense<0.000000e+00> : vector<8xf32>
    %200 = vector.multi_reduction <add>, %199, %cst_72 [1] : vector<8x32xf32> to vector<8xf32>
    %201 = vector.shape_cast %200 : vector<8xf32> to vector<8x1xf32>
    %cst_73 = arith.constant 3.200000e+01 : f32
    %202 = vector.broadcast %cst_73 : f32 to vector<8x1xf32>
    %203 = arith.divf %201, %202 : vector<8x1xf32>
    %cst_74 = arith.constant 9.99999974E-6 : f32
    %204 = vector.broadcast %cst_74 : f32 to vector<8x1xf32>
    %205 = arith.addf %203, %204 : vector<8x1xf32>
    %206 = math.rsqrt %205 : vector<8x1xf32>
    %207 = vector.broadcast %206 : vector<8x1xf32> to vector<8x32xf32>
    %208 = arith.mulf %198, %207 : vector<8x32xf32>
    %209 = vector.broadcast %191 : vector<1x32xf32> to vector<8x32xf32>
    %210 = arith.mulf %208, %209 : vector<8x32xf32>
    %211 = vector.broadcast %192 : vector<1x32xf32> to vector<8x32xf32>
    %212 = arith.addf %210, %211 : vector<8x32xf32>
    %213 = arith.truncf %212 : vector<8x32xf32> to vector<8x32xbf16>
    %c1_75 = arith.constant 1 : index
    %c0_76 = arith.constant 0 : index
    %c0_77 = arith.constant 0 : index
    %214 = vector.load %arg6[%c1_75, %c0_76, %c0_77] : memref<2x32x64xbf16, #tpu.memory_space<vmem>>, vector<1x32x64xbf16>
    %215 = vector.shape_cast %214 : vector<1x32x64xbf16> to vector<32x64xbf16>
    %cst_78 = arith.constant dense<0.000000e+00> : vector<8x64xf32>
    %216 = tpu.matmul %213, %215, %cst_78 {dimension_numbers = #tpu.dot_dimension_numbers<[1], [0], [0], [1], [0, 0, 1, 1], [], []>} : vector<8x32xbf16>, vector<32x64xbf16>, vector<8x64xf32> -> vector<8x64xf32>
    %c1_79 = arith.constant 1 : index
    %c0_80 = arith.constant 0 : index
    %c0_81 = arith.constant 0 : index
    %217 = vector.load %arg7[%c1_79, %c0_80, %c0_81] : memref<2x1x64xf32, #tpu.memory_space<vmem>>, vector<1x1x64xf32>
    %218 = vector.shape_cast %217 : vector<1x1x64xf32> to vector<1x64xf32>
    %219 = vector.broadcast %218 : vector<1x64xf32> to vector<8x64xf32>
    %220 = arith.addf %216, %219 : vector<8x64xf32>
    %cst_82 = arith.constant 0.000000e+00 : f32
    %221 = vector.broadcast %cst_82 : f32 to vector<8x64xf32>
    %222 = arith.maximumf %220, %221 : vector<8x64xf32>
    %223 = arith.truncf %222 : vector<8x64xf32> to vector<8x64xbf16>
    %c1_83 = arith.constant 1 : index
    %c0_84 = arith.constant 0 : index
    %c0_85 = arith.constant 0 : index
    %224 = vector.load %arg8[%c1_83, %c0_84, %c0_85] : memref<2x64x32xbf16, #tpu.memory_space<vmem>>, vector<1x64x32xbf16>
    %225 = vector.shape_cast %224 : vector<1x64x32xbf16> to vector<64x32xbf16>
    %cst_86 = arith.constant dense<0.000000e+00> : vector<8x32xf32>
    %226 = tpu.matmul %223, %225, %cst_86 {dimension_numbers = #tpu.dot_dimension_numbers<[1], [0], [0], [1], [0, 0, 1, 1], [], []>} : vector<8x64xbf16>, vector<64x32xbf16>, vector<8x32xf32> -> vector<8x32xf32>
    %227 = vector.extract_strided_slice %130 {offsets = [1, 0], sizes = [1, 32], strides = [1, 1]} : vector<6x32xf32> to vector<1x32xf32>
    %228 = vector.broadcast %227 : vector<1x32xf32> to vector<8x32xf32>
    %229 = arith.addf %226, %228 : vector<8x32xf32>
    %230 = arith.addf %212, %229 : vector<8x32xf32>
    %231 = vector.extract_strided_slice %130 {offsets = [4, 0], sizes = [1, 32], strides = [1, 1]} : vector<6x32xf32> to vector<1x32xf32>
    %232 = vector.extract_strided_slice %130 {offsets = [5, 0], sizes = [1, 32], strides = [1, 1]} : vector<6x32xf32> to vector<1x32xf32>
    %cst_87 = arith.constant dense<0.000000e+00> : vector<8xf32>
    %233 = vector.multi_reduction <add>, %230, %cst_87 [1] : vector<8x32xf32> to vector<8xf32>
    %234 = vector.shape_cast %233 : vector<8xf32> to vector<8x1xf32>
    %cst_88 = arith.constant 3.200000e+01 : f32
    %235 = vector.broadcast %cst_88 : f32 to vector<8x1xf32>
    %236 = arith.divf %234, %235 : vector<8x1xf32>
    %237 = vector.broadcast %236 : vector<8x1xf32> to vector<8x32xf32>
    %238 = arith.subf %230, %237 : vector<8x32xf32>
    %239 = arith.mulf %238, %238 : vector<8x32xf32>
    %cst_89 = arith.constant dense<0.000000e+00> : vector<8xf32>
    %240 = vector.multi_reduction <add>, %239, %cst_89 [1] : vector<8x32xf32> to vector<8xf32>
    %241 = vector.shape_cast %240 : vector<8xf32> to vector<8x1xf32>
    %cst_90 = arith.constant 3.200000e+01 : f32
    %242 = vector.broadcast %cst_90 : f32 to vector<8x1xf32>
    %243 = arith.divf %241, %242 : vector<8x1xf32>
    %cst_91 = arith.constant 9.99999974E-6 : f32
    %244 = vector.broadcast %cst_91 : f32 to vector<8x1xf32>
    %245 = arith.addf %243, %244 : vector<8x1xf32>
    %246 = math.rsqrt %245 : vector<8x1xf32>
    %247 = vector.broadcast %246 : vector<8x1xf32> to vector<8x32xf32>
    %248 = arith.mulf %238, %247 : vector<8x32xf32>
    %249 = vector.broadcast %231 : vector<1x32xf32> to vector<8x32xf32>
    %250 = arith.mulf %248, %249 : vector<8x32xf32>
    %251 = vector.broadcast %232 : vector<1x32xf32> to vector<8x32xf32>
    %252 = arith.addf %250, %251 : vector<8x32xf32>
    %253 = arith.truncf %252 : vector<8x32xf32> to vector<8x32xbf16>
    %254 = vector.shape_cast %253 : vector<8x32xbf16> to vector<1x8x32xbf16>
    %255 = vector.shape_cast %254 : vector<1x8x32xbf16> to vector<1x8x32xbf16>
    %256 = vector.broadcast %255 : vector<1x8x32xbf16> to vector<4x8x32xbf16>
    %c0_92 = arith.constant 0 : index
    %c0_93 = arith.constant 0 : index
    %c0_94 = arith.constant 0 : index
    %257 = vector.load %arg2[%c0_92, %c0_93, %c0_94] : memref<1x8x32xf32, #tpu.memory_space<vmem>>, vector<1x8x32xf32>
    %258 = vector.shape_cast %257 : vector<1x8x32xf32> to vector<8x32xf32>
    %c0_95 = arith.constant 0 : index
    %c0_96 = arith.constant 0 : index
    %c0_97 = arith.constant 0 : index
    %259 = vector.load %arg20[%c0_95, %c0_96, %c0_97] : memref<2x9x32xf32, #tpu.memory_space<vmem>>, vector<1x9x32xf32>
    %260 = vector.shape_cast %259 : vector<1x9x32xf32> to vector<9x32xf32>
    %261 = arith.truncf %258 : vector<8x32xf32> to vector<8x32xbf16>
    %262 = vector.shape_cast %261 : vector<8x32xbf16> to vector<1x8x32xbf16>
    %263 = vector.shape_cast %262 : vector<1x8x32xbf16> to vector<1x8x32xbf16>
    %264 = vector.broadcast %263 : vector<1x8x32xbf16> to vector<4x8x32xbf16>
    %c0_98 = arith.constant 0 : index
    %c0_99 = arith.constant 0 : index
    %c0_100 = arith.constant 0 : index
    %c0_101 = arith.constant 0 : index
    %265 = vector.load %arg10[%c0_98, %c0_99, %c0_100, %c0_101] : memref<2x4x32x24xbf16, #tpu.memory_space<vmem>>, vector<1x4x32x24xbf16>
    %266 = vector.shape_cast %265 : vector<1x4x32x24xbf16> to vector<4x32x24xbf16>
    %c0_102 = arith.constant 0 : index
    %c0_103 = arith.constant 0 : index
    %c0_104 = arith.constant 0 : index
    %c0_105 = arith.constant 0 : index
    %267 = vector.load %arg11[%c0_102, %c0_103, %c0_104, %c0_105] : memref<2x4x1x24xf32, #tpu.memory_space<vmem>>, vector<1x4x1x24xf32>
    %268 = vector.shape_cast %267 : vector<1x4x1x24xf32> to vector<4x1x24xf32>
    "tpu.trace_start"() <{level = 10 : i32, message = "hsd,hde->hse"}> : () -> ()
    %cst_106 = arith.constant dense<0.000000e+00> : vector<4x8x24xf32>
    %269 = tpu.matmul %264, %266, %cst_106 {dimension_numbers = #tpu.dot_dimension_numbers<[2], [1], [1], [2], [0, 0, 0, 1, 1, 2], [0], [0]>} : vector<4x8x32xbf16>, vector<4x32x24xbf16>, vector<4x8x24xf32> -> vector<4x8x24xf32>
    "tpu.trace_stop"() : () -> ()
    %270 = vector.broadcast %268 : vector<4x1x24xf32> to vector<4x8x24xf32>
    %271 = arith.addf %269, %270 : vector<4x8x24xf32>
    %272 = vector.extract_strided_slice %271 {offsets = [0, 0, 0], sizes = [4, 8, 8], strides = [1, 1, 1]} : vector<4x8x24xf32> to vector<4x8x8xf32>
    %273 = vector.extract_strided_slice %271 {offsets = [0, 0, 8], sizes = [4, 8, 8], strides = [1, 1, 1]} : vector<4x8x24xf32> to vector<4x8x8xf32>
    %274 = vector.extract_strided_slice %271 {offsets = [0, 0, 16], sizes = [4, 8, 8], strides = [1, 1, 1]} : vector<4x8x24xf32> to vector<4x8x8xf32>
    %c0_107 = arith.constant 0 : index
    %c0_108 = arith.constant 0 : index
    %c0_109 = arith.constant 0 : index
    %c0_110 = arith.constant 0 : index
    %c0_111 = arith.constant 0 : index
    %275 = vector.load %arg16[%c0_107, %c0_108, %c0_109, %c0_110, %c0_111] : memref<2x2x4x8x32xbf16, #tpu.memory_space<vmem>>, vector<1x1x4x8x32xbf16>
    %276 = vector.shape_cast %275 : vector<1x1x4x8x32xbf16> to vector<4x8x32xbf16>
    %277 = vector.extract_strided_slice %260 {offsets = [0, 0], sizes = [1, 32], strides = [1, 1]} : vector<9x32xf32> to vector<1x32xf32>
    %278 = arith.truncf %272 : vector<4x8x8xf32> to vector<4x8x8xbf16>
    %279 = arith.truncf %273 : vector<4x8x8xf32> to vector<4x8x8xbf16>
    "tpu.trace_start"() <{level = 10 : i32, message = "hqd,hkd->hqk"}> : () -> ()
    %cst_112 = arith.constant dense<0.000000e+00> : vector<4x8x8xf32>
    %280 = tpu.matmul %278, %279, %cst_112 {dimension_numbers = #tpu.dot_dimension_numbers<[2], [2], [1], [1], [0, 0, 0, 1, 1, 1], [0], [0]>} : vector<4x8x8xbf16>, vector<4x8x8xbf16>, vector<4x8x8xf32> -> vector<4x8x8xf32>
    %cst_113 = arith.constant -1.000000e+09 : f32
    "tpu.trace_stop"() : () -> ()
    %281 = vector.shape_cast %2 : vector<1x8x8xi1> to vector<1x8x8xi1>
    %282 = vector.broadcast %281 : vector<1x8x8xi1> to vector<4x8x8xi1>
    %283 = vector.broadcast %cst_113 : f32 to vector<4x8x8xf32>
    %284 = arith.select %282, %280, %283 : vector<4x8x8xi1>, vector<4x8x8xf32>
    %cst_114 = arith.constant dense<0xFF800000> : vector<4x8xf32>
    %285 = vector.multi_reduction <maximumf>, %284, %cst_114 [2] : vector<4x8x8xf32> to vector<4x8xf32>
    %286 = vector.shape_cast %285 : vector<4x8xf32> to vector<4x8x1xf32>
    %287 = vector.broadcast %286 : vector<4x8x1xf32> to vector<4x8x8xf32>
    %288 = arith.subf %284, %287 : vector<4x8x8xf32>
    %289 = math.exp %288 : vector<4x8x8xf32>
    %cst_115 = arith.constant dense<0.000000e+00> : vector<4x8xf32>
    %290 = vector.multi_reduction <add>, %289, %cst_115 [2] : vector<4x8x8xf32> to vector<4x8xf32>
    %291 = vector.shape_cast %290 : vector<4x8xf32> to vector<4x8x1xf32>
    %292 = tpu.reciprocal %291 {approx = true} : vector<4x8x1xf32> -> vector<4x8x1xf32>
    %293 = vector.broadcast %292 : vector<4x8x1xf32> to vector<4x8x8xf32>
    %294 = arith.mulf %289, %293 : vector<4x8x8xf32>
    %295 = arith.truncf %294 : vector<4x8x8xf32> to vector<4x8x8xbf16>
    %296 = arith.truncf %274 : vector<4x8x8xf32> to vector<4x8x8xbf16>
    "tpu.trace_start"() <{level = 10 : i32, message = "hqk,hkd->hqd"}> : () -> ()
    %cst_116 = arith.constant dense<0.000000e+00> : vector<4x8x8xf32>
    %297 = tpu.matmul %295, %296, %cst_116 {dimension_numbers = #tpu.dot_dimension_numbers<[2], [1], [1], [2], [0, 0, 0, 1, 1, 2], [0], [0]>} : vector<4x8x8xbf16>, vector<4x8x8xbf16>, vector<4x8x8xf32> -> vector<4x8x8xf32>
    "tpu.trace_stop"() : () -> ()
    %298 = arith.truncf %297 : vector<4x8x8xf32> to vector<4x8x8xbf16>
    %299 = vector.extract_strided_slice %298 {offsets = [0, 0, 0], sizes = [1, 8, 8], strides = [1, 1, 1]} : vector<4x8x8xbf16> to vector<1x8x8xbf16>
    %300 = vector.shape_cast %299 : vector<1x8x8xbf16> to vector<8x8xbf16>
    %301 = vector.extract_strided_slice %276 {offsets = [0, 0, 0], sizes = [1, 8, 32], strides = [1, 1, 1]} : vector<4x8x32xbf16> to vector<1x8x32xbf16>
    %302 = vector.shape_cast %301 : vector<1x8x32xbf16> to vector<8x32xbf16>
    %cst_117 = arith.constant dense<0.000000e+00> : vector<8x32xf32>
    %303 = tpu.matmul %300, %302, %cst_117 {dimension_numbers = #tpu.dot_dimension_numbers<[1], [0], [0], [1], [0, 0, 1, 1], [], []>} : vector<8x8xbf16>, vector<8x32xbf16>, vector<8x32xf32> -> vector<8x32xf32>
    %304 = vector.extract_strided_slice %298 {offsets = [1, 0, 0], sizes = [1, 8, 8], strides = [1, 1, 1]} : vector<4x8x8xbf16> to vector<1x8x8xbf16>
    %305 = vector.shape_cast %304 : vector<1x8x8xbf16> to vector<8x8xbf16>
    %306 = vector.extract_strided_slice %276 {offsets = [1, 0, 0], sizes = [1, 8, 32], strides = [1, 1, 1]} : vector<4x8x32xbf16> to vector<1x8x32xbf16>
    %307 = vector.shape_cast %306 : vector<1x8x32xbf16> to vector<8x32xbf16>
    %cst_118 = arith.constant dense<0.000000e+00> : vector<8x32xf32>
    %308 = tpu.matmul %305, %307, %cst_118 {dimension_numbers = #tpu.dot_dimension_numbers<[1], [0], [0], [1], [0, 0, 1, 1], [], []>} : vector<8x8xbf16>, vector<8x32xbf16>, vector<8x32xf32> -> vector<8x32xf32>
    %309 = arith.addf %303, %308 : vector<8x32xf32>
    %310 = vector.extract_strided_slice %298 {offsets = [2, 0, 0], sizes = [1, 8, 8], strides = [1, 1, 1]} : vector<4x8x8xbf16> to vector<1x8x8xbf16>
    %311 = vector.shape_cast %310 : vector<1x8x8xbf16> to vector<8x8xbf16>
    %312 = vector.extract_strided_slice %276 {offsets = [2, 0, 0], sizes = [1, 8, 32], strides = [1, 1, 1]} : vector<4x8x32xbf16> to vector<1x8x32xbf16>
    %313 = vector.shape_cast %312 : vector<1x8x32xbf16> to vector<8x32xbf16>
    %cst_119 = arith.constant dense<0.000000e+00> : vector<8x32xf32>
    %314 = tpu.matmul %311, %313, %cst_119 {dimension_numbers = #tpu.dot_dimension_numbers<[1], [0], [0], [1], [0, 0, 1, 1], [], []>} : vector<8x8xbf16>, vector<8x32xbf16>, vector<8x32xf32> -> vector<8x32xf32>
    %315 = arith.addf %309, %314 : vector<8x32xf32>
    %316 = vector.extract_strided_slice %298 {offsets = [3, 0, 0], sizes = [1, 8, 8], strides = [1, 1, 1]} : vector<4x8x8xbf16> to vector<1x8x8xbf16>
    %317 = vector.shape_cast %316 : vector<1x8x8xbf16> to vector<8x8xbf16>
    %318 = vector.extract_strided_slice %276 {offsets = [3, 0, 0], sizes = [1, 8, 32], strides = [1, 1, 1]} : vector<4x8x32xbf16> to vector<1x8x32xbf16>
    %319 = vector.shape_cast %318 : vector<1x8x32xbf16> to vector<8x32xbf16>
    %cst_120 = arith.constant dense<0.000000e+00> : vector<8x32xf32>
    %320 = tpu.matmul %317, %319, %cst_120 {dimension_numbers = #tpu.dot_dimension_numbers<[1], [0], [0], [1], [0, 0, 1, 1], [], []>} : vector<8x8xbf16>, vector<8x32xbf16>, vector<8x32xf32> -> vector<8x32xf32>
    %321 = arith.addf %315, %320 : vector<8x32xf32>
    %322 = vector.broadcast %277 : vector<1x32xf32> to vector<8x32xf32>
    %323 = arith.addf %321, %322 : vector<8x32xf32>
    %324 = arith.addf %258, %323 : vector<8x32xf32>
    %325 = vector.extract_strided_slice %260 {offsets = [3, 0], sizes = [1, 32], strides = [1, 1]} : vector<9x32xf32> to vector<1x32xf32>
    %326 = vector.extract_strided_slice %260 {offsets = [4, 0], sizes = [1, 32], strides = [1, 1]} : vector<9x32xf32> to vector<1x32xf32>
    %cst_121 = arith.constant dense<0.000000e+00> : vector<8xf32>
    %327 = vector.multi_reduction <add>, %324, %cst_121 [1] : vector<8x32xf32> to vector<8xf32>
    %328 = vector.shape_cast %327 : vector<8xf32> to vector<8x1xf32>
    %cst_122 = arith.constant 3.200000e+01 : f32
    %329 = vector.broadcast %cst_122 : f32 to vector<8x1xf32>
    %330 = arith.divf %328, %329 : vector<8x1xf32>
    %331 = vector.broadcast %330 : vector<8x1xf32> to vector<8x32xf32>
    %332 = arith.subf %324, %331 : vector<8x32xf32>
    %333 = arith.mulf %332, %332 : vector<8x32xf32>
    %cst_123 = arith.constant dense<0.000000e+00> : vector<8xf32>
    %334 = vector.multi_reduction <add>, %333, %cst_123 [1] : vector<8x32xf32> to vector<8xf32>
    %335 = vector.shape_cast %334 : vector<8xf32> to vector<8x1xf32>
    %cst_124 = arith.constant 3.200000e+01 : f32
    %336 = vector.broadcast %cst_124 : f32 to vector<8x1xf32>
    %337 = arith.divf %335, %336 : vector<8x1xf32>
    %cst_125 = arith.constant 9.99999974E-6 : f32
    %338 = vector.broadcast %cst_125 : f32 to vector<8x1xf32>
    %339 = arith.addf %337, %338 : vector<8x1xf32>
    %340 = math.rsqrt %339 : vector<8x1xf32>
    %341 = vector.broadcast %340 : vector<8x1xf32> to vector<8x32xf32>
    %342 = arith.mulf %332, %341 : vector<8x32xf32>
    %343 = vector.broadcast %325 : vector<1x32xf32> to vector<8x32xf32>
    %344 = arith.mulf %342, %343 : vector<8x32xf32>
    %345 = vector.broadcast %326 : vector<1x32xf32> to vector<8x32xf32>
    %346 = arith.addf %344, %345 : vector<8x32xf32>
    %347 = arith.truncf %346 : vector<8x32xf32> to vector<8x32xbf16>
    %348 = vector.shape_cast %347 : vector<8x32xbf16> to vector<1x8x32xbf16>
    %349 = vector.shape_cast %348 : vector<1x8x32xbf16> to vector<1x8x32xbf16>
    %350 = vector.broadcast %349 : vector<1x8x32xbf16> to vector<4x8x32xbf16>
    %c0_126 = arith.constant 0 : index
    %c0_127 = arith.constant 0 : index
    %c0_128 = arith.constant 0 : index
    %c0_129 = arith.constant 0 : index
    %351 = vector.load %arg12[%c0_126, %c0_127, %c0_128, %c0_129] : memref<2x4x32x8xbf16, #tpu.memory_space<vmem>>, vector<1x4x32x8xbf16>
    %352 = vector.shape_cast %351 : vector<1x4x32x8xbf16> to vector<4x32x8xbf16>
    %c0_130 = arith.constant 0 : index
    %c0_131 = arith.constant 0 : index
    %c0_132 = arith.constant 0 : index
    %c0_133 = arith.constant 0 : index
    %353 = vector.load %arg13[%c0_130, %c0_131, %c0_132, %c0_133] : memref<2x4x1x8xf32, #tpu.memory_space<vmem>>, vector<1x4x1x8xf32>
    %354 = vector.shape_cast %353 : vector<1x4x1x8xf32> to vector<4x1x8xf32>
    "tpu.trace_start"() <{level = 10 : i32, message = "hsd,hde->hse"}> : () -> ()
    %cst_134 = arith.constant dense<0.000000e+00> : vector<4x8x8xf32>
    %355 = tpu.matmul %350, %352, %cst_134 {dimension_numbers = #tpu.dot_dimension_numbers<[2], [1], [1], [2], [0, 0, 0, 1, 1, 2], [0], [0]>} : vector<4x8x32xbf16>, vector<4x32x8xbf16>, vector<4x8x8xf32> -> vector<4x8x8xf32>
    "tpu.trace_stop"() : () -> ()
    %356 = vector.broadcast %354 : vector<4x1x8xf32> to vector<4x8x8xf32>
    %357 = arith.addf %355, %356 : vector<4x8x8xf32>
    %c0_135 = arith.constant 0 : index
    %c0_136 = arith.constant 0 : index
    %c0_137 = arith.constant 0 : index
    %c0_138 = arith.constant 0 : index
    %358 = vector.load %arg14[%c0_135, %c0_136, %c0_137, %c0_138] : memref<2x4x32x16xbf16, #tpu.memory_space<vmem>>, vector<1x4x32x16xbf16>
    %359 = vector.shape_cast %358 : vector<1x4x32x16xbf16> to vector<4x32x16xbf16>
    %c0_139 = arith.constant 0 : index
    %c0_140 = arith.constant 0 : index
    %c0_141 = arith.constant 0 : index
    %c0_142 = arith.constant 0 : index
    %360 = vector.load %arg15[%c0_139, %c0_140, %c0_141, %c0_142] : memref<2x4x1x16xf32, #tpu.memory_space<vmem>>, vector<1x4x1x16xf32>
    %361 = vector.shape_cast %360 : vector<1x4x1x16xf32> to vector<4x1x16xf32>
    "tpu.trace_start"() <{level = 10 : i32, message = "hsd,hde->hse"}> : () -> ()
    %cst_143 = arith.constant dense<0.000000e+00> : vector<4x8x16xf32>
    %362 = tpu.matmul %256, %359, %cst_143 {dimension_numbers = #tpu.dot_dimension_numbers<[2], [1], [1], [2], [0, 0, 0, 1, 1, 2], [0], [0]>} : vector<4x8x32xbf16>, vector<4x32x16xbf16>, vector<4x8x16xf32> -> vector<4x8x16xf32>
    "tpu.trace_stop"() : () -> ()
    %363 = vector.broadcast %361 : vector<4x1x16xf32> to vector<4x8x16xf32>
    %364 = arith.addf %362, %363 : vector<4x8x16xf32>
    %365 = vector.extract_strided_slice %364 {offsets = [0, 0, 0], sizes = [4, 8, 8], strides = [1, 1, 1]} : vector<4x8x16xf32> to vector<4x8x8xf32>
    %366 = vector.extract_strided_slice %364 {offsets = [0, 0, 8], sizes = [4, 8, 8], strides = [1, 1, 1]} : vector<4x8x16xf32> to vector<4x8x8xf32>
    %c0_144 = arith.constant 0 : index
    %c1_145 = arith.constant 1 : index
    %c0_146 = arith.constant 0 : index
    %c0_147 = arith.constant 0 : index
    %c0_148 = arith.constant 0 : index
    %367 = vector.load %arg16[%c0_144, %c1_145, %c0_146, %c0_147, %c0_148] : memref<2x2x4x8x32xbf16, #tpu.memory_space<vmem>>, vector<1x1x4x8x32xbf16>
    %368 = vector.shape_cast %367 : vector<1x1x4x8x32xbf16> to vector<4x8x32xbf16>
    %369 = vector.extract_strided_slice %260 {offsets = [1, 0], sizes = [1, 32], strides = [1, 1]} : vector<9x32xf32> to vector<1x32xf32>
    %370 = arith.truncf %357 : vector<4x8x8xf32> to vector<4x8x8xbf16>
    %371 = arith.truncf %365 : vector<4x8x8xf32> to vector<4x8x8xbf16>
    "tpu.trace_start"() <{level = 10 : i32, message = "hqd,hkd->hqk"}> : () -> ()
    %cst_149 = arith.constant dense<0.000000e+00> : vector<4x8x8xf32>
    %372 = tpu.matmul %370, %371, %cst_149 {dimension_numbers = #tpu.dot_dimension_numbers<[2], [2], [1], [1], [0, 0, 0, 1, 1, 1], [0], [0]>} : vector<4x8x8xbf16>, vector<4x8x8xbf16>, vector<4x8x8xf32> -> vector<4x8x8xf32>
    "tpu.trace_stop"() : () -> ()
    %cst_150 = arith.constant dense<0xFF800000> : vector<4x8xf32>
    %373 = vector.multi_reduction <maximumf>, %372, %cst_150 [2] : vector<4x8x8xf32> to vector<4x8xf32>
    %374 = vector.shape_cast %373 : vector<4x8xf32> to vector<4x8x1xf32>
    %375 = vector.broadcast %374 : vector<4x8x1xf32> to vector<4x8x8xf32>
    %376 = arith.subf %372, %375 : vector<4x8x8xf32>
    %377 = math.exp %376 : vector<4x8x8xf32>
    %cst_151 = arith.constant dense<0.000000e+00> : vector<4x8xf32>
    %378 = vector.multi_reduction <add>, %377, %cst_151 [2] : vector<4x8x8xf32> to vector<4x8xf32>
    %379 = vector.shape_cast %378 : vector<4x8xf32> to vector<4x8x1xf32>
    %380 = tpu.reciprocal %379 {approx = true} : vector<4x8x1xf32> -> vector<4x8x1xf32>
    %381 = vector.broadcast %380 : vector<4x8x1xf32> to vector<4x8x8xf32>
    %382 = arith.mulf %377, %381 : vector<4x8x8xf32>
    %383 = arith.truncf %382 : vector<4x8x8xf32> to vector<4x8x8xbf16>
    %384 = arith.truncf %366 : vector<4x8x8xf32> to vector<4x8x8xbf16>
    "tpu.trace_start"() <{level = 10 : i32, message = "hqk,hkd->hqd"}> : () -> ()
    %cst_152 = arith.constant dense<0.000000e+00> : vector<4x8x8xf32>
    %385 = tpu.matmul %383, %384, %cst_152 {dimension_numbers = #tpu.dot_dimension_numbers<[2], [1], [1], [2], [0, 0, 0, 1, 1, 2], [0], [0]>} : vector<4x8x8xbf16>, vector<4x8x8xbf16>, vector<4x8x8xf32> -> vector<4x8x8xf32>
    "tpu.trace_stop"() : () -> ()
    %386 = arith.truncf %385 : vector<4x8x8xf32> to vector<4x8x8xbf16>
    %387 = vector.extract_strided_slice %386 {offsets = [0, 0, 0], sizes = [1, 8, 8], strides = [1, 1, 1]} : vector<4x8x8xbf16> to vector<1x8x8xbf16>
    %388 = vector.shape_cast %387 : vector<1x8x8xbf16> to vector<8x8xbf16>
    %389 = vector.extract_strided_slice %368 {offsets = [0, 0, 0], sizes = [1, 8, 32], strides = [1, 1, 1]} : vector<4x8x32xbf16> to vector<1x8x32xbf16>
    %390 = vector.shape_cast %389 : vector<1x8x32xbf16> to vector<8x32xbf16>
    %cst_153 = arith.constant dense<0.000000e+00> : vector<8x32xf32>
    %391 = tpu.matmul %388, %390, %cst_153 {dimension_numbers = #tpu.dot_dimension_numbers<[1], [0], [0], [1], [0, 0, 1, 1], [], []>} : vector<8x8xbf16>, vector<8x32xbf16>, vector<8x32xf32> -> vector<8x32xf32>
    %392 = vector.extract_strided_slice %386 {offsets = [1, 0, 0], sizes = [1, 8, 8], strides = [1, 1, 1]} : vector<4x8x8xbf16> to vector<1x8x8xbf16>
    %393 = vector.shape_cast %392 : vector<1x8x8xbf16> to vector<8x8xbf16>
    %394 = vector.extract_strided_slice %368 {offsets = [1, 0, 0], sizes = [1, 8, 32], strides = [1, 1, 1]} : vector<4x8x32xbf16> to vector<1x8x32xbf16>
    %395 = vector.shape_cast %394 : vector<1x8x32xbf16> to vector<8x32xbf16>
    %cst_154 = arith.constant dense<0.000000e+00> : vector<8x32xf32>
    %396 = tpu.matmul %393, %395, %cst_154 {dimension_numbers = #tpu.dot_dimension_numbers<[1], [0], [0], [1], [0, 0, 1, 1], [], []>} : vector<8x8xbf16>, vector<8x32xbf16>, vector<8x32xf32> -> vector<8x32xf32>
    %397 = arith.addf %391, %396 : vector<8x32xf32>
    %398 = vector.extract_strided_slice %386 {offsets = [2, 0, 0], sizes = [1, 8, 8], strides = [1, 1, 1]} : vector<4x8x8xbf16> to vector<1x8x8xbf16>
    %399 = vector.shape_cast %398 : vector<1x8x8xbf16> to vector<8x8xbf16>
    %400 = vector.extract_strided_slice %368 {offsets = [2, 0, 0], sizes = [1, 8, 32], strides = [1, 1, 1]} : vector<4x8x32xbf16> to vector<1x8x32xbf16>
    %401 = vector.shape_cast %400 : vector<1x8x32xbf16> to vector<8x32xbf16>
    %cst_155 = arith.constant dense<0.000000e+00> : vector<8x32xf32>
    %402 = tpu.matmul %399, %401, %cst_155 {dimension_numbers = #tpu.dot_dimension_numbers<[1], [0], [0], [1], [0, 0, 1, 1], [], []>} : vector<8x8xbf16>, vector<8x32xbf16>, vector<8x32xf32> -> vector<8x32xf32>
    %403 = arith.addf %397, %402 : vector<8x32xf32>
    %404 = vector.extract_strided_slice %386 {offsets = [3, 0, 0], sizes = [1, 8, 8], strides = [1, 1, 1]} : vector<4x8x8xbf16> to vector<1x8x8xbf16>
    %405 = vector.shape_cast %404 : vector<1x8x8xbf16> to vector<8x8xbf16>
    %406 = vector.extract_strided_slice %368 {offsets = [3, 0, 0], sizes = [1, 8, 32], strides = [1, 1, 1]} : vector<4x8x32xbf16> to vector<1x8x32xbf16>
    %407 = vector.shape_cast %406 : vector<1x8x32xbf16> to vector<8x32xbf16>
    %cst_156 = arith.constant dense<0.000000e+00> : vector<8x32xf32>
    %408 = tpu.matmul %405, %407, %cst_156 {dimension_numbers = #tpu.dot_dimension_numbers<[1], [0], [0], [1], [0, 0, 1, 1], [], []>} : vector<8x8xbf16>, vector<8x32xbf16>, vector<8x32xf32> -> vector<8x32xf32>
    %409 = arith.addf %403, %408 : vector<8x32xf32>
    %410 = vector.broadcast %369 : vector<1x32xf32> to vector<8x32xf32>
    %411 = arith.addf %409, %410 : vector<8x32xf32>
    %412 = arith.addf %346, %411 : vector<8x32xf32>
    %413 = vector.extract_strided_slice %260 {offsets = [5, 0], sizes = [1, 32], strides = [1, 1]} : vector<9x32xf32> to vector<1x32xf32>
    %414 = vector.extract_strided_slice %260 {offsets = [6, 0], sizes = [1, 32], strides = [1, 1]} : vector<9x32xf32> to vector<1x32xf32>
    %cst_157 = arith.constant dense<0.000000e+00> : vector<8xf32>
    %415 = vector.multi_reduction <add>, %412, %cst_157 [1] : vector<8x32xf32> to vector<8xf32>
    %416 = vector.shape_cast %415 : vector<8xf32> to vector<8x1xf32>
    %cst_158 = arith.constant 3.200000e+01 : f32
    %417 = vector.broadcast %cst_158 : f32 to vector<8x1xf32>
    %418 = arith.divf %416, %417 : vector<8x1xf32>
    %419 = vector.broadcast %418 : vector<8x1xf32> to vector<8x32xf32>
    %420 = arith.subf %412, %419 : vector<8x32xf32>
    %421 = arith.mulf %420, %420 : vector<8x32xf32>
    %cst_159 = arith.constant dense<0.000000e+00> : vector<8xf32>
    %422 = vector.multi_reduction <add>, %421, %cst_159 [1] : vector<8x32xf32> to vector<8xf32>
    %423 = vector.shape_cast %422 : vector<8xf32> to vector<8x1xf32>
    %cst_160 = arith.constant 3.200000e+01 : f32
    %424 = vector.broadcast %cst_160 : f32 to vector<8x1xf32>
    %425 = arith.divf %423, %424 : vector<8x1xf32>
    %cst_161 = arith.constant 9.99999974E-6 : f32
    %426 = vector.broadcast %cst_161 : f32 to vector<8x1xf32>
    %427 = arith.addf %425, %426 : vector<8x1xf32>
    %428 = math.rsqrt %427 : vector<8x1xf32>
    %429 = vector.broadcast %428 : vector<8x1xf32> to vector<8x32xf32>
    %430 = arith.mulf %420, %429 : vector<8x32xf32>
    %431 = vector.broadcast %413 : vector<1x32xf32> to vector<8x32xf32>
    %432 = arith.mulf %430, %431 : vector<8x32xf32>
    %433 = vector.broadcast %414 : vector<1x32xf32> to vector<8x32xf32>
    %434 = arith.addf %432, %433 : vector<8x32xf32>
    %435 = arith.truncf %434 : vector<8x32xf32> to vector<8x32xbf16>
    %c0_162 = arith.constant 0 : index
    %c0_163 = arith.constant 0 : index
    %c0_164 = arith.constant 0 : index
    %436 = vector.load %arg17[%c0_162, %c0_163, %c0_164] : memref<2x32x64xbf16, #tpu.memory_space<vmem>>, vector<1x32x64xbf16>
    %437 = vector.shape_cast %436 : vector<1x32x64xbf16> to vector<32x64xbf16>
    %cst_165 = arith.constant dense<0.000000e+00> : vector<8x64xf32>
    %438 = tpu.matmul %435, %437, %cst_165 {dimension_numbers = #tpu.dot_dimension_numbers<[1], [0], [0], [1], [0, 0, 1, 1], [], []>} : vector<8x32xbf16>, vector<32x64xbf16>, vector<8x64xf32> -> vector<8x64xf32>
    %c0_166 = arith.constant 0 : index
    %c0_167 = arith.constant 0 : index
    %c0_168 = arith.constant 0 : index
    %439 = vector.load %arg18[%c0_166, %c0_167, %c0_168] : memref<2x1x64xf32, #tpu.memory_space<vmem>>, vector<1x1x64xf32>
    %440 = vector.shape_cast %439 : vector<1x1x64xf32> to vector<1x64xf32>
    %441 = vector.broadcast %440 : vector<1x64xf32> to vector<8x64xf32>
    %442 = arith.addf %438, %441 : vector<8x64xf32>
    %cst_169 = arith.constant 0.000000e+00 : f32
    %443 = vector.broadcast %cst_169 : f32 to vector<8x64xf32>
    %444 = arith.maximumf %442, %443 : vector<8x64xf32>
    %445 = arith.truncf %444 : vector<8x64xf32> to vector<8x64xbf16>
    %c0_170 = arith.constant 0 : index
    %c0_171 = arith.constant 0 : index
    %c0_172 = arith.constant 0 : index
    %446 = vector.load %arg19[%c0_170, %c0_171, %c0_172] : memref<2x64x32xbf16, #tpu.memory_space<vmem>>, vector<1x64x32xbf16>
    %447 = vector.shape_cast %446 : vector<1x64x32xbf16> to vector<64x32xbf16>
    %cst_173 = arith.constant dense<0.000000e+00> : vector<8x32xf32>
    %448 = tpu.matmul %445, %447, %cst_173 {dimension_numbers = #tpu.dot_dimension_numbers<[1], [0], [0], [1], [0, 0, 1, 1], [], []>} : vector<8x64xbf16>, vector<64x32xbf16>, vector<8x32xf32> -> vector<8x32xf32>
    %449 = vector.extract_strided_slice %260 {offsets = [2, 0], sizes = [1, 32], strides = [1, 1]} : vector<9x32xf32> to vector<1x32xf32>
    %450 = vector.broadcast %449 : vector<1x32xf32> to vector<8x32xf32>
    %451 = arith.addf %448, %450 : vector<8x32xf32>
    %452 = arith.addf %434, %451 : vector<8x32xf32>
    %453 = vector.extract_strided_slice %260 {offsets = [7, 0], sizes = [1, 32], strides = [1, 1]} : vector<9x32xf32> to vector<1x32xf32>
    %454 = vector.extract_strided_slice %260 {offsets = [8, 0], sizes = [1, 32], strides = [1, 1]} : vector<9x32xf32> to vector<1x32xf32>
    %cst_174 = arith.constant dense<0.000000e+00> : vector<8xf32>
    %455 = vector.multi_reduction <add>, %452, %cst_174 [1] : vector<8x32xf32> to vector<8xf32>
    %456 = vector.shape_cast %455 : vector<8xf32> to vector<8x1xf32>
    %cst_175 = arith.constant 3.200000e+01 : f32
    %457 = vector.broadcast %cst_175 : f32 to vector<8x1xf32>
    %458 = arith.divf %456, %457 : vector<8x1xf32>
    %459 = vector.broadcast %458 : vector<8x1xf32> to vector<8x32xf32>
    %460 = arith.subf %452, %459 : vector<8x32xf32>
    %461 = arith.mulf %460, %460 : vector<8x32xf32>
    %cst_176 = arith.constant dense<0.000000e+00> : vector<8xf32>
    %462 = vector.multi_reduction <add>, %461, %cst_176 [1] : vector<8x32xf32> to vector<8xf32>
    %463 = vector.shape_cast %462 : vector<8xf32> to vector<8x1xf32>
    %cst_177 = arith.constant 3.200000e+01 : f32
    %464 = vector.broadcast %cst_177 : f32 to vector<8x1xf32>
    %465 = arith.divf %463, %464 : vector<8x1xf32>
    %cst_178 = arith.constant 9.99999974E-6 : f32
    %466 = vector.broadcast %cst_178 : f32 to vector<8x1xf32>
    %467 = arith.addf %465, %466 : vector<8x1xf32>
    %468 = math.rsqrt %467 : vector<8x1xf32>
    %469 = vector.broadcast %468 : vector<8x1xf32> to vector<8x32xf32>
    %470 = arith.mulf %460, %469 : vector<8x32xf32>
    %471 = vector.broadcast %453 : vector<1x32xf32> to vector<8x32xf32>
    %472 = arith.mulf %470, %471 : vector<8x32xf32>
    %473 = vector.broadcast %454 : vector<1x32xf32> to vector<8x32xf32>
    %474 = arith.addf %472, %473 : vector<8x32xf32>
    %c1_179 = arith.constant 1 : index
    %c0_180 = arith.constant 0 : index
    %c0_181 = arith.constant 0 : index
    %475 = vector.load %arg20[%c1_179, %c0_180, %c0_181] : memref<2x9x32xf32, #tpu.memory_space<vmem>>, vector<1x9x32xf32>
    %476 = vector.shape_cast %475 : vector<1x9x32xf32> to vector<9x32xf32>
    %477 = arith.truncf %474 : vector<8x32xf32> to vector<8x32xbf16>
    %478 = vector.shape_cast %477 : vector<8x32xbf16> to vector<1x8x32xbf16>
    %479 = vector.shape_cast %478 : vector<1x8x32xbf16> to vector<1x8x32xbf16>
    %480 = vector.broadcast %479 : vector<1x8x32xbf16> to vector<4x8x32xbf16>
    %c1_182 = arith.constant 1 : index
    %c0_183 = arith.constant 0 : index
    %c0_184 = arith.constant 0 : index
    %c0_185 = arith.constant 0 : index
    %481 = vector.load %arg10[%c1_182, %c0_183, %c0_184, %c0_185] : memref<2x4x32x24xbf16, #tpu.memory_space<vmem>>, vector<1x4x32x24xbf16>
    %482 = vector.shape_cast %481 : vector<1x4x32x24xbf16> to vector<4x32x24xbf16>
    %c1_186 = arith.constant 1 : index
    %c0_187 = arith.constant 0 : index
    %c0_188 = arith.constant 0 : index
    %c0_189 = arith.constant 0 : index
    %483 = vector.load %arg11[%c1_186, %c0_187, %c0_188, %c0_189] : memref<2x4x1x24xf32, #tpu.memory_space<vmem>>, vector<1x4x1x24xf32>
    %484 = vector.shape_cast %483 : vector<1x4x1x24xf32> to vector<4x1x24xf32>
    "tpu.trace_start"() <{level = 10 : i32, message = "hsd,hde->hse"}> : () -> ()
    %cst_190 = arith.constant dense<0.000000e+00> : vector<4x8x24xf32>
    %485 = tpu.matmul %480, %482, %cst_190 {dimension_numbers = #tpu.dot_dimension_numbers<[2], [1], [1], [2], [0, 0, 0, 1, 1, 2], [0], [0]>} : vector<4x8x32xbf16>, vector<4x32x24xbf16>, vector<4x8x24xf32> -> vector<4x8x24xf32>
    "tpu.trace_stop"() : () -> ()
    %486 = vector.broadcast %484 : vector<4x1x24xf32> to vector<4x8x24xf32>
    %487 = arith.addf %485, %486 : vector<4x8x24xf32>
    %488 = vector.extract_strided_slice %487 {offsets = [0, 0, 0], sizes = [4, 8, 8], strides = [1, 1, 1]} : vector<4x8x24xf32> to vector<4x8x8xf32>
    %489 = vector.extract_strided_slice %487 {offsets = [0, 0, 8], sizes = [4, 8, 8], strides = [1, 1, 1]} : vector<4x8x24xf32> to vector<4x8x8xf32>
    %490 = vector.extract_strided_slice %487 {offsets = [0, 0, 16], sizes = [4, 8, 8], strides = [1, 1, 1]} : vector<4x8x24xf32> to vector<4x8x8xf32>
    %c1_191 = arith.constant 1 : index
    %c0_192 = arith.constant 0 : index
    %c0_193 = arith.constant 0 : index
    %c0_194 = arith.constant 0 : index
    %c0_195 = arith.constant 0 : index
    %491 = vector.load %arg16[%c1_191, %c0_192, %c0_193, %c0_194, %c0_195] : memref<2x2x4x8x32xbf16, #tpu.memory_space<vmem>>, vector<1x1x4x8x32xbf16>
    %492 = vector.shape_cast %491 : vector<1x1x4x8x32xbf16> to vector<4x8x32xbf16>
    %493 = vector.extract_strided_slice %476 {offsets = [0, 0], sizes = [1, 32], strides = [1, 1]} : vector<9x32xf32> to vector<1x32xf32>
    %494 = arith.truncf %488 : vector<4x8x8xf32> to vector<4x8x8xbf16>
    %495 = arith.truncf %489 : vector<4x8x8xf32> to vector<4x8x8xbf16>
    "tpu.trace_start"() <{level = 10 : i32, message = "hqd,hkd->hqk"}> : () -> ()
    %cst_196 = arith.constant dense<0.000000e+00> : vector<4x8x8xf32>
    %496 = tpu.matmul %494, %495, %cst_196 {dimension_numbers = #tpu.dot_dimension_numbers<[2], [2], [1], [1], [0, 0, 0, 1, 1, 1], [0], [0]>} : vector<4x8x8xbf16>, vector<4x8x8xbf16>, vector<4x8x8xf32> -> vector<4x8x8xf32>
    %cst_197 = arith.constant -1.000000e+09 : f32
    "tpu.trace_stop"() : () -> ()
    %497 = vector.shape_cast %2 : vector<1x8x8xi1> to vector<1x8x8xi1>
    %498 = vector.broadcast %497 : vector<1x8x8xi1> to vector<4x8x8xi1>
    %499 = vector.broadcast %cst_197 : f32 to vector<4x8x8xf32>
    %500 = arith.select %498, %496, %499 : vector<4x8x8xi1>, vector<4x8x8xf32>
    %cst_198 = arith.constant dense<0xFF800000> : vector<4x8xf32>
    %501 = vector.multi_reduction <maximumf>, %500, %cst_198 [2] : vector<4x8x8xf32> to vector<4x8xf32>
    %502 = vector.shape_cast %501 : vector<4x8xf32> to vector<4x8x1xf32>
    %503 = vector.broadcast %502 : vector<4x8x1xf32> to vector<4x8x8xf32>
    %504 = arith.subf %500, %503 : vector<4x8x8xf32>
    %505 = math.exp %504 : vector<4x8x8xf32>
    %cst_199 = arith.constant dense<0.000000e+00> : vector<4x8xf32>
    %506 = vector.multi_reduction <add>, %505, %cst_199 [2] : vector<4x8x8xf32> to vector<4x8xf32>
    %507 = vector.shape_cast %506 : vector<4x8xf32> to vector<4x8x1xf32>
    %508 = tpu.reciprocal %507 {approx = true} : vector<4x8x1xf32> -> vector<4x8x1xf32>
    %509 = vector.broadcast %508 : vector<4x8x1xf32> to vector<4x8x8xf32>
    %510 = arith.mulf %505, %509 : vector<4x8x8xf32>
    %511 = arith.truncf %510 : vector<4x8x8xf32> to vector<4x8x8xbf16>
    %512 = arith.truncf %490 : vector<4x8x8xf32> to vector<4x8x8xbf16>
    "tpu.trace_start"() <{level = 10 : i32, message = "hqk,hkd->hqd"}> : () -> ()
    %cst_200 = arith.constant dense<0.000000e+00> : vector<4x8x8xf32>
    %513 = tpu.matmul %511, %512, %cst_200 {dimension_numbers = #tpu.dot_dimension_numbers<[2], [1], [1], [2], [0, 0, 0, 1, 1, 2], [0], [0]>} : vector<4x8x8xbf16>, vector<4x8x8xbf16>, vector<4x8x8xf32> -> vector<4x8x8xf32>
    "tpu.trace_stop"() : () -> ()
    %514 = arith.truncf %513 : vector<4x8x8xf32> to vector<4x8x8xbf16>
    %515 = vector.extract_strided_slice %514 {offsets = [0, 0, 0], sizes = [1, 8, 8], strides = [1, 1, 1]} : vector<4x8x8xbf16> to vector<1x8x8xbf16>
    %516 = vector.shape_cast %515 : vector<1x8x8xbf16> to vector<8x8xbf16>
    %517 = vector.extract_strided_slice %492 {offsets = [0, 0, 0], sizes = [1, 8, 32], strides = [1, 1, 1]} : vector<4x8x32xbf16> to vector<1x8x32xbf16>
    %518 = vector.shape_cast %517 : vector<1x8x32xbf16> to vector<8x32xbf16>
    %cst_201 = arith.constant dense<0.000000e+00> : vector<8x32xf32>
    %519 = tpu.matmul %516, %518, %cst_201 {dimension_numbers = #tpu.dot_dimension_numbers<[1], [0], [0], [1], [0, 0, 1, 1], [], []>} : vector<8x8xbf16>, vector<8x32xbf16>, vector<8x32xf32> -> vector<8x32xf32>
    %520 = vector.extract_strided_slice %514 {offsets = [1, 0, 0], sizes = [1, 8, 8], strides = [1, 1, 1]} : vector<4x8x8xbf16> to vector<1x8x8xbf16>
    %521 = vector.shape_cast %520 : vector<1x8x8xbf16> to vector<8x8xbf16>
    %522 = vector.extract_strided_slice %492 {offsets = [1, 0, 0], sizes = [1, 8, 32], strides = [1, 1, 1]} : vector<4x8x32xbf16> to vector<1x8x32xbf16>
    %523 = vector.shape_cast %522 : vector<1x8x32xbf16> to vector<8x32xbf16>
    %cst_202 = arith.constant dense<0.000000e+00> : vector<8x32xf32>
    %524 = tpu.matmul %521, %523, %cst_202 {dimension_numbers = #tpu.dot_dimension_numbers<[1], [0], [0], [1], [0, 0, 1, 1], [], []>} : vector<8x8xbf16>, vector<8x32xbf16>, vector<8x32xf32> -> vector<8x32xf32>
    %525 = arith.addf %519, %524 : vector<8x32xf32>
    %526 = vector.extract_strided_slice %514 {offsets = [2, 0, 0], sizes = [1, 8, 8], strides = [1, 1, 1]} : vector<4x8x8xbf16> to vector<1x8x8xbf16>
    %527 = vector.shape_cast %526 : vector<1x8x8xbf16> to vector<8x8xbf16>
    %528 = vector.extract_strided_slice %492 {offsets = [2, 0, 0], sizes = [1, 8, 32], strides = [1, 1, 1]} : vector<4x8x32xbf16> to vector<1x8x32xbf16>
    %529 = vector.shape_cast %528 : vector<1x8x32xbf16> to vector<8x32xbf16>
    %cst_203 = arith.constant dense<0.000000e+00> : vector<8x32xf32>
    %530 = tpu.matmul %527, %529, %cst_203 {dimension_numbers = #tpu.dot_dimension_numbers<[1], [0], [0], [1], [0, 0, 1, 1], [], []>} : vector<8x8xbf16>, vector<8x32xbf16>, vector<8x32xf32> -> vector<8x32xf32>
    %531 = arith.addf %525, %530 : vector<8x32xf32>
    %532 = vector.extract_strided_slice %514 {offsets = [3, 0, 0], sizes = [1, 8, 8], strides = [1, 1, 1]} : vector<4x8x8xbf16> to vector<1x8x8xbf16>
    %533 = vector.shape_cast %532 : vector<1x8x8xbf16> to vector<8x8xbf16>
    %534 = vector.extract_strided_slice %492 {offsets = [3, 0, 0], sizes = [1, 8, 32], strides = [1, 1, 1]} : vector<4x8x32xbf16> to vector<1x8x32xbf16>
    %535 = vector.shape_cast %534 : vector<1x8x32xbf16> to vector<8x32xbf16>
    %cst_204 = arith.constant dense<0.000000e+00> : vector<8x32xf32>
    %536 = tpu.matmul %533, %535, %cst_204 {dimension_numbers = #tpu.dot_dimension_numbers<[1], [0], [0], [1], [0, 0, 1, 1], [], []>} : vector<8x8xbf16>, vector<8x32xbf16>, vector<8x32xf32> -> vector<8x32xf32>
    %537 = arith.addf %531, %536 : vector<8x32xf32>
    %538 = vector.broadcast %493 : vector<1x32xf32> to vector<8x32xf32>
    %539 = arith.addf %537, %538 : vector<8x32xf32>
    %540 = arith.addf %474, %539 : vector<8x32xf32>
    %541 = vector.extract_strided_slice %476 {offsets = [3, 0], sizes = [1, 32], strides = [1, 1]} : vector<9x32xf32> to vector<1x32xf32>
    %542 = vector.extract_strided_slice %476 {offsets = [4, 0], sizes = [1, 32], strides = [1, 1]} : vector<9x32xf32> to vector<1x32xf32>
    %cst_205 = arith.constant dense<0.000000e+00> : vector<8xf32>
    %543 = vector.multi_reduction <add>, %540, %cst_205 [1] : vector<8x32xf32> to vector<8xf32>
    %544 = vector.shape_cast %543 : vector<8xf32> to vector<8x1xf32>
    %cst_206 = arith.constant 3.200000e+01 : f32
    %545 = vector.broadcast %cst_206 : f32 to vector<8x1xf32>
    %546 = arith.divf %544, %545 : vector<8x1xf32>
    %547 = vector.broadcast %546 : vector<8x1xf32> to vector<8x32xf32>
    %548 = arith.subf %540, %547 : vector<8x32xf32>
    %549 = arith.mulf %548, %548 : vector<8x32xf32>
    %cst_207 = arith.constant dense<0.000000e+00> : vector<8xf32>
    %550 = vector.multi_reduction <add>, %549, %cst_207 [1] : vector<8x32xf32> to vector<8xf32>
    %551 = vector.shape_cast %550 : vector<8xf32> to vector<8x1xf32>
    %cst_208 = arith.constant 3.200000e+01 : f32
    %552 = vector.broadcast %cst_208 : f32 to vector<8x1xf32>
    %553 = arith.divf %551, %552 : vector<8x1xf32>
    %cst_209 = arith.constant 9.99999974E-6 : f32
    %554 = vector.broadcast %cst_209 : f32 to vector<8x1xf32>
    %555 = arith.addf %553, %554 : vector<8x1xf32>
    %556 = math.rsqrt %555 : vector<8x1xf32>
    %557 = vector.broadcast %556 : vector<8x1xf32> to vector<8x32xf32>
    %558 = arith.mulf %548, %557 : vector<8x32xf32>
    %559 = vector.broadcast %541 : vector<1x32xf32> to vector<8x32xf32>
    %560 = arith.mulf %558, %559 : vector<8x32xf32>
    %561 = vector.broadcast %542 : vector<1x32xf32> to vector<8x32xf32>
    %562 = arith.addf %560, %561 : vector<8x32xf32>
    %563 = arith.truncf %562 : vector<8x32xf32> to vector<8x32xbf16>
    %564 = vector.shape_cast %563 : vector<8x32xbf16> to vector<1x8x32xbf16>
    %565 = vector.shape_cast %564 : vector<1x8x32xbf16> to vector<1x8x32xbf16>
    %566 = vector.broadcast %565 : vector<1x8x32xbf16> to vector<4x8x32xbf16>
    %c1_210 = arith.constant 1 : index
    %c0_211 = arith.constant 0 : index
    %c0_212 = arith.constant 0 : index
    %c0_213 = arith.constant 0 : index
    %567 = vector.load %arg12[%c1_210, %c0_211, %c0_212, %c0_213] : memref<2x4x32x8xbf16, #tpu.memory_space<vmem>>, vector<1x4x32x8xbf16>
    %568 = vector.shape_cast %567 : vector<1x4x32x8xbf16> to vector<4x32x8xbf16>
    %c1_214 = arith.constant 1 : index
    %c0_215 = arith.constant 0 : index
    %c0_216 = arith.constant 0 : index
    %c0_217 = arith.constant 0 : index
    %569 = vector.load %arg13[%c1_214, %c0_215, %c0_216, %c0_217] : memref<2x4x1x8xf32, #tpu.memory_space<vmem>>, vector<1x4x1x8xf32>
    %570 = vector.shape_cast %569 : vector<1x4x1x8xf32> to vector<4x1x8xf32>
    "tpu.trace_start"() <{level = 10 : i32, message = "hsd,hde->hse"}> : () -> ()
    %cst_218 = arith.constant dense<0.000000e+00> : vector<4x8x8xf32>
    %571 = tpu.matmul %566, %568, %cst_218 {dimension_numbers = #tpu.dot_dimension_numbers<[2], [1], [1], [2], [0, 0, 0, 1, 1, 2], [0], [0]>} : vector<4x8x32xbf16>, vector<4x32x8xbf16>, vector<4x8x8xf32> -> vector<4x8x8xf32>
    "tpu.trace_stop"() : () -> ()
    %572 = vector.broadcast %570 : vector<4x1x8xf32> to vector<4x8x8xf32>
    %573 = arith.addf %571, %572 : vector<4x8x8xf32>
    %c1_219 = arith.constant 1 : index
    %c0_220 = arith.constant 0 : index
    %c0_221 = arith.constant 0 : index
    %c0_222 = arith.constant 0 : index
    %574 = vector.load %arg14[%c1_219, %c0_220, %c0_221, %c0_222] : memref<2x4x32x16xbf16, #tpu.memory_space<vmem>>, vector<1x4x32x16xbf16>
    %575 = vector.shape_cast %574 : vector<1x4x32x16xbf16> to vector<4x32x16xbf16>
    %c1_223 = arith.constant 1 : index
    %c0_224 = arith.constant 0 : index
    %c0_225 = arith.constant 0 : index
    %c0_226 = arith.constant 0 : index
    %576 = vector.load %arg15[%c1_223, %c0_224, %c0_225, %c0_226] : memref<2x4x1x16xf32, #tpu.memory_space<vmem>>, vector<1x4x1x16xf32>
    %577 = vector.shape_cast %576 : vector<1x4x1x16xf32> to vector<4x1x16xf32>
    "tpu.trace_start"() <{level = 10 : i32, message = "hsd,hde->hse"}> : () -> ()
    %cst_227 = arith.constant dense<0.000000e+00> : vector<4x8x16xf32>
    %578 = tpu.matmul %256, %575, %cst_227 {dimension_numbers = #tpu.dot_dimension_numbers<[2], [1], [1], [2], [0, 0, 0, 1, 1, 2], [0], [0]>} : vector<4x8x32xbf16>, vector<4x32x16xbf16>, vector<4x8x16xf32> -> vector<4x8x16xf32>
    "tpu.trace_stop"() : () -> ()
    %579 = vector.broadcast %577 : vector<4x1x16xf32> to vector<4x8x16xf32>
    %580 = arith.addf %578, %579 : vector<4x8x16xf32>
    %581 = vector.extract_strided_slice %580 {offsets = [0, 0, 0], sizes = [4, 8, 8], strides = [1, 1, 1]} : vector<4x8x16xf32> to vector<4x8x8xf32>
    %582 = vector.extract_strided_slice %580 {offsets = [0, 0, 8], sizes = [4, 8, 8], strides = [1, 1, 1]} : vector<4x8x16xf32> to vector<4x8x8xf32>
    %c1_228 = arith.constant 1 : index
    %c1_229 = arith.constant 1 : index
    %c0_230 = arith.constant 0 : index
    %c0_231 = arith.constant 0 : index
    %c0_232 = arith.constant 0 : index
    %583 = vector.load %arg16[%c1_228, %c1_229, %c0_230, %c0_231, %c0_232] : memref<2x2x4x8x32xbf16, #tpu.memory_space<vmem>>, vector<1x1x4x8x32xbf16>
    %584 = vector.shape_cast %583 : vector<1x1x4x8x32xbf16> to vector<4x8x32xbf16>
    %585 = vector.extract_strided_slice %476 {offsets = [1, 0], sizes = [1, 32], strides = [1, 1]} : vector<9x32xf32> to vector<1x32xf32>
    %586 = arith.truncf %573 : vector<4x8x8xf32> to vector<4x8x8xbf16>
    %587 = arith.truncf %581 : vector<4x8x8xf32> to vector<4x8x8xbf16>
    "tpu.trace_start"() <{level = 10 : i32, message = "hqd,hkd->hqk"}> : () -> ()
    %cst_233 = arith.constant dense<0.000000e+00> : vector<4x8x8xf32>
    %588 = tpu.matmul %586, %587, %cst_233 {dimension_numbers = #tpu.dot_dimension_numbers<[2], [2], [1], [1], [0, 0, 0, 1, 1, 1], [0], [0]>} : vector<4x8x8xbf16>, vector<4x8x8xbf16>, vector<4x8x8xf32> -> vector<4x8x8xf32>
    "tpu.trace_stop"() : () -> ()
    %cst_234 = arith.constant dense<0xFF800000> : vector<4x8xf32>
    %589 = vector.multi_reduction <maximumf>, %588, %cst_234 [2] : vector<4x8x8xf32> to vector<4x8xf32>
    %590 = vector.shape_cast %589 : vector<4x8xf32> to vector<4x8x1xf32>
    %591 = vector.broadcast %590 : vector<4x8x1xf32> to vector<4x8x8xf32>
    %592 = arith.subf %588, %591 : vector<4x8x8xf32>
    %593 = math.exp %592 : vector<4x8x8xf32>
    %cst_235 = arith.constant dense<0.000000e+00> : vector<4x8xf32>
    %594 = vector.multi_reduction <add>, %593, %cst_235 [2] : vector<4x8x8xf32> to vector<4x8xf32>
    %595 = vector.shape_cast %594 : vector<4x8xf32> to vector<4x8x1xf32>
    %596 = tpu.reciprocal %595 {approx = true} : vector<4x8x1xf32> -> vector<4x8x1xf32>
    %597 = vector.broadcast %596 : vector<4x8x1xf32> to vector<4x8x8xf32>
    %598 = arith.mulf %593, %597 : vector<4x8x8xf32>
    %599 = arith.truncf %598 : vector<4x8x8xf32> to vector<4x8x8xbf16>
    %600 = arith.truncf %582 : vector<4x8x8xf32> to vector<4x8x8xbf16>
    "tpu.trace_start"() <{level = 10 : i32, message = "hqk,hkd->hqd"}> : () -> ()
    %cst_236 = arith.constant dense<0.000000e+00> : vector<4x8x8xf32>
    %601 = tpu.matmul %599, %600, %cst_236 {dimension_numbers = #tpu.dot_dimension_numbers<[2], [1], [1], [2], [0, 0, 0, 1, 1, 2], [0], [0]>} : vector<4x8x8xbf16>, vector<4x8x8xbf16>, vector<4x8x8xf32> -> vector<4x8x8xf32>
    "tpu.trace_stop"() : () -> ()
    %602 = arith.truncf %601 : vector<4x8x8xf32> to vector<4x8x8xbf16>
    %603 = vector.extract_strided_slice %602 {offsets = [0, 0, 0], sizes = [1, 8, 8], strides = [1, 1, 1]} : vector<4x8x8xbf16> to vector<1x8x8xbf16>
    %604 = vector.shape_cast %603 : vector<1x8x8xbf16> to vector<8x8xbf16>
    %605 = vector.extract_strided_slice %584 {offsets = [0, 0, 0], sizes = [1, 8, 32], strides = [1, 1, 1]} : vector<4x8x32xbf16> to vector<1x8x32xbf16>
    %606 = vector.shape_cast %605 : vector<1x8x32xbf16> to vector<8x32xbf16>
    %cst_237 = arith.constant dense<0.000000e+00> : vector<8x32xf32>
    %607 = tpu.matmul %604, %606, %cst_237 {dimension_numbers = #tpu.dot_dimension_numbers<[1], [0], [0], [1], [0, 0, 1, 1], [], []>} : vector<8x8xbf16>, vector<8x32xbf16>, vector<8x32xf32> -> vector<8x32xf32>
    %608 = vector.extract_strided_slice %602 {offsets = [1, 0, 0], sizes = [1, 8, 8], strides = [1, 1, 1]} : vector<4x8x8xbf16> to vector<1x8x8xbf16>
    %609 = vector.shape_cast %608 : vector<1x8x8xbf16> to vector<8x8xbf16>
    %610 = vector.extract_strided_slice %584 {offsets = [1, 0, 0], sizes = [1, 8, 32], strides = [1, 1, 1]} : vector<4x8x32xbf16> to vector<1x8x32xbf16>
    %611 = vector.shape_cast %610 : vector<1x8x32xbf16> to vector<8x32xbf16>
    %cst_238 = arith.constant dense<0.000000e+00> : vector<8x32xf32>
    %612 = tpu.matmul %609, %611, %cst_238 {dimension_numbers = #tpu.dot_dimension_numbers<[1], [0], [0], [1], [0, 0, 1, 1], [], []>} : vector<8x8xbf16>, vector<8x32xbf16>, vector<8x32xf32> -> vector<8x32xf32>
    %613 = arith.addf %607, %612 : vector<8x32xf32>
    %614 = vector.extract_strided_slice %602 {offsets = [2, 0, 0], sizes = [1, 8, 8], strides = [1, 1, 1]} : vector<4x8x8xbf16> to vector<1x8x8xbf16>
    %615 = vector.shape_cast %614 : vector<1x8x8xbf16> to vector<8x8xbf16>
    %616 = vector.extract_strided_slice %584 {offsets = [2, 0, 0], sizes = [1, 8, 32], strides = [1, 1, 1]} : vector<4x8x32xbf16> to vector<1x8x32xbf16>
    %617 = vector.shape_cast %616 : vector<1x8x32xbf16> to vector<8x32xbf16>
    %cst_239 = arith.constant dense<0.000000e+00> : vector<8x32xf32>
    %618 = tpu.matmul %615, %617, %cst_239 {dimension_numbers = #tpu.dot_dimension_numbers<[1], [0], [0], [1], [0, 0, 1, 1], [], []>} : vector<8x8xbf16>, vector<8x32xbf16>, vector<8x32xf32> -> vector<8x32xf32>
    %619 = arith.addf %613, %618 : vector<8x32xf32>
    %620 = vector.extract_strided_slice %602 {offsets = [3, 0, 0], sizes = [1, 8, 8], strides = [1, 1, 1]} : vector<4x8x8xbf16> to vector<1x8x8xbf16>
    %621 = vector.shape_cast %620 : vector<1x8x8xbf16> to vector<8x8xbf16>
    %622 = vector.extract_strided_slice %584 {offsets = [3, 0, 0], sizes = [1, 8, 32], strides = [1, 1, 1]} : vector<4x8x32xbf16> to vector<1x8x32xbf16>
    %623 = vector.shape_cast %622 : vector<1x8x32xbf16> to vector<8x32xbf16>
    %cst_240 = arith.constant dense<0.000000e+00> : vector<8x32xf32>
    %624 = tpu.matmul %621, %623, %cst_240 {dimension_numbers = #tpu.dot_dimension_numbers<[1], [0], [0], [1], [0, 0, 1, 1], [], []>} : vector<8x8xbf16>, vector<8x32xbf16>, vector<8x32xf32> -> vector<8x32xf32>
    %625 = arith.addf %619, %624 : vector<8x32xf32>
    %626 = vector.broadcast %585 : vector<1x32xf32> to vector<8x32xf32>
    %627 = arith.addf %625, %626 : vector<8x32xf32>
    %628 = arith.addf %562, %627 : vector<8x32xf32>
    %629 = vector.extract_strided_slice %476 {offsets = [5, 0], sizes = [1, 32], strides = [1, 1]} : vector<9x32xf32> to vector<1x32xf32>
    %630 = vector.extract_strided_slice %476 {offsets = [6, 0], sizes = [1, 32], strides = [1, 1]} : vector<9x32xf32> to vector<1x32xf32>
    %cst_241 = arith.constant dense<0.000000e+00> : vector<8xf32>
    %631 = vector.multi_reduction <add>, %628, %cst_241 [1] : vector<8x32xf32> to vector<8xf32>
    %632 = vector.shape_cast %631 : vector<8xf32> to vector<8x1xf32>
    %cst_242 = arith.constant 3.200000e+01 : f32
    %633 = vector.broadcast %cst_242 : f32 to vector<8x1xf32>
    %634 = arith.divf %632, %633 : vector<8x1xf32>
    %635 = vector.broadcast %634 : vector<8x1xf32> to vector<8x32xf32>
    %636 = arith.subf %628, %635 : vector<8x32xf32>
    %637 = arith.mulf %636, %636 : vector<8x32xf32>
    %cst_243 = arith.constant dense<0.000000e+00> : vector<8xf32>
    %638 = vector.multi_reduction <add>, %637, %cst_243 [1] : vector<8x32xf32> to vector<8xf32>
    %639 = vector.shape_cast %638 : vector<8xf32> to vector<8x1xf32>
    %cst_244 = arith.constant 3.200000e+01 : f32
    %640 = vector.broadcast %cst_244 : f32 to vector<8x1xf32>
    %641 = arith.divf %639, %640 : vector<8x1xf32>
    %cst_245 = arith.constant 9.99999974E-6 : f32
    %642 = vector.broadcast %cst_245 : f32 to vector<8x1xf32>
    %643 = arith.addf %641, %642 : vector<8x1xf32>
    %644 = math.rsqrt %643 : vector<8x1xf32>
    %645 = vector.broadcast %644 : vector<8x1xf32> to vector<8x32xf32>
    %646 = arith.mulf %636, %645 : vector<8x32xf32>
    %647 = vector.broadcast %629 : vector<1x32xf32> to vector<8x32xf32>
    %648 = arith.mulf %646, %647 : vector<8x32xf32>
    %649 = vector.broadcast %630 : vector<1x32xf32> to vector<8x32xf32>
    %650 = arith.addf %648, %649 : vector<8x32xf32>
    %651 = arith.truncf %650 : vector<8x32xf32> to vector<8x32xbf16>
    %c1_246 = arith.constant 1 : index
    %c0_247 = arith.constant 0 : index
    %c0_248 = arith.constant 0 : index
    %652 = vector.load %arg17[%c1_246, %c0_247, %c0_248] : memref<2x32x64xbf16, #tpu.memory_space<vmem>>, vector<1x32x64xbf16>
    %653 = vector.shape_cast %652 : vector<1x32x64xbf16> to vector<32x64xbf16>
    %cst_249 = arith.constant dense<0.000000e+00> : vector<8x64xf32>
    %654 = tpu.matmul %651, %653, %cst_249 {dimension_numbers = #tpu.dot_dimension_numbers<[1], [0], [0], [1], [0, 0, 1, 1], [], []>} : vector<8x32xbf16>, vector<32x64xbf16>, vector<8x64xf32> -> vector<8x64xf32>
    %c1_250 = arith.constant 1 : index
    %c0_251 = arith.constant 0 : index
    %c0_252 = arith.constant 0 : index
    %655 = vector.load %arg18[%c1_250, %c0_251, %c0_252] : memref<2x1x64xf32, #tpu.memory_space<vmem>>, vector<1x1x64xf32>
    %656 = vector.shape_cast %655 : vector<1x1x64xf32> to vector<1x64xf32>
    %657 = vector.broadcast %656 : vector<1x64xf32> to vector<8x64xf32>
    %658 = arith.addf %654, %657 : vector<8x64xf32>
    %cst_253 = arith.constant 0.000000e+00 : f32
    %659 = vector.broadcast %cst_253 : f32 to vector<8x64xf32>
    %660 = arith.maximumf %658, %659 : vector<8x64xf32>
    %661 = arith.truncf %660 : vector<8x64xf32> to vector<8x64xbf16>
    %c1_254 = arith.constant 1 : index
    %c0_255 = arith.constant 0 : index
    %c0_256 = arith.constant 0 : index
    %662 = vector.load %arg19[%c1_254, %c0_255, %c0_256] : memref<2x64x32xbf16, #tpu.memory_space<vmem>>, vector<1x64x32xbf16>
    %663 = vector.shape_cast %662 : vector<1x64x32xbf16> to vector<64x32xbf16>
    %cst_257 = arith.constant dense<0.000000e+00> : vector<8x32xf32>
    %664 = tpu.matmul %661, %663, %cst_257 {dimension_numbers = #tpu.dot_dimension_numbers<[1], [0], [0], [1], [0, 0, 1, 1], [], []>} : vector<8x64xbf16>, vector<64x32xbf16>, vector<8x32xf32> -> vector<8x32xf32>
    %665 = vector.extract_strided_slice %476 {offsets = [2, 0], sizes = [1, 32], strides = [1, 1]} : vector<9x32xf32> to vector<1x32xf32>
    %666 = vector.broadcast %665 : vector<1x32xf32> to vector<8x32xf32>
    %667 = arith.addf %664, %666 : vector<8x32xf32>
    %668 = arith.addf %650, %667 : vector<8x32xf32>
    %669 = vector.extract_strided_slice %476 {offsets = [7, 0], sizes = [1, 32], strides = [1, 1]} : vector<9x32xf32> to vector<1x32xf32>
    %670 = vector.extract_strided_slice %476 {offsets = [8, 0], sizes = [1, 32], strides = [1, 1]} : vector<9x32xf32> to vector<1x32xf32>
    %cst_258 = arith.constant dense<0.000000e+00> : vector<8xf32>
    %671 = vector.multi_reduction <add>, %668, %cst_258 [1] : vector<8x32xf32> to vector<8xf32>
    %672 = vector.shape_cast %671 : vector<8xf32> to vector<8x1xf32>
    %cst_259 = arith.constant 3.200000e+01 : f32
    %673 = vector.broadcast %cst_259 : f32 to vector<8x1xf32>
    %674 = arith.divf %672, %673 : vector<8x1xf32>
    %675 = vector.broadcast %674 : vector<8x1xf32> to vector<8x32xf32>
    %676 = arith.subf %668, %675 : vector<8x32xf32>
    %677 = arith.mulf %676, %676 : vector<8x32xf32>
    %cst_260 = arith.constant dense<0.000000e+00> : vector<8xf32>
    %678 = vector.multi_reduction <add>, %677, %cst_260 [1] : vector<8x32xf32> to vector<8xf32>
    %679 = vector.shape_cast %678 : vector<8xf32> to vector<8x1xf32>
    %cst_261 = arith.constant 3.200000e+01 : f32
    %680 = vector.broadcast %cst_261 : f32 to vector<8x1xf32>
    %681 = arith.divf %679, %680 : vector<8x1xf32>
    %cst_262 = arith.constant 9.99999974E-6 : f32
    %682 = vector.broadcast %cst_262 : f32 to vector<8x1xf32>
    %683 = arith.addf %681, %682 : vector<8x1xf32>
    %684 = math.rsqrt %683 : vector<8x1xf32>
    %685 = vector.broadcast %684 : vector<8x1xf32> to vector<8x32xf32>
    %686 = arith.mulf %676, %685 : vector<8x32xf32>
    %687 = vector.broadcast %669 : vector<1x32xf32> to vector<8x32xf32>
    %688 = arith.mulf %686, %687 : vector<8x32xf32>
    %689 = vector.broadcast %670 : vector<1x32xf32> to vector<8x32xf32>
    %690 = arith.addf %688, %689 : vector<8x32xf32>
    %c0_263 = arith.constant 0 : index
    %c0_264 = arith.constant 0 : index
    %c0_265 = arith.constant 0 : index
    %691 = vector.load %arg21[%c0_263, %c0_264, %c0_265] : memref<1x8x32xf32, #tpu.memory_space<vmem>>, vector<1x8x32xf32>
    %692 = vector.shape_cast %691 : vector<1x8x32xf32> to vector<8x32xf32>
    %693 = vector.shape_cast %690 : vector<8x32xf32> to vector<1x8x32xf32>
    tpu.vector_store %arg21[%c0_263, %c0_264, %c0_265], %693 {strides = array<i32>} : memref<1x8x32xf32, #tpu.memory_space<vmem>>, vector<1x8x32xf32>,
    return
  }
  func.func @transform_0(%arg0: i32) -> (i32, i32, i32) {
    %c0_i32 = arith.constant 0 : i32
    %c0_i32_0 = arith.constant 0 : i32
    %c0_i32_1 = arith.constant 0 : i32
    return %arg0, %c0_i32, %c0_i32_0 : i32, i32, i32
  }
  func.func @transform_1(%arg0: i32) -> (i32, i32, i32) {
    %c0_i32 = arith.constant 0 : i32
    %c0_i32_0 = arith.constant 0 : i32
    %c0_i32_1 = arith.constant 0 : i32
    return %arg0, %c0_i32, %c0_i32_0 : i32, i32, i32
  }
  func.func @transform_2(%arg0: i32) -> (i32, i32, i32, i32) {
    %c0_i32 = arith.constant 0 : i32
    %c0_i32_0 = arith.constant 0 : i32
    %c0_i32_1 = arith.constant 0 : i32
    %c0_i32_2 = arith.constant 0 : i32
    %c0_i32_3 = arith.constant 0 : i32
    return %c0_i32, %c0_i32_0, %c0_i32_1, %c0_i32_2 : i32, i32, i32, i32
  }
  func.func @transform_3(%arg0: i32) -> (i32, i32, i32, i32) {
    %c0_i32 = arith.constant 0 : i32
    %c0_i32_0 = arith.constant 0 : i32
    %c0_i32_1 = arith.constant 0 : i32
    %c0_i32_2 = arith.constant 0 : i32
    %c0_i32_3 = arith.constant 0 : i32
    return %c0_i32, %c0_i32_0, %c0_i32_1, %c0_i32_2 : i32, i32, i32, i32
  }
  func.func @transform_4(%arg0: i32) -> (i32, i32, i32, i32) {
    %c0_i32 = arith.constant 0 : i32
    %c0_i32_0 = arith.constant 0 : i32
    %c0_i32_1 = arith.constant 0 : i32
    %c0_i32_2 = arith.constant 0 : i32
    %c0_i32_3 = arith.constant 0 : i32
    return %c0_i32, %c0_i32_0, %c0_i32_1, %c0_i32_2 : i32, i32, i32, i32
  }
  func.func @transform_5(%arg0: i32) -> (i32, i32, i32) {
    %c0_i32 = arith.constant 0 : i32
    %c0_i32_0 = arith.constant 0 : i32
    %c0_i32_1 = arith.constant 0 : i32
    %c0_i32_2 = arith.constant 0 : i32
    return %c0_i32, %c0_i32_0, %c0_i32_1 : i32, i32, i32
  }
  func.func @transform_6(%arg0: i32) -> (i32, i32, i32) {
    %c0_i32 = arith.constant 0 : i32
    %c0_i32_0 = arith.constant 0 : i32
    %c0_i32_1 = arith.constant 0 : i32
    %c0_i32_2 = arith.constant 0 : i32
    return %c0_i32, %c0_i32_0, %c0_i32_1 : i32, i32, i32
  }
  func.func @transform_7(%arg0: i32) -> (i32, i32, i32) {
    %c0_i32 = arith.constant 0 : i32
    %c0_i32_0 = arith.constant 0 : i32
    %c0_i32_1 = arith.constant 0 : i32
    %c0_i32_2 = arith.constant 0 : i32
    return %c0_i32, %c0_i32_0, %c0_i32_1 : i32, i32, i32
  }
  func.func @transform_8(%arg0: i32) -> (i32, i32, i32) {
    %c0_i32 = arith.constant 0 : i32
    %c0_i32_0 = arith.constant 0 : i32
    %c0_i32_1 = arith.constant 0 : i32
    %c0_i32_2 = arith.constant 0 : i32
    return %c0_i32, %c0_i32_0, %c0_i32_1 : i32, i32, i32
  }
  func.func @transform_9(%arg0: i32) -> (i32, i32, i32, i32) {
    %c0_i32 = arith.constant 0 : i32
    %c0_i32_0 = arith.constant 0 : i32
    %c0_i32_1 = arith.constant 0 : i32
    %c0_i32_2 = arith.constant 0 : i32
    %c0_i32_3 = arith.constant 0 : i32
    return %c0_i32, %c0_i32_0, %c0_i32_1, %c0_i32_2 : i32, i32, i32, i32
  }
  func.func @transform_10(%arg0: i32) -> (i32, i32, i32, i32) {
    %c0_i32 = arith.constant 0 : i32
    %c0_i32_0 = arith.constant 0 : i32
    %c0_i32_1 = arith.constant 0 : i32
    %c0_i32_2 = arith.constant 0 : i32
    %c0_i32_3 = arith.constant 0 : i32
    return %c0_i32, %c0_i32_0, %c0_i32_1, %c0_i32_2 : i32, i32, i32, i32
  }
  func.func @transform_11(%arg0: i32) -> (i32, i32, i32, i32) {
    %c0_i32 = arith.constant 0 : i32
    %c0_i32_0 = arith.constant 0 : i32
    %c0_i32_1 = arith.constant 0 : i32
    %c0_i32_2 = arith.constant 0 : i32
    %c0_i32_3 = arith.constant 0 : i32
    return %c0_i32, %c0_i32_0, %c0_i32_1, %c0_i32_2 : i32, i32, i32, i32
  }
  func.func @transform_12(%arg0: i32) -> (i32, i32, i32, i32) {
    %c0_i32 = arith.constant 0 : i32
    %c0_i32_0 = arith.constant 0 : i32
    %c0_i32_1 = arith.constant 0 : i32
    %c0_i32_2 = arith.constant 0 : i32
    %c0_i32_3 = arith.constant 0 : i32
    return %c0_i32, %c0_i32_0, %c0_i32_1, %c0_i32_2 : i32, i32, i32, i32
  }
  func.func @transform_13(%arg0: i32) -> (i32, i32, i32, i32) {
    %c0_i32 = arith.constant 0 : i32
    %c0_i32_0 = arith.constant 0 : i32
    %c0_i32_1 = arith.constant 0 : i32
    %c0_i32_2 = arith.constant 0 : i32
    %c0_i32_3 = arith.constant 0 : i32
    return %c0_i32, %c0_i32_0, %c0_i32_1, %c0_i32_2 : i32, i32, i32, i32
  }
  func.func @transform_14(%arg0: i32) -> (i32, i32, i32, i32) {
    %c0_i32 = arith.constant 0 : i32
    %c0_i32_0 = arith.constant 0 : i32
    %c0_i32_1 = arith.constant 0 : i32
    %c0_i32_2 = arith.constant 0 : i32
    %c0_i32_3 = arith.constant 0 : i32
    return %c0_i32, %c0_i32_0, %c0_i32_1, %c0_i32_2 : i32, i32, i32, i32
  }
  func.func @transform_15(%arg0: i32) -> (i32, i32, i32, i32, i32) {
    %c0_i32 = arith.constant 0 : i32
    %c0_i32_0 = arith.constant 0 : i32
    %c0_i32_1 = arith.constant 0 : i32
    %c0_i32_2 = arith.constant 0 : i32
    %c0_i32_3 = arith.constant 0 : i32
    %c0_i32_4 = arith.constant 0 : i32
    return %c0_i32, %c0_i32_0, %c0_i32_1, %c0_i32_2, %c0_i32_3 : i32, i32, i32, i32, i32
  }
  func.func @transform_16(%arg0: i32) -> (i32, i32, i32) {
    %c0_i32 = arith.constant 0 : i32
    %c0_i32_0 = arith.constant 0 : i32
    %c0_i32_1 = arith.constant 0 : i32
    %c0_i32_2 = arith.constant 0 : i32
    return %c0_i32, %c0_i32_0, %c0_i32_1 : i32, i32, i32
  }
  func.func @transform_17(%arg0: i32) -> (i32, i32, i32) {
    %c0_i32 = arith.constant 0 : i32
    %c0_i32_0 = arith.constant 0 : i32
    %c0_i32_1 = arith.constant 0 : i32
    %c0_i32_2 = arith.constant 0 : i32
    return %c0_i32, %c0_i32_0, %c0_i32_1 : i32, i32, i32
  }
  func.func @transform_18(%arg0: i32) -> (i32, i32, i32) {
    %c0_i32 = arith.constant 0 : i32
    %c0_i32_0 = arith.constant 0 : i32
    %c0_i32_1 = arith.constant 0 : i32
    %c0_i32_2 = arith.constant 0 : i32
    return %c0_i32, %c0_i32_0, %c0_i32_1 : i32, i32, i32
  }
  func.func @transform_19(%arg0: i32) -> (i32, i32, i32) {
    %c0_i32 = arith.constant 0 : i32
    %c0_i32_0 = arith.constant 0 : i32
    %c0_i32_1 = arith.constant 0 : i32
    %c0_i32_2 = arith.constant 0 : i32
    return %c0_i32, %c0_i32_0, %c0_i32_1 : i32, i32, i32
  }
  func.func @transform_20(%arg0: i32) -> (i32, i32, i32) {
    %c0_i32 = arith.constant 0 : i32
    %c0_i32_0 = arith.constant 0 : i32
    %c0_i32_1 = arith.constant 0 : i32
    return %arg0, %c0_i32, %c0_i32_0 : i32, i32, i32
  }
}

</mosaic_0001>

<bundles_post_ra>
// kernel: tpu_custom_call.1
= control target key start
LH: loop header
LB: loop body
LE: loop exit
PB: predicated region body
PF: predicated region fallthrough
CT: control target
= control target key end

     0   :  { %s6499_s0 = inlined_call_operand.vmem [shape: f32[2,8,32], index: 0, kind: input, shape index: {}]   ;;  %s6500_s1 = inlined_call_operand.vmem [shape: f32[2,8,32], index: 1, kind: input, shape index: {}]   ;;  %s6501_s2 = inlined_call_operand.vmem [shape: bf16[2,4,32,24], index: 2, kind: input, shape index: {}]   ;;  %s6502_s3 = inlined_call_operand.vmem [shape: f32[2,4,1,24], index: 3, kind: input, shape index: {}]   ;;  %s6503_s4 = inlined_call_operand.vmem [shape: bf16[2,4,8,32], index: 4, kind: input, shape index: {}]   ;;  %s6504_s5 = inlined_call_operand.vmem [shape: bf16[2,32,64], index: 5, kind: input, shape index: {}]   ;;  %s6505_s6 = inlined_call_operand.vmem [shape: f32[2,1,64], index: 6, kind: input, shape index: {}]   ;;  %s6506_s7 = inlined_call_operand.vmem [shape: bf16[2,64,32], index: 7, kind: input, shape index: {}]   ;;  %s6507_s8 = inlined_call_operand.vmem [shape: f32[2,6,32], index: 8, kind: input, shape index: {}]   ;;  %s6508_s9 = inlined_call_operand.vmem [shape: bf16[2,4,32,24], index: 9, kind: input, shape index: {}]   ;;  %s6509_s10 = inlined_call_operand.vmem [shape: f32[2,4,1,24], index: 10, kind: input, shape index: {}]   ;;  %s6510_s11 = inlined_call_operand.vmem [shape: bf16[2,4,32,8], index: 11, kind: input, shape index: {}]   ;;  %s6511_s12 = inlined_call_operand.vmem [shape: f32[2,4,1,8], index: 12, kind: input, shape index: {}]   ;;  %s6512_s13 = inlined_call_operand.vmem [shape: bf16[2,4,32,16], index: 13, kind: input, shape index: {}]   ;;  %s6513_s14 = inlined_call_operand.vmem [shape: f32[2,4,1,16], index: 14, kind: input, shape index: {}]   ;;  %s6514_s15 = inlined_call_operand.vmem [shape: bf16[2,2,4,8,32], index: 15, kind: input, shape index: {}]   ;;  %s6515_s16 = inlined_call_operand.vmem [shape: bf16[2,32,64], index: 16, kind: input, shape index: {}]   ;;  %s6516_s17 = inlined_call_operand.vmem [shape: f32[2,1,64], index: 17, kind: input, shape index: {}]   ;;  %s6517_s18 = inlined_call_operand.vmem [shape: bf16[2,64,32], index: 18, kind: input, shape index: {}]   ;;  %s6518_s19 = inlined_call_operand.vmem [shape: f32[2,9,32], index: 19, kind: input, shape index: {}]   ;;  %s6519_s20 = inlined_call_operand.hbm [shape: f32[2,8,32], index: 20, kind: output, shape index: {}]  }
   0x1   :  { %6537 = sst [smem:[#allocation12_spill]] %s6499_s0 }
   0x2   :  { %6538 = sst [smem:[#allocation13_spill]] %s6500_s1 }
   0x3   :  { %6539 = sst [smem:[#allocation14_spill]] %s6501_s2 }
   0x4   :  { %6540 = sst [smem:[#allocation15_spill]] %s6502_s3 }
   0x5   :  { %6541 = sst [smem:[#allocation16_spill]] %s6503_s4 }
   0x6   :  { %6542 = sst [smem:[#allocation17_spill]] %s6504_s5 }
   0x7   :  { %6543 = sst [smem:[#allocation18_spill]] %s6505_s6 }
   0x8   :  { %6544 = sst [smem:[#allocation19_spill]] %s6506_s7 }
   0x9   :  { %6545 = sst [smem:[#allocation20_spill]] %s6507_s8 }
   0xa   :  { %6546 = sst [smem:[#allocation21_spill]] %s6519_s20 }
   0xb   :  { %25 = vsyncpa [#allocation3], 0 }
   0xc   :  { %27 = vsyncpa [#allocation3 + $0x1], 0  ;;  %s5461_s1 = smov 0   ;;  %s5463_s22 = smov 0  }
   0xd   :  { %s5465_s23 = smov 0   ;;  %s5467_s24 = smov 0  }
   0xe LB: > { %6547 = sst [smem:[#allocation5_spill]] %s5339_s1  ;;  %s5482_s2 = sadd.s32 4294967295, %s5351_s24   ;;  %s5351_s24 = sphi %s5467_s24, %s6576_s24   ;;  %s5347_s23 = sphi %s5465_s23, %s6578_s23   ;;  %s5343_s22 = sphi %s5463_s22, %s6580_s22   ;;  %s5339_s1 = sphi %s5461_s1, %s6579_s1  }
   0xf   : > { %6548 = sst [smem:[#allocation6_spill]] %s5347_s23  ;;  %s4403_s25 = sadd.s32 4294967294, %s5351_s24  }
  0x10   : > { %6549 = sst [smem:[#allocation7_spill]] %s5351_s24  ;;  %s5486_s3 = sadd.s32 1, %s5351_s24  }
  0x11   : > { %6550 = sst [smem:[#allocation8_spill]] %s5486_s3  ;;  %s470_s26 = sadd.s32 1, %s5347_s23 }
  0x12   : > { %s467_s27 = ssub.s32 %s5351_s24, %s5486_s3  ;;  %p480_p0 = scmp.ne.s32.totalorder %s5347_s23, %s5343_s22 }
  0x13   : > { %p468_p1 = scmp.eq.s32.totalorder %s467_s27, 0  ;;  %p481_p2 = scmp.eq.s32.totalorder %s5482_s2, 1 }
  0x14   : > { %p486_p3 = scmp.ne.s32.totalorder %s5343_s22, %s5339_s1  ;;  %p487_p4 = scmp.eq.s32.totalorder %s4403_s25, 1 }
  0x15   : > { %s5497_s28 = scalar_select %p468_p1, %s5347_s23, %s470_s26  }
  0x16   : > { %p5499_p5 = por %p481_p2, %p480_p0  ;;  %p5503_p6 = por %p487_p4, %p486_p3 }
  0x17   : > { %6551 = sst [smem:[#allocation9_spill]] %s5497_s28  ;;  %p4406_p7 = scmp.ge.s32.totalorder %s5351_s24, 1 }
  0x18   : > { %s6552_s4 = scalar_select %p5499_p5, 1, 0 }
  0x19   : > { %s6554_s29 = scalar_select %p5503_p6, 1, 0 }
  0x1a   : > { %6553 = sst [smem:[#allocation10_spill]] %s6552_s4  ;;  %p573_p8 = scmp.lt.s32.totalorder %s5351_s24, 3 }
  0x1b   : > { %6555 = sst [smem:[#allocation11_spill]] %s6554_s29 }
  0x1c   : > { %p574_p9 = pnand %p4406_p7, %p573_p8 }
  0x1d   : > { %s6556_s21 = sld [smem:[#allocation14_spill]] (!%p574_p9)  ;;  %p634_p10 = scmp.lt.s32.totalorder (!%p574_p9), %s5482_s2, 1 }
  0x1e   : > { %577 = sbr.rel (%p574_p9) target bundleno = 8835 (0x2283), region = 100  ;;  %s6557_s24 = sld [smem:[#allocation12_spill]] (!%p574_p9) }
  0x1f   : > { %s6558_s25 = sld [smem:[#allocation15_spill]] (!%p574_p9)  ;;  %s6534_s30 = smov (!%p574_p9), 120  }
  0x20   : > { %s6532_s1 = smov (!%p574_p9), 112   ;;  %s6559_s28 = sld [smem:[#allocation16_spill]] (!%p574_p9) }
  0x21   : > { %s6560_s8 = sld [smem:[#allocation20_spill]] (!%p574_p9)  ;;  %s6564_s3 = smov (!%p574_p9), 120  }
  0x22   : > { %s6561_s5 = sld [smem:[#allocation17_spill]] (!%p574_p9)  ;;  %s6565_s27 = smov (!%p574_p9), 112  }
  0x23   : > { %v5004_v0 = vld [vmem:[%s6556_s21 + $0x8] sm:$0xff]  ;;  %v5010_v2 = vld [vmem:[%s6556_s21 + $0x38] sm:$0xff]  ;;  %v5003_v3 = vld [vmem:[%s6556_s21] sm:$0xff]  ;;  %s5526_s0 = scalar_select %p634_p10, %s5482_s2, 1  ;;  %vm695_vm0 = vcmask 261120   ;;  %vm800_vm1 = vcmask 64512  }
  0x24   : > { %v5008_v1 = vld [vmem:[%s6556_s21 + $0x28] sm:$0xff]  ;;  %705 = vmatpush.bf16.msra.mxu0 %v5004_v0  ;;  %v5007_v4 = vld [vmem:[%s6556_s21 + $0x20] sm:$0xff]  ;;  %v5006_v5 = vld [vmem:[%s6556_s21 + $0x18] sm:$0xff]  ;;  %780 = vmatpush.bf16.msra.mxu3 %v5010_v2  ;;  %vm945_vm2 = vcmask 1043456   ;;  %s6562_s7 = sld [smem:[#allocation19_spill]]  ;;  %vm1215_vm7 = vcmask 523264  }
  0x25   : > { %755 = vmatpush.bf16.msra.mxu2 %v5008_v1  ;;  %v5009_v6 = vld [vmem:[%s6556_s21 + $0x30] sm:$0xff]  ;;  %s6531_s23 = sshll.u32 %s5526_s0, 3  ;;  %730 = vmatpush.bf16.msra.mxu1 %v5006_v5  ;;  %v5133_v10 = vld [vmem:[%s6558_s25] ss:$0 sm:$0xff]  ;;  %v5136_v11 = vld [vmem:[%s6558_s25 + $0x1] ss:$0 sm:$0xff] }
  0x26   : > { %v5005_v7 = vld [vmem:[%s6556_s21 + $0x10] sm:$0xff]  ;;  %s637_s4 = scalar_lea.vmem %s6557_s24, %s6531_s23  ;;  %v5134_v16 = vld [vmem:[%s6558_s25 + $0x2] ss:$0 sm:$0xff]  ;;  %v5135_v18 = vld [vmem:[%s6558_s25 + $0x3] ss:$0 sm:$0xff]  ;;  %s6563_s6 = sld [smem:[#allocation18_spill]] }
  0x27   : > { %v5543_v8 = vld [vmem:[%s637_s4] sm:$0xff] }
  0x28   : > { %706 = vmatpush.bf16.msra.mxu0 %v5003_v3  ;;  %781 = vmatpush.bf16.msra.mxu3 %v5009_v6  ;;  %v650_v9 = vpack.c.bf16 %v5543_v8, %v5543_v8 }
  0x29   : > { %756 = vmatpush.bf16.msra.mxu2 %v5007_v4  ;;  %731 = vmatpush.bf16.msra.mxu1 %v5005_v7 }
  0x2b   : > { %4418 = vmatmul.msk.bf16.vlgmr.msra.gmra.mxu0 %vm695_vm0, %v650_v9  ;;  %4445 = vmatmul.msk.bf16.vlgmr.msra.gmra.mxu3 %vm695_vm0, %v650_v9 }
  0x2c   : > { %4436 = vmatmul.msk.bf16.vlgmr.msra.gmra.mxu2 %vm695_vm0, %v650_v9  ;;  %4427 = vmatmul.msk.bf16.vlgmr.msra.gmra.mxu1 %vm695_vm0, %v650_v9 }
  0xa8   : > { %v708_v12 = vpop.f32.mrf.mxu0 }
  0xa9   : > { %v709_v13 = vadd.f32 %v5133_v10, %v708_v12  ;;  %v733_v14 = vpop.f32.mrf.mxu1 }
  0xaa   : > { %v734_v17 = vadd.f32 %v5136_v11, %v733_v14 }
  0xab   : > { %v791_v15 = vpack.c.bf16 %v709_v13, %v709_v13 }
  0xac   : > { %v792_v19 = vpack.c.bf16 %v734_v17, %v734_v17 }
  0xad   : > { %v796_v20 = vunpack.c.l.b16 %v791_v15 }
  0xae   : > { %v783_v23 = vpop.f32.mrf.mxu3  ;;  %v821_v28 = vunpack.c.l.b16 %v792_v19 }
  0xaf   : > { %v758_v21 = vpop.f32.mrf.mxu2  ;;  %v5563_v24 = vpack.c.b16 %v796_v20, %v796_v20  ;;  %v784_v25 = vadd.f32 %v5135_v18, %v783_v23 }
  0xb0   : > { %v759_v22 = vadd.f32 %v5134_v16, %v758_v21  ;;  %v710_v26 = vpop.f32.mrf.mxu0  ;;  %v822_v32 = vpack.c.b16 %v821_v28, %v821_v28 }
  0xb1   : > { %798 = vrot.lane.b32.xlu1 %v5563_v24, %s6534_s30  ;;  %v735_v29 = vpop.f32.mrf.mxu1  ;;  %v794_v30 = vpack.c.bf16 %v784_v25, %v784_v25 }
  0xb2   : > { %v793_v27 = vpack.c.bf16 %v759_v22, %v759_v22 }
  0xb3   : > { %v869_v35 = vunpack.c.l.b16 %v794_v30 }
  0xb4   : > { %v845_v31 = vunpack.c.l.b16 %v793_v27 }
  0xb5   : > { %v870_v37 = vpack.c.b16 %v869_v35, %v869_v35 }
  0xb6   : > { %v846_v33 = vpack.c.b16 %v845_v31, %v845_v31  ;;  %v785_v36 = vpop.f32.mrf.mxu3 }
  0xb7   : > { %v760_v34 = vpop.f32.mrf.mxu2 }
  0xb8   : > { %847 = vrot.lane.b32.xlu0 %v846_v33, %s6534_s30 }
  0xb9   : > { %823 = vrot.lane.b32.xlu1 %v822_v32, %s6534_s30 }
  0xc0   : > { %871 = vrot.lane.b32.xlu0 %v870_v37, %s6534_s30  ;;  %s6567_s30 = sld [smem:[#allocation13_spill]] }
 0x123   : > { %v799_v38 = vpop.permute.xlu1 %798 }
 0x124   : > { %v805_v39 = vsel %vm800_vm1, %v799_v38, 0 }
 0x125   : > { %814 = vmatpush.bf16.xpose.msrb.mxu0 %v805_v39  ;;  %v788_v39 = vld [vmem:[%s6559_s28 + $0x4] sm:$0xf] }
 0x12a   : > { %v848_v40 = vpop.permute.xlu0 %847 }
 0x12b   : > { %v853_v41 = vsel %vm800_vm1, %v848_v40, 0  ;;  %v824_v42 = vpop.permute.xlu1 %823  ;;  %v1033_v40 = vsel %vm945_vm2, %v788_v39, 0 }
 0x12c   : > { %862 = vmatpush.bf16.xpose.msrb.mxu2 %v853_v41  ;;  %4446 = vmatmul.msk.bf16.vlgmr.msrb.gmra.mxu0 %vm800_vm1, %v791_v15  ;;  %v829_v43 = vsel %vm800_vm1, %v824_v42, 0  ;;  %v789_v41 = vld [vmem:[%s6559_s28 + $0x8] sm:$0xf] }
 0x12d   : > { %838 = vmatpush.bf16.xpose.msrb.mxu1 %v829_v43  ;;  %v1071_v42 = vsel %vm945_vm2, %v789_v41, 0  ;;  %v790_v43 = vld [vmem:[%s6559_s28 + $0xc] sm:$0xf] }
 0x132   : > { %v872_v44 = vpop.permute.xlu0 %871 }
 0x133   : > { %4448 = vmatmul.msk.bf16.vlgmr.msrb.gmra.mxu2 %vm800_vm1, %v793_v27  ;;  %v877_v45 = vsel %vm800_vm1, %v872_v44, 0  ;;  %v1091_v44 = vsel %vm945_vm2, %v790_v43, 0  ;;  %v5014_v43 = vld [vmem:[%s6562_s7 + $0x8] sm:$0xff] }
 0x134   : > { %886 = vmatpush.bf16.xpose.msrb.mxu3 %v877_v45  ;;  %4447 = vmatmul.msk.bf16.vlgmr.msrb.gmra.mxu1 %vm800_vm1, %v792_v19  ;;  %v787_v45 = vld [vmem:[%s6559_s28] sm:$0xf] }
 0x13b   : > { %4449 = vmatmul.msk.bf16.vlgmr.msrb.gmra.mxu3 %vm800_vm1, %v794_v30 }
 0x1a9   : > { %v816_v46 = vpop.f32.mrf.mxu0 }
 0x1aa   : > { %v892_v47 = vsel %vm800_vm1, %v816_v46, -inf }
 0x1ab   : > { %893 = vmax.xlane.f32.xlu0 %v892_v47 }
 0x1b1   : > { %v818_v48 = vpop.f32.mrf.mxu0  ;;  %v840_v49 = vpop.f32.mrf.mxu1 }
 0x1b2   : > { %v895_v50 = vsel %vm800_vm1, %v840_v49, -inf }
 0x1b3   : > { %896 = vmax.xlane.f32.xlu1 %v895_v50 }
 0x1b6   : > { %v864_v51 = vpop.f32.mrf.mxu2 }
 0x1b7   : > { %v898_v52 = vsel %vm800_vm1, %v864_v51, -inf }
 0x1b8   : > { %899 = vmax.xlane.f32.xlu2 %v898_v52 }
 0x1b9   : > { %v842_v53 = vpop.f32.mrf.mxu1 }
 0x1be   : > { %v866_v54 = vpop.f32.mrf.mxu2  ;;  %v888_v55 = vpop.f32.mrf.mxu3 }
 0x1bf   : > { %v901_v56 = vsel %vm800_vm1, %v888_v55, -inf }
 0x1c0   : > { %902 = vmax.xlane.f32.xlu2 %v901_v56 }
 0x1c6   : > { %v890_v57 = vpop.f32.mrf.mxu3 }
 0x1cc   : > { %1004 = vrot.lane.b32.xlu1 %v870_v37, %s6532_s1 }
 0x1d4   : > { %962 = vrot.lane.b32.xlu1 %v822_v32, %s6532_s1 }
 0x1d8   : > { %983 = vrot.lane.b32.xlu2 %v846_v33, %s6532_s1 }
 0x21e   : > { %v894_v1 = vpop.xlane.xlu0 %893 }
 0x21f   : > { %v904_v6 = vsub.f32 %v816_v46, %v894_v1  ;;  %v1052_v46 = vsel %vm945_vm2, %v787_v45, 0  ;;  %v5137_v45 = vld [vmem:[%s6563_s6] ss:$0 sm:$0xff] }
 0x221   : > { %v908_v10 = vmul.f32 1.442695, %v904_v6 }
 0x226   : > { %v897_v58 = vpop.xlane.xlu1 %896 }
 0x227   : > { %v905_v59 = vsub.f32 %v840_v49, %v897_v58 }
 0x229   : > { %v910_v60 = vmul.f32 1.442695, %v905_v59 }
 0x22b   : > { %v900_v61 = vpop.xlane.xlu2 %899  ;;  %5171 = vpow2.f32 %v910_v60 }
 0x22c   : > { %v906_v62 = vsub.f32 %v864_v51, %v900_v61 }
 0x22e   : > { %v912_v63 = vmul.f32 1.442695, %v906_v62 }
 0x230   : > { %5173 = vpow2.f32 %v912_v63  ;;  %v5622_v63 = vld [vmem:[%s6560_s8] sm:$0x3f] }
 0x231   : > { %v5172_v0 = vpop.eup %5171 }
 0x232   : > { %v919_v3 = vsel %vm800_vm1, %v5172_v0, 0.0 }
 0x233   : > { %v903_v2 = vpop.xlane.xlu2 %902  ;;  %920 = vadd.xlane.f32.xlu0 %v919_v3 }
 0x234   : > { %v907_v4 = vsub.f32 %v888_v55, %v903_v2  ;;  %v1107_v2 = vperm.slane %v5622_v63, 0 }
 0x236   : > { %v5174_v5 = vpop.eup %5173  ;;  %v914_v7 = vmul.f32 1.442695, %v907_v4 }
 0x237   : > { %v922_v9 = vsel %vm800_vm1, %v5174_v5, 0.0 }
 0x238   : > { %5175 = vpow2.f32 %v914_v7  ;;  %923 = vadd.xlane.f32.xlu2 %v922_v9 }
 0x239   : > { %5177 = vpow2.f32 %v908_v10 }
 0x23b   : > { %v984_v11 = vpop.permute.xlu2 %983 }
 0x23c   : > { %v989_v12 = vsel %vm945_vm2, %v984_v11, 0 }
 0x23d   : > { %998 = vmatpush.bf16.msra.mxu2 %v989_v12  ;;  %v5355_v12 = vmov 32.0  }
 0x23e   : > { %v5176_v13 = vpop.eup %5175  ;;  %v1005_v14 = vpop.permute.xlu1 %1004 }
 0x23f   : > { %v925_v15 = vsel %vm800_vm1, %v5176_v13, 0.0  ;;  %v1010_v16 = vsel %vm945_vm2, %v1005_v14, 0  ;;  %v5178_v17 = vpop.eup %5177 }
 0x240   : > { %926 = vadd.xlane.f32.xlu2 %v925_v15  ;;  %1019 = vmatpush.bf16.msra.mxu3 %v1010_v16  ;;  %v916_v19 = vsel %vm800_vm1, %v5178_v17, 0.0 }
 0x241   : > { %1080 = vmatpush.bf16.msrb.mxu2 %v1071_v42 }
 0x244   : > { %1100 = vmatpush.bf16.msrb.mxu3 %v1091_v44  ;;  %v5013_v44 = vld [vmem:[%s6562_s7] sm:$0xff] }
 0x246   : > { %v963_v18 = vpop.permute.xlu1 %962 }
 0x247   : > { %v968_v20 = vsel %vm945_vm2, %v963_v18, 0  ;;  %940 = vrot.lane.b32.xlu0 %v5563_v24, %s6532_s1  ;;  %s6566_s1 = sshll.u32 %s5526_s0, 3 }
 0x248   : > { %917 = vadd.xlane.f32.xlu2 %v916_v19  ;;  %977 = vmatpush.bf16.msra.mxu1 %v968_v20  ;;  %s641_s29 = scalar_lea.vmem %s6567_s30, %s6566_s1  ;;  %s6570_s1 = sld [smem:[#allocation21_spill]] }
 0x24c   : > { %1061 = vmatpush.bf16.msrb.mxu1 %v1052_v46 }
 0x24e   : > { %s6571_s20 = smov %s6570_s1 }
 0x2a6   : > { %v921_v21 = vpop.xlane.xlu0 %920 }
 0x2a7   : > { %5179 = vrcp.f32 %v921_v21 }
 0x2ab   : > { %v924_v22 = vpop.xlane.xlu2 %923 }
 0x2ac   : > { %5181 = vrcp.f32 %v924_v22 }
 0x2ad   : > { %v5180_v23 = vpop.eup %5179 }
 0x2ae   : > { %v933_v25 = vmul.f32 %v5180_v23, %v5172_v0  ;;  %v5012_v23 = vld [vmem:[%s6561_s5 + $0x8] sm:$0xff] }
 0x2b0   : > { %v937_v26 = vpack.c.bf16 %v933_v25, %v933_v25  ;;  %v5011_v25 = vld [vmem:[%s6561_s5] sm:$0xff] }
 0x2b2   : > { %v5182_v27 = vpop.eup %5181  ;;  %4451 = vmatmul.msk.bf16.vlgmr.msra.gmra.mxu1 %vm800_vm1, %v937_v26  ;;  %v5016_v26 = vld [vmem:[%s6562_s7 + $0x18] sm:$0xff] }
 0x2b3   : > { %v934_v28 = vmul.f32 %v5182_v27, %v5174_v5  ;;  %v927_v29 = vpop.xlane.xlu2 %926  ;;  %1223 = vmatpush.bf16.msra.mxu1 %v5016_v26 }
 0x2b4   : > { %5183 = vrcp.f32 %v927_v29  ;;  %v5015_v29 = vld [vmem:[%s6562_s7 + $0x10] sm:$0xff] }
 0x2b5   : > { %v938_v30 = vpack.c.bf16 %v934_v28, %v934_v28 }
 0x2b7   : > { %4452 = vmatmul.msk.bf16.vlgmr.msra.gmra.mxu2 %vm800_vm1, %v938_v30  ;;  %1224 = vmatpush.bf16.msra.mxu1 %v5015_v29  ;;  %v5141_v29 = vld [vmem:[%s6558_s25 + $0x5] ss:$0 sm:$0xff] }
 0x2b9   : > { %v941_v32 = vpop.permute.xlu0 %940 }
 0x2ba   : > { %v5184_v31 = vpop.eup %5183  ;;  %v947_v33 = vsel %vm945_vm2, %v941_v32, 0 }
 0x2bb   : > { %v935_v24 = vmul.f32 %v5184_v31, %v5176_v13  ;;  %v918_v34 = vpop.xlane.xlu2 %917  ;;  %956 = vmatpush.bf16.msra.mxu0 %v947_v33  ;;  %1225 = vmatpush.bf16.msra.mxu1 %v5014_v43 }
 0x2bc   : > { %5185 = vrcp.f32 %v918_v34 }
 0x2bd   : > { %v939_v35 = vpack.c.bf16 %v935_v24, %v935_v24  ;;  %5187 = vrcp.f32 %v5355_v12 }
 0x2bf   : > { %4453 = vmatmul.msk.bf16.vlgmr.msra.gmra.mxu3 %vm800_vm1, %v939_v35  ;;  %1042 = vmatpush.bf16.msrb.mxu0 %v1033_v40 }
 0x2c0   : > { %1226 = vmatpush.bf16.msra.mxu1 %v5013_v44 }
 0x2c2   : > { %v5186_v36 = vpop.eup %5185 }
 0x2c3   : > { %v932_v37 = vmul.f32 %v5186_v36, %v5178_v17  ;;  %v5188_v13 = vpop.eup %5187  ;;  %v1139_v36 = vperm.slane %v5622_v63, 2 }
 0x2c4   : > { %v1114_v14 = vmul.f32 32.0, %v5188_v13  ;;  %vm1118_vm3 = vweird.f32 %v5188_v13 }
 0x2c5   : > { %v936_v38 = vpack.c.bf16 %v932_v37, %v932_v37 }
 0x2c6   : > { %v1115_v15 = vsub.f32 1.0, %v1114_v14 }
 0x2c7   : > { %4450 = vmatmul.msk.bf16.vlgmr.msra.gmra.mxu0 %vm800_vm1, %v936_v38  ;;  %v1141_v38 = vperm.slane %v5622_v63, 3 }
 0x2c8   : > { %v1116_v16 = vmul.f32 %v5188_v13, %v1115_v15  ;;  %1173 = vmatpush.bf16.msra.mxu0 %v5012_v23 }
 0x2ca   : > { %v1117_v17 = vadd.f32 %v5188_v13, %v1116_v16 }
 0x2cc   : > { %v5627_v18 = vsel %vm1118_vm3, %v5188_v13, %v1117_v17  ;;  %1174 = vmatpush.bf16.msra.mxu0 %v5011_v25  ;;  %v1255_v17 = vperm.slane %v5622_v63, 4  ;;  %v5138_v25 = vld [vmem:[%s6558_s25 + $0x6] ss:$0 sm:$0xff] }
 0x32f   : > { %v979_v47 = vpop.f32.mrf.mxu1 }
 0x330   : > { %v1026_v48 = vpack.c.bf16 %v979_v47, %v979_v47 }
 0x332   : > { %4454 = vmatmul.msk.bf16.vlgmr.msrb.gmra.mxu0 %vm800_vm1, %v1026_v48 }
 0x337   : > { %v981_v49 = vpop.f32.mrf.mxu1 }
 0x33a   : > { %v1000_v50 = vpop.f32.mrf.mxu2 }
 0x33b   : > { %v1027_v51 = vpack.c.bf16 %v1000_v50, %v1000_v50 }
 0x33d   : > { %4456 = vmatmul.msk.bf16.vlgmr.msrb.gmra.mxu2 %vm800_vm1, %v1027_v51  ;;  %v1190_v51 = vperm.slane %v5622_v63, 1 }
 0x342   : > { %v1002_v52 = vpop.f32.mrf.mxu2  ;;  %v1021_v53 = vpop.f32.mrf.mxu3 }
 0x343   : > { %v1028_v54 = vpack.c.bf16 %v1021_v53, %v1021_v53 }
 0x344   : > { %v958_v55 = vpop.f32.mrf.mxu0 }
 0x345   : > { %v1025_v56 = vpack.c.bf16 %v958_v55, %v958_v55  ;;  %4457 = vmatmul.msk.bf16.vlgmr.msrb.gmra.mxu3 %vm800_vm1, %v1028_v54 }
 0x347   : > { %4455 = vmatmul.msk.bf16.vlgmr.msrb.gmra.mxu1 %vm800_vm1, %v1025_v56 }
 0x34a   : > { %v1023_v57 = vpop.f32.mrf.mxu3 }
 0x34c   : > { %v960_v58 = vpop.f32.mrf.mxu0 }
 0x3af   : > { %v1044_v59 = vpop.f32.mrf.mxu0 }
 0x3b7   : > { %v1046_v60 = vpop.f32.mrf.mxu0 }
 0x3c0   : > { %v1082_v61 = vpop.f32.mrf.mxu2 }
 0x3c4   : > { %v1063_v62 = vpop.f32.mrf.mxu1 }
 0x3c5   : > { %v1064_v0 = vadd.f32 %v1063_v62, %v1044_v59  ;;  %v5018_v62 = vld [vmem:[%s6556_s21 + $0x48] sm:$0xff] }
 0x3c6   : > { %1317 = vmatpush.bf16.msra.mxu2 %v5018_v62 }
 0x3c7   : > { %v1086_v1 = vadd.f32 %v1082_v61, %v1064_v0  ;;  %v5020_v0 = vld [vmem:[%s6556_s21 + $0x58] sm:$0xff] }
 0x3c8   : > { %v1084_v3 = vpop.f32.mrf.mxu2  ;;  %v1102_v4 = vpop.f32.mrf.mxu3  ;;  %1342 = vmatpush.bf16.msra.mxu3 %v5020_v0 }
 0x3c9   : > { %v1106_v5 = vadd.f32 %v1102_v4, %v1086_v1  ;;  %v5022_v1 = vld [vmem:[%s6556_s21 + $0x68] sm:$0xff]  ;;  %v5017_v3 = vld [vmem:[%s6556_s21 + $0x40] sm:$0xff]  ;;  %v5019_v4 = vld [vmem:[%s6556_s21 + $0x50] sm:$0xff] }
 0x3ca   : > { %1367 = vmatpush.bf16.msrb.mxu0 %v5022_v1  ;;  %1318 = vmatpush.bf16.msra.mxu2 %v5017_v3 }
 0x3cb   : > { %v1108_v6 = vadd.f32 %v1107_v2, %v1106_v5  ;;  %v5024_v2 = vld [vmem:[%s6556_s21 + $0x78] sm:$0xff]  ;;  %v5021_v5 = vld [vmem:[%s6556_s21 + $0x60] sm:$0xff] }
 0x3cc   : > { %v1065_v7 = vpop.f32.mrf.mxu1  ;;  %1392 = vmatpush.bf16.msrb.mxu1 %v5024_v2  ;;  %1343 = vmatpush.bf16.msra.mxu3 %v5019_v4 }
 0x3cd   : > { %v1109_v9 = vadd.f32 %v1108_v6, %v5543_v8  ;;  %v5023_v6 = vld [vmem:[%s6556_s21 + $0x70] sm:$0xff] }
 0x3ce   : > { %1368 = vmatpush.bf16.msrb.mxu0 %v5021_v5 }
 0x3cf   : > { %v1110_v10 = vsel %vm695_vm0, %v1109_v9, 0.0 }
 0x3d0   : > { %v1104_v11 = vpop.f32.mrf.mxu3  ;;  %1111 = vadd.xlane.f32.xlu0 %v1110_v10  ;;  %1393 = vmatpush.bf16.msrb.mxu1 %v5023_v6 }
 0x443   : > { %v1112_v19 = vpop.xlane.xlu0 %1111 }
 0x444   : > { %v1120_v20 = vmul.f32 %v5627_v18, %v1112_v19 }
 0x446   : > { %v1121_v21 = vsub.f32 %v1109_v9, %v1120_v20  ;;  %v1257_v20 = vperm.slane %v5622_v63, 5 }
 0x448   : > { %v1122_v22 = vmul.f32 %v1121_v21, %v1121_v21 }
 0x44a   : > { %v1123_v8 = vsel %vm695_vm0, %v1122_v22, 0.0 }
 0x44b   : > { %1124 = vadd.xlane.f32.xlu1 %v1123_v8 }
 0x4be   : > { %v1125_v27 = vpop.xlane.xlu1 %1124 }
 0x4bf   : > { %v1126_v28 = vmul.f32 %v1125_v27, %v5627_v18 }
 0x4c1   : > { %v1127_v30 = vadd.f32 1e-05, %v1126_v28  ;;  %v5140_v28 = vld [vmem:[%s6558_s25 + $0x4] ss:$0 sm:$0xff] }
 0x4c3   : > { %5189 = vrsqrt.f32 %v1127_v30  ;;  %vm1134_vm5 = vweird.f32 %v1127_v30 }
 0x4c9   : > { %v5190_v31 = vpop.eup %5189 }
 0x4ca   : > { %v1129_v32 = vmul.f32 %v5190_v31, %v1127_v30  ;;  %vm1135_vm4 = vweird.f32 %v5190_v31 }
 0x4cb   : > { %vm1136_vm6 = vmor %vm1134_vm5, %vm1135_vm4 }
 0x4cc   : > { %v1130_v24 = vmul.f32 %v5190_v31, %v1129_v32 }
 0x4ce   : > { %v1131_v33 = vmul.f32 0.5, %v1130_v24 }
 0x4d0   : > { %v1132_v34 = vsub.f32 1.5, %v1131_v33 }
 0x4d2   : > { %v1133_v35 = vmul.f32 %v5190_v31, %v1132_v34 }
 0x4d4   : > { %v1137_v37 = vsel %vm1136_vm6, %v5190_v31, %v1133_v35  ;;  %v5139_v31 = vld [vmem:[%s6558_s25 + $0x7] ss:$0 sm:$0xff] }
 0x4d5   : > { %v1138_v39 = vmul.f32 %v1137_v37, %v1121_v21 }
 0x4d7   : > { %v1140_v40 = vmul.f32 %v1139_v36, %v1138_v39 }
 0x4d9   : > { %v1142_v41 = vadd.f32 %v1141_v38, %v1140_v40 }
 0x4db   : > { %v1143_v42 = vpack.c.bf16 %v1142_v41, %v1142_v41 }
 0x4dd   : > { %4466 = vmatmul.msk.bf16.vlgmr.msra.gmra.mxu0 %vm695_vm0, %v1143_v42 }
 0x55a   : > { %v1176_v46 = vpop.f32.mrf.mxu0 }
 0x55b   : > { %v1177_v47 = vadd.f32 %v5137_v45, %v1176_v46 }
 0x55d   : > { %v1180_v48 = vmax.f32 %v1177_v47, 0.0 }
 0x55f   : > { %v1181_v49 = vpack.c.bf16 %v1180_v48, %v1180_v48 }
 0x561   : > { %4483 = vmatmul.msk.bf16.vlgmr.msra.gmra.mxu1 %vm1215_vm7, %v1181_v49 }
 0x562   : > { %v1178_v50 = vpop.f32.mrf.mxu0 }
 0x5de   : > { %v1228_v52 = vpop.f32.mrf.mxu1 }
 0x5df   : > { %v1229_v53 = vadd.f32 %v1228_v52, %v1190_v51 }
 0x5e1   : > { %v1232_v54 = vadd.f32 %v1229_v53, %v1142_v41 }
 0x5e3   : > { %v1233_v55 = vsel %vm695_vm0, %v1232_v54, 0.0 }
 0x5e4   : > { %1234 = vadd.xlane.f32.xlu2 %v1233_v55 }
 0x5e6   : > { %v1230_v56 = vpop.f32.mrf.mxu1 }
 0x657   : > { %v1235_v57 = vpop.xlane.xlu2 %1234 }
 0x658   : > { %v1236_v58 = vmul.f32 %v1235_v57, %v5627_v18 }
 0x65a   : > { %v1237_v59 = vsub.f32 %v1232_v54, %v1236_v58 }
 0x65c   : > { %v1238_v60 = vmul.f32 %v1237_v59, %v1237_v59 }
 0x65e   : > { %v1239_v61 = vsel %vm695_vm0, %v1238_v60, 0.0 }
 0x65f   : > { %1240 = vadd.xlane.f32.xlu2 %v1239_v61 }
 0x6d2   : > { %v1241_v7 = vpop.xlane.xlu2 %1240 }
 0x6d3   : > { %v1242_v9 = vmul.f32 %v1241_v7, %v5627_v18 }
 0x6d5   : > { %v1243_v10 = vadd.f32 1e-05, %v1242_v9 }
 0x6d7   : > { %5191 = vrsqrt.f32 %v1243_v10  ;;  %vm1250_vm9 = vweird.f32 %v1243_v10 }
 0x6dd   : > { %v5192_v11 = vpop.eup %5191 }
 0x6de   : > { %v1245_v12 = vmul.f32 %v5192_v11, %v1243_v10  ;;  %vm1251_vm8 = vweird.f32 %v5192_v11 }
 0x6df   : > { %vm1252_vm10 = vmor %vm1250_vm9, %vm1251_vm8 }
 0x6e0   : > { %v1246_v13 = vmul.f32 %v5192_v11, %v1245_v12 }
 0x6e2   : > { %v1247_v14 = vmul.f32 0.5, %v1246_v13 }
 0x6e4   : > { %v1248_v15 = vsub.f32 1.5, %v1247_v14 }
 0x6e6   : > { %v1249_v16 = vmul.f32 %v5192_v11, %v1248_v15 }
 0x6e8   : > { %v1253_v19 = vsel %vm1252_vm10, %v5192_v11, %v1249_v16 }
 0x6e9   : > { %v1254_v21 = vmul.f32 %v1253_v19, %v1237_v59 }
 0x6eb   : > { %v1256_v22 = vmul.f32 %v1255_v17, %v1254_v21 }
 0x6ed   : > { %v5688_v8 = vadd.f32 %v1257_v20, %v1256_v22 }
 0x6ef   : > { %v1261_v23 = vpack.c.bf16 %v5688_v8, %v5688_v8 }
 0x6f1   : > { %4513 = vmatmul.msk.bf16.vlgmr.msra.gmra.mxu2 %vm695_vm0, %v1261_v23  ;;  %4522 = vmatmul.msk.bf16.vlgmr.msra.gmra.mxu3 %vm695_vm0, %v1261_v23 }
 0x6f2   : > { %4531 = vmatmul.msk.bf16.vlgmr.msrb.gmra.mxu0 %vm695_vm0, %v1261_v23  ;;  %4540 = vmatmul.msk.bf16.vlgmr.msrb.gmra.mxu1 %vm695_vm0, %v1261_v23 }
 0x76f   : > { %v1370_v63 = vpop.f32.mrf.mxu0  ;;  %v1395_v26 = vpop.f32.mrf.mxu1 }
 0x770   : > { %v1371_v27 = vadd.f32 %v5138_v25, %v1370_v63  ;;  %v1396_v37 = vadd.f32 %v5139_v31, %v1395_v26 }
 0x772   : > { %v1406_v30 = vpack.c.bf16 %v1371_v27, %v1371_v27  ;;  %v1407_v44 = vpack.c.bf16 %v1396_v37, %v1396_v37 }
 0x774   : > { %v1457_v32 = vunpack.c.l.b16 %v1406_v30  ;;  %v1320_v24 = vpop.f32.mrf.mxu2  ;;  %v1345_v33 = vpop.f32.mrf.mxu3  ;;  %v1481_v49 = vunpack.c.l.b16 %v1407_v44 }
 0x775   : > { %v1321_v34 = vadd.f32 %v5140_v28, %v1320_v24  ;;  %v1346_v35 = vadd.f32 %v5141_v29, %v1345_v33 }
 0x776   : > { %v5708_v36 = vpack.c.b16 %v1457_v32, %v1457_v32  ;;  %v5714_v50 = vpack.c.b16 %v1481_v49, %v1481_v49 }
 0x777   : > { %v1404_v38 = vpack.c.bf16 %v1321_v34, %v1321_v34  ;;  %v1405_v39 = vpack.c.bf16 %v1346_v35, %v1346_v35  ;;  %v1372_v40 = vpop.f32.mrf.mxu0  ;;  %v1397_v41 = vpop.f32.mrf.mxu1 }
 0x778   : > { %1459 = vrot.lane.b32.xlu1 %v5708_v36, %s6564_s3 }
 0x779   : > { %v1409_v42 = vunpack.c.l.b16 %v1404_v38  ;;  %v1433_v43 = vunpack.c.l.b16 %v1405_v39 }
 0x77b   : > { %v1410_v45 = vpack.c.b16 %v1409_v42, %v1409_v42  ;;  %v1434_v46 = vpack.c.b16 %v1433_v43, %v1433_v43 }
 0x77c   : > { %v1322_v47 = vpop.f32.mrf.mxu2  ;;  %v1347_v48 = vpop.f32.mrf.mxu3 }
 0x77d   : > { %1435 = vrot.lane.b32.xlu0 %v1434_v46, %s6564_s3  ;;  %1411 = vrot.lane.b32.xlu2 %v1410_v45, %s6564_s3 }
 0x785   : > { %1483 = vrot.lane.b32.xlu2 %v5714_v50, %s6564_s3 }
 0x7d7   : > { %v1412_v51 = vpop.permute.xlu2 %1411 }
 0x7d8   : > { %v1417_v52 = vsel %vm800_vm1, %v1412_v51, 0 }
 0x7d9   : > { %1426 = vmatpush.bf16.xpose.msrb.mxu2 %v1417_v52 }
 0x7df   : > { %v1484_v53 = vpop.permute.xlu2 %1483 }
 0x7e0   : > { %v1489_v54 = vsel %vm800_vm1, %v1484_v53, 0  ;;  %4545 = vmatmul.msk.bf16.vlgmr.msrb.gmra.mxu2 %vm800_vm1, %v1404_v38  ;;  %v4541_v53 = vld [vmem:[%s6559_s28 + $0x10] sm:$0xf] }
 0x7e1   : > { %1498 = vmatpush.bf16.xpose.msra.mxu1 %v1489_v54  ;;  %v1663_v54 = vsel %vm945_vm2, %v4541_v53, 0  ;;  %v5809_v53 = vld [vmem:[%s641_s29] sm:$0xff] }
 0x7e8   : > { %4548 = vmatmul.msk.bf16.vlgmr.msra.gmra.mxu1 %vm800_vm1, %v1407_v44 }
 0x7ea   : > { %v1460_v55 = vpop.permute.xlu1 %1459 }
 0x7eb   : > { %v1465_v56 = vsel %vm800_vm1, %v1460_v55, 0  ;;  %v4543_v55 = vld [vmem:[%s6559_s28 + $0x18] sm:$0xf] }
 0x7ec   : > { %1474 = vmatpush.bf16.xpose.msra.mxu0 %v1465_v56  ;;  %v1682_v56 = vsel %vm945_vm2, %v4543_v55, 0  ;;  %v5028_v55 = vld [vmem:[%s6562_s7 + $0x28] sm:$0xff] }
 0x7ef   : > { %v1436_v57 = vpop.permute.xlu0 %1435 }
 0x7f0   : > { %v1441_v58 = vsel %vm800_vm1, %v1436_v57, 0  ;;  %v4544_v57 = vld [vmem:[%s6559_s28 + $0x1c] sm:$0xf] }
 0x7f1   : > { %1450 = vmatpush.bf16.xpose.msrb.mxu3 %v1441_v58  ;;  %v1702_v58 = vsel %vm945_vm2, %v4544_v57, 0  ;;  %v5038_v57 = vld [vmem:[%s6508_s9 + $0x38] sm:$0xff] }
 0x7f3   : > { %4547 = vmatmul.msk.bf16.vlgmr.msra.gmra.mxu0 %vm800_vm1, %v1406_v30 }
 0x7f8   : > { %4546 = vmatmul.msk.bf16.vlgmr.msrb.gmra.mxu3 %vm800_vm1, %v1405_v39 }
 0x863   : > { %v1428_v59 = vpop.f32.mrf.mxu2 }
 0x864   : > { %v1504_v60 = vsel %vm800_vm1, %v1428_v59, -inf }
 0x865   : > { %1505 = vmax.xlane.f32.xlu2 %v1504_v60  ;;  %v1500_v61 = vpop.f32.mrf.mxu1 }
 0x866   : > { %v1513_v0 = vsel %vm800_vm1, %v1500_v61, -inf }
 0x86b   : > { %v1430_v62 = vpop.f32.mrf.mxu2 }
 0x86d   : > { %1514 = vmax.xlane.f32.xlu2 %v1513_v0  ;;  %v1502_v1 = vpop.f32.mrf.mxu1 }
 0x870   : > { %v1476_v2 = vpop.f32.mrf.mxu0 }
 0x871   : > { %v1510_v3 = vsel %vm800_vm1, %v1476_v2, -inf }
 0x872   : > { %1511 = vmax.xlane.f32.xlu1 %v1510_v3 }
 0x878   : > { %v1478_v4 = vpop.f32.mrf.mxu0 }
 0x87b   : > { %v1452_v5 = vpop.f32.mrf.mxu3 }
 0x87c   : > { %v1507_v6 = vsel %vm800_vm1, %v1452_v5, -inf }
 0x87d   : > { %1508 = vmax.xlane.f32.xlu0 %v1507_v6 }
 0x883   : > { %v1454_v7 = vpop.f32.mrf.mxu3 }
 0x88b   : > { %1573 = vrot.lane.b32.xlu1 %v1434_v46, %s6565_s27 }
 0x891   : > { %1552 = vrot.lane.b32.xlu0 %v1410_v45, %s6565_s27 }
 0x8d8   : > { %v1506_v9 = vpop.xlane.xlu2 %1505 }
 0x8d9   : > { %v1516_v10 = vsub.f32 %v1428_v59, %v1506_v9  ;;  %v4542_v59 = vld [vmem:[%s6559_s28 + $0x14] sm:$0xf] }
 0x8da   : > { %v1644_v60 = vsel %vm945_vm2, %v4542_v59, 0  ;;  %v5032_v59 = vld [vmem:[%s6508_s9 + $0x8] sm:$0xff] }
 0x8db   : > { %v1520_v11 = vmul.f32 1.442695, %v1516_v10 }
 0x8dd   : > { %5193 = vpow2.f32 %v1520_v11 }
 0x8e0   : > { %v1515_v14 = vpop.xlane.xlu2 %1514 }
 0x8e1   : > { %v1519_v17 = vsub.f32 %v1500_v61, %v1515_v14 }
 0x8e3   : > { %v5194_v12 = vpop.eup %5193  ;;  %v1526_v20 = vmul.f32 1.442695, %v1519_v17 }
 0x8e4   : > { %v1528_v13 = vsel %vm800_vm1, %v5194_v12, 0.0 }
 0x8e5   : > { %v1512_v15 = vpop.xlane.xlu1 %1511  ;;  %1529 = vadd.xlane.f32.xlu0 %v1528_v13 }
 0x8e6   : > { %v1518_v16 = vsub.f32 %v1476_v2, %v1512_v15 }
 0x8e8   : > { %v1524_v19 = vmul.f32 1.442695, %v1518_v16 }
 0x8ea   : > { %5195 = vpow2.f32 %v1524_v19  ;;  %v5771_v19 = vld [vmem:[%s6560_s8 + $0x8] sm:$0x3f] }
 0x8eb   : > { %5197 = vpow2.f32 %v1526_v20 }
 0x8f0   : > { %v5196_v21 = vpop.eup %5195  ;;  %v1509_v22 = vpop.xlane.xlu0 %1508 }
 0x8f1   : > { %v1517_v23 = vsub.f32 %v1452_v5, %v1509_v22  ;;  %v1534_v25 = vsel %vm800_vm1, %v5196_v21, 0.0  ;;  %v5198_v26 = vpop.eup %5197  ;;  %v1718_v22 = vperm.slane %v5771_v19, 0 }
 0x8f2   : > { %1535 = vadd.xlane.f32.xlu2 %v1534_v25  ;;  %v1537_v27 = vsel %vm800_vm1, %v5198_v26, 0.0 }
 0x8f3   : > { %v1522_v63 = vmul.f32 1.442695, %v1517_v23 }
 0x8f5   : > { %5199 = vpow2.f32 %v1522_v63 }
 0x8f9   : > { %1594 = vrot.lane.b32.xlu0 %v5708_v36, %s6565_s27 }
 0x8fa   : > { %1538 = vadd.xlane.f32.xlu2 %v1537_v27 }
 0x8fb   : > { %v5200_v29 = vpop.eup %5199 }
 0x8fc   : > { %v1531_v31 = vsel %vm800_vm1, %v5200_v29, 0.0 }
 0x8fd   : > { %v1574_v28 = vpop.permute.xlu1 %1573 }
 0x8fe   : > { %v1579_v30 = vsel %vm945_vm2, %v1574_v28, 0 }
 0x8ff   : > { %1588 = vmatpush.bf16.msra.mxu3 %v1579_v30 }
 0x902   : > { %1532 = vadd.xlane.f32.xlu2 %v1531_v31 }
 0x903   : > { %v1553_v32 = vpop.permute.xlu0 %1552  ;;  %1672 = vmatpush.bf16.msrb.mxu3 %v1663_v54  ;;  %v1869_v54 = vpack.c.bf16 %v5809_v53, %v5809_v53 }
 0x904   : > { %v1558_v24 = vsel %vm945_vm2, %v1553_v32, 0 }
 0x905   : > { %1567 = vmatpush.bf16.msra.mxu2 %v1558_v24  ;;  %v5026_v24 = vld [vmem:[%s6561_s5 + $0x18] sm:$0xff] }
 0x909   : > { %1653 = vmatpush.bf16.msrb.mxu2 %v1644_v60  ;;  %v5031_v60 = vld [vmem:[%s6508_s9] sm:$0xff] }
 0x91a   : > { %1615 = vrot.lane.b32.xlu2 %v5714_v50, %s6565_s27 }
 0x958   : > { %v1530_v33 = vpop.xlane.xlu0 %1529 }
 0x959   : > { %5201 = vrcp.f32 %v1530_v33  ;;  %v5036_v33 = vld [vmem:[%s6508_s9 + $0x28] sm:$0xff] }
 0x95f   : > { %v5202_v34 = vpop.eup %5201 }
 0x960   : > { %v1544_v35 = vmul.f32 %v5202_v34, %v5194_v12 }
 0x962   : > { %v1548_v36 = vpack.c.bf16 %v1544_v35, %v1544_v35 }
 0x964   : > { %4549 = vmatmul.msk.bf16.vlgmr.msra.gmra.mxu2 %vm800_vm1, %v1548_v36  ;;  %v5035_v36 = vld [vmem:[%s6508_s9 + $0x20] sm:$0xff] }
 0x965   : > { %v1536_v37 = vpop.xlane.xlu2 %1535  ;;  %1779 = vmatpush.bf16.msra.mxu2 %v5026_v24 }
 0x966   : > { %5203 = vrcp.f32 %v1536_v37 }
 0x96b   : > { %v1595_v38 = vpop.permute.xlu0 %1594 }
 0x96c   : > { %v5204_v39 = vpop.eup %5203  ;;  %v1600_v40 = vsel %vm945_vm2, %v1595_v38, 0 }
 0x96d   : > { %v1546_v41 = vmul.f32 %v5204_v39, %v5196_v21  ;;  %v1539_v42 = vpop.xlane.xlu2 %1538  ;;  %1609 = vmatpush.bf16.msrb.mxu0 %v1600_v40 }
 0x96e   : > { %5205 = vrcp.f32 %v1539_v42 }
 0x96f   : > { %v1550_v43 = vpack.c.bf16 %v1546_v41, %v1546_v41  ;;  %v5030_v41 = vld [vmem:[%s6562_s7 + $0x38] sm:$0xff] }
 0x971   : > { %4551 = vmatmul.msk.bf16.vlgmr.msrb.gmra.mxu0 %vm800_vm1, %v1550_v43  ;;  %v5029_v43 = vld [vmem:[%s6562_s7 + $0x30] sm:$0xff] }
 0x972   : > { %1691 = vmatpush.bf16.msra.mxu0 %v1682_v56  ;;  %v5027_v56 = vld [vmem:[%s6562_s7 + $0x20] sm:$0xff] }
 0x974   : > { %v5206_v45 = vpop.eup %5205 }
 0x975   : > { %v1533_v44 = vpop.xlane.xlu2 %1532  ;;  %v1547_v47 = vmul.f32 %v5206_v45, %v5198_v26 }
 0x976   : > { %5207 = vrcp.f32 %v1533_v44  ;;  %1923 = vmatpush.bf16.msrb.mxu0 %v5032_v59 }
 0x977   : > { %v1551_v52 = vpack.c.bf16 %v1547_v47, %v1547_v47 }
 0x97a   : > { %1924 = vmatpush.bf16.msrb.mxu0 %v5031_v60 }
 0x97c   : > { %v5208_v46 = vpop.eup %5207 }
 0x97d   : > { %v1545_v48 = vmul.f32 %v5208_v46, %v5200_v29  ;;  %v1616_v49 = vpop.permute.xlu2 %1615  ;;  %v1743_v46 = vperm.slane %v5771_v19, 2 }
 0x97e   : > { %v1621_v50 = vsel %vm945_vm2, %v1616_v49, 0 }
 0x97f   : > { %v1549_v51 = vpack.c.bf16 %v1545_v48, %v1545_v48  ;;  %1630 = vmatpush.bf16.msrb.mxu1 %v1621_v50  ;;  %v1745_v48 = vperm.slane %v5771_v19, 3 }
 0x981   : > { %4550 = vmatmul.msk.bf16.vlgmr.msra.gmra.mxu3 %vm800_vm1, %v1549_v51 }
 0x982   : > { %4552 = vmatmul.msk.bf16.vlgmr.msrb.gmra.mxu1 %vm800_vm1, %v1551_v52  ;;  %1829 = vmatpush.bf16.msra.mxu3 %v5030_v41 }
 0x983   : > { %1711 = vmatpush.bf16.msra.mxu1 %v1702_v58  ;;  %v5037_v58 = vld [vmem:[%s6508_s9 + $0x30] sm:$0xff] }
 0x986   : > { %1830 = vmatpush.bf16.msra.mxu3 %v5029_v43 }
 0x98a   : > { %1831 = vmatpush.bf16.msra.mxu3 %v5028_v55 }
 0x98e   : > { %1832 = vmatpush.bf16.msra.mxu3 %v5027_v56 }
 0x9e7   : > { %v1569_v61 = vpop.f32.mrf.mxu2 }
 0x9e8   : > { %v1636_v62 = vpack.c.bf16 %v1569_v61, %v1569_v61  ;;  %v5034_v61 = vld [vmem:[%s6508_s9 + $0x18] sm:$0xff] }
 0x9e9   : > { %1948 = vmatpush.bf16.msrb.mxu1 %v5034_v61 }
 0x9ea   : > { %4554 = vmatmul.msk.bf16.vlgmr.msrb.gmra.mxu3 %vm800_vm1, %v1636_v62  ;;  %v5033_v62 = vld [vmem:[%s6508_s9 + $0x10] sm:$0xff] }
 0x9eb   : > { %1998 = vmatpush.bf16.msrb.mxu3 %v5038_v57 }
 0x9ed   : > { %1949 = vmatpush.bf16.msrb.mxu1 %v5033_v62 }
 0x9ee   : > { %v1611_v0 = vpop.f32.mrf.mxu0 }
 0x9ef   : > { %v1638_v1 = vpack.c.bf16 %v1611_v0, %v1611_v0  ;;  %v1571_v2 = vpop.f32.mrf.mxu2  ;;  %1999 = vmatpush.bf16.msrb.mxu3 %v5037_v58  ;;  %v5142_v0 = vld [vmem:[%s6563_s6 + $0x1] ss:$0 sm:$0xff] }
 0x9f1   : > { %4555 = vmatmul.msk.bf16.vlgmr.msra.gmra.mxu0 %vm800_vm1, %v1638_v1 }
 0x9f6   : > { %v1613_v3 = vpop.f32.mrf.mxu0 }
 0x9ff   : > { %v1632_v4 = vpop.f32.mrf.mxu1 }
 0xa00   : > { %v1639_v5 = vpack.c.bf16 %v1632_v4, %v1632_v4 }
 0xa01   : > { %4604 = vmatmul.msk.bf16.vlgmr.msrb.gmra.mxu0 %vm695_vm0, %v1869_v54 }
 0xa02   : > { %4556 = vmatmul.msk.bf16.vlgmr.msra.gmra.mxu1 %vm800_vm1, %v1639_v5 }
 0xa04   : > { %v1590_v6 = vpop.f32.mrf.mxu3 }
 0xa05   : > { %v1637_v7 = vpack.c.bf16 %v1590_v6, %v1590_v6  ;;  %v5143_v6 = vld [vmem:[%s6509_s10 + $0x2] ss:$0 sm:$0xff] }
 0xa07   : > { %v1634_v9 = vpop.f32.mrf.mxu1  ;;  %4553 = vmatmul.msk.bf16.vlgmr.msrb.gmra.mxu2 %vm800_vm1, %v1637_v7 }
 0xa0c   : > { %v1592_v10 = vpop.f32.mrf.mxu3 }
 0xa12   : > { %4613 = vmatmul.msk.bf16.vlgmr.msrb.gmra.mxu1 %vm695_vm0, %v1869_v54 }
 0xa6d   : > { %v1674_v11 = vpop.f32.mrf.mxu3 }
 0xa6e   : > { %v1693_v12 = vpop.f32.mrf.mxu0 }
 0xa75   : > { %v1676_v13 = vpop.f32.mrf.mxu3 }
 0xa76   : > { %v1695_v14 = vpop.f32.mrf.mxu0 }
 0xa7f   : > { %v1713_v15 = vpop.f32.mrf.mxu1 }
 0xa87   : > { %v1715_v16 = vpop.f32.mrf.mxu1 }
 0xa88   : > { %v1926_v16 = vpop.f32.mrf.mxu0 }
 0xa8a   : > { %v1655_v17 = vpop.f32.mrf.mxu2 }
 0xa8b   : > { %v1675_v20 = vadd.f32 %v1674_v11, %v1655_v17 }
 0xa8d   : > { %v1697_v21 = vadd.f32 %v1693_v12, %v1675_v20 }
 0xa8f   : > { %v1717_v23 = vadd.f32 %v1713_v15, %v1697_v21  ;;  %v1951_v17 = vpop.f32.mrf.mxu1 }
 0xa90   : > { %v1928_v20 = vpop.f32.mrf.mxu0 }
 0xa91   : > { %v1719_v25 = vadd.f32 %v1718_v22, %v1717_v23 }
 0xa92   : > { %v1657_v63 = vpop.f32.mrf.mxu2 }
 0xa93   : > { %v1720_v26 = vadd.f32 %v1719_v25, %v5688_v8  ;;  %v5025_v8 = vld [vmem:[%s6561_s5 + $0x10] sm:$0xff]  ;;  %v5144_v25 = vld [vmem:[%s6509_s10] ss:$0 sm:$0xff]  ;;  %v5145_v63 = vld [vmem:[%s6509_s10 + $0x3] ss:$0 sm:$0xff]  ;;  %s631_s5 = sand.u32 1, %s5343_s22  }
 0xa94   : > { %1780 = vmatpush.bf16.msra.mxu2 %v5025_v8  ;;  %s4407_s4 = sshll.u32 %s631_s5, 3 }
 0xa95   : > { %v1721_v27 = vsel %vm695_vm0, %v1720_v26, 0.0 }
 0xa96   : > { %1722 = vadd.xlane.f32.xlu1 %v1721_v27  ;;  %v1927_v27 = vadd.f32 %v5144_v25, %v1926_v16 }
 0xa97   : > { %v1953_v21 = vpop.f32.mrf.mxu1 }
 0xa98   : > { %1973 = vmatpush.bf16.msrb.mxu2 %v5036_v33 }
 0xa9c   : > { %1974 = vmatpush.bf16.msrb.mxu2 %v5035_v36 }
 0xb09   : > { %v1723_v28 = vpop.xlane.xlu1 %1722 }
 0xb0a   : > { %v1724_v29 = vmul.f32 %v1723_v28, %v5627_v18 }
 0xb0c   : > { %v1725_v30 = vsub.f32 %v1720_v26, %v1724_v29 }
 0xb0e   : > { %v1726_v31 = vmul.f32 %v1725_v30, %v1725_v30 }
 0xb10   : > { %v1727_v32 = vsel %vm695_vm0, %v1726_v31, 0.0 }
 0xb11   : > { %1728 = vadd.xlane.f32.xlu0 %v1727_v32  ;;  %v5146_v32 = vld [vmem:[%s6509_s10 + $0x1] ss:$0 sm:$0xff] }
 0xb84   : > { %v1729_v34 = vpop.xlane.xlu0 %1728 }
 0xb85   : > { %v1730_v35 = vmul.f32 %v1729_v34, %v5627_v18  ;;  %v1952_v34 = vadd.f32 %v5146_v32, %v1951_v17 }
 0xb87   : > { %v1731_v37 = vadd.f32 1e-05, %v1730_v35  ;;  %v2010_v36 = vpack.c.bf16 %v1952_v34, %v1952_v34 }
 0xb89   : > { %5209 = vrsqrt.f32 %v1731_v37  ;;  %vm1738_vm12 = vweird.f32 %v1731_v37 }
 0xb8f   : > { %v5210_v38 = vpop.eup %5209 }
 0xb90   : > { %v1733_v39 = vmul.f32 %v5210_v38, %v1731_v37  ;;  %vm1739_vm11 = vweird.f32 %v5210_v38  ;;  %v2038_v37 = vunpack.c.l.b16 %v2010_v36 }
 0xb91   : > { %vm1740_vm13 = vmor %vm1738_vm12, %vm1739_vm11 }
 0xb92   : > { %v1734_v40 = vmul.f32 %v5210_v38, %v1733_v39  ;;  %v643_v39 = vlaneseq }
 0xb94   : > { %v1735_v42 = vmul.f32 0.5, %v1734_v40  ;;  %v644_v40 = vshrl.u32 %v643_v39, 7  ;;  %v646_v41 = vand.u32 127, %v643_v39  ;;  %v2007_v39 = vld [vmem:[%s6514_s15 + $0x8] sm:$0xf] }
 0xb96   : > { %v1736_v44 = vsub.f32 1.5, %v1735_v42  ;;  %vm5871_vm14 = vcmp.le.s32.totalorder %v646_v41, %v644_v40  ;;  %v2293_v41 = vsel %vm945_vm2, %v2007_v39, 0  ;;  %v5040_v39 = vld [vmem:[%s6510_s11 + $0x8] sm:$0xff] }
 0xb98   : > { %v1737_v45 = vmul.f32 %v5210_v38, %v1736_v44 }
 0xb9a   : > { %v1741_v47 = vsel %vm1740_vm13, %v5210_v38, %v1737_v45  ;;  %v2039_v38 = vpack.c.b16 %v2038_v37, %v2038_v37 }
 0xb9b   : > { %v1742_v49 = vmul.f32 %v1741_v47, %v1725_v30  ;;  %v2009_v30 = vpack.c.bf16 %v1927_v27, %v1927_v27 }
 0xb9d   : > { %v1744_v50 = vmul.f32 %v1743_v46, %v1742_v49  ;;  %v2014_v33 = vunpack.c.l.b16 %v2009_v30 }
 0xb9f   : > { %v5799_v51 = vadd.f32 %v1745_v48, %v1744_v50  ;;  %v5866_v35 = vpack.c.b16 %v2014_v33, %v2014_v33 }
 0xba1   : > { %v1747_v52 = vpack.c.bf16 %v5799_v51, %v5799_v51 }
 0xba3   : > { %4570 = vmatmul.msk.bf16.vlgmr.msra.gmra.mxu2 %vm695_vm0, %v1747_v52 }
 0xbb3   : > { %4622 = vmatmul.msk.bf16.vlgmr.msrb.gmra.mxu2 %vm695_vm0, %v1869_v54 }
 0xc26   : > { %v1782_v1 = vpop.f32.mrf.mxu2 }
 0xc27   : > { %v1783_v2 = vadd.f32 %v5142_v0, %v1782_v1 }
 0xc29   : > { %v1786_v3 = vmax.f32 %v1783_v2, 0.0 }
 0xc2b   : > { %v1787_v4 = vpack.c.bf16 %v1786_v3, %v1786_v3 }
 0xc2d   : > { %4595 = vmatmul.msk.bf16.vlgmr.msra.gmra.mxu3 %vm1215_vm7, %v1787_v4 }
 0xc2e   : > { %v1784_v5 = vpop.f32.mrf.mxu2 }
 0xc36   : > { %v1976_v7 = vpop.f32.mrf.mxu2 }
 0xc37   : > { %v1977_v9 = vadd.f32 %v5143_v6, %v1976_v7 }
 0xc39   : > { %v2011_v10 = vpack.c.bf16 %v1977_v9, %v1977_v9 }
 0xc3b   : > { %v2062_v11 = vunpack.c.l.b16 %v2011_v10 }
 0xc3d   : > { %v5847_v12 = vpack.c.b16 %v2062_v11, %v2062_v11  ;;  %4631 = vmatmul.msk.bf16.vlgmr.msrb.gmra.mxu3 %vm695_vm0, %v1869_v54 }
 0xc3e   : > { %v1978_v13 = vpop.f32.mrf.mxu2 }
 0xc3f   : > { %2064 = vrot.lane.b32.xlu2 %v5847_v12, %s6564_s3 }
 0xc99   : > { %v2065_v14 = vpop.permute.xlu2 %2064 }
 0xc9a   : > { %v2070_v15 = vsel %vm800_vm1, %v2065_v14, 0 }
 0xc9b   : > { %2079 = vmatpush.bf16.xpose.msra.mxu2 %v2070_v15 }
 0xca2   : > { %4634 = vmatmul.msk.bf16.vlgmr.msra.gmra.mxu2 %vm800_vm1, %v2011_v10  ;;  %v1797_v10 = vperm.slane %v5771_v19, 1 }
 0xcb0   : > { %v5854_v22 = vpop.f32.mrf.mxu3 }
 0xcb1   : > { %v1835_v11 = vadd.f32 %v5854_v22, %v1797_v10 }
 0xcb3   : > { %v5901_v13 = vadd.f32 %v1835_v11, %v5799_v51 }
 0xcb5   : > { %v1839_v14 = vsel %vm695_vm0, %v5901_v13, 0.0 }
 0xcb8   : > { %v1836_v23 = vpop.f32.mrf.mxu3 }
 0xcc0   : > { %v2001_v26 = vpop.f32.mrf.mxu3 }
 0xcc1   : > { %v2002_v28 = vadd.f32 %v5145_v63, %v2001_v26 }
 0xcc3   : > { %v2012_v29 = vpack.c.bf16 %v2002_v28, %v2002_v28 }
 0xcc5   : > { %v2086_v31 = vunpack.c.l.b16 %v2012_v29 }
 0xcc7   : > { %v2087_v24 = vpack.c.b16 %v2086_v31, %v2086_v31 }
 0xcc8   : > { %v2003_v8 = vpop.f32.mrf.mxu3 }
 0xcc9   : > { %2088 = vrot.lane.b32.xlu2 %v2087_v24, %s6564_s3 }
 0xcd1   : > { %2016 = vrot.lane.b32.xlu2 %v5866_v35, %s6564_s3 }
 0xcd9   : > { %2040 = vrot.lane.b32.xlu2 %v2039_v38, %s6564_s3 }
 0xd23   : > { %v2089_v42 = vpop.permute.xlu2 %2088 }
 0xd24   : > { %v2094_v44 = vsel %vm800_vm1, %v2089_v42, 0 }
 0xd25   : > { %v2081_v45 = vpop.f32.mrf.mxu2  ;;  %2103 = vmatpush.bf16.xpose.msra.mxu3 %v2094_v44 }
 0xd26   : > { %v2113_v46 = vsel %vm5871_vm14, %v2081_v45, -1e+09 }
 0xd27   : > { %v2121_v47 = vsel %vm800_vm1, %v2113_v46, -inf }
 0xd28   : > { %2122 = vmax.xlane.f32.xlu1 %v2121_v47 }
 0xd2b   : > { %v2017_v48 = vpop.permute.xlu2 %2016 }
 0xd2c   : > { %v2022_v49 = vsel %vm800_vm1, %v2017_v48, 0  ;;  %4635 = vmatmul.msk.bf16.vlgmr.msra.gmra.mxu3 %vm800_vm1, %v2012_v29 }
 0xd2d   : > { %2031 = vmatpush.bf16.xpose.msra.mxu0 %v2022_v49  ;;  %v2083_v50 = vpop.f32.mrf.mxu2 }
 0xd33   : > { %v2041_v52 = vpop.permute.xlu2 %2040 }
 0xd34   : > { %v2046_v54 = vsel %vm800_vm1, %v2041_v52, 0  ;;  %4632 = vmatmul.msk.bf16.vlgmr.msra.gmra.mxu0 %vm800_vm1, %v2009_v30 }
 0xd35   : > { %2055 = vmatpush.bf16.xpose.msra.mxu1 %v2046_v54 }
 0xd3c   : > { %4633 = vmatmul.msk.bf16.vlgmr.msra.gmra.mxu1 %vm800_vm1, %v2010_v36 }
 0xd9b   : > { %v2123_v55 = vpop.xlane.xlu1 %2122 }
 0xd9c   : > { %v2129_v56 = vsub.f32 %v2113_v46, %v2123_v55 }
 0xd9e   : > { %v2135_v57 = vmul.f32 1.442695, %v2129_v56 }
 0xda0   : > { %5211 = vpow2.f32 %v2135_v57 }
 0xda6   : > { %v5212_v1 = vpop.eup %5211 }
 0xda7   : > { %v2145_v5 = vsel %vm800_vm1, %v5212_v1, 0.0 }
 0xdaf   : > { %v2105_v58 = vpop.f32.mrf.mxu3 }
 0xdb0   : > { %v2114_v59 = vsel %vm5871_vm14, %v2105_v58, -1e+09 }
 0xdb1   : > { %v2033_v60 = vpop.f32.mrf.mxu0  ;;  %v2124_v61 = vsel %vm800_vm1, %v2114_v59, -inf }
 0xdb2   : > { %v2111_v62 = vsel %vm5871_vm14, %v2033_v60, -1e+09  ;;  %2125 = vmax.xlane.f32.xlu0 %v2124_v61  ;;  %v2006_v60 = vld [vmem:[%s6514_s15 + $0x4] sm:$0xf] }
 0xdb3   : > { %v2115_v0 = vsel %vm800_vm1, %v2111_v62, -inf  ;;  %v2255_v61 = vsel %vm945_vm2, %v2006_v60, 0 }
 0xdb4   : > { %2116 = vmax.xlane.f32.xlu2 %v2115_v0 }
 0xdb7   : > { %v2107_v2 = vpop.f32.mrf.mxu3 }
 0xdb9   : > { %v2035_v3 = vpop.f32.mrf.mxu0  ;;  %v2057_v4 = vpop.f32.mrf.mxu1 }
 0xdba   : > { %v2112_v6 = vsel %vm5871_vm14, %v2057_v4, -1e+09  ;;  %2146 = vadd.xlane.f32.xlu0 %v2145_v5 }
 0xdbb   : > { %v2118_v7 = vsel %vm800_vm1, %v2112_v6, -inf }
 0xdbc   : > { %2119 = vmax.xlane.f32.xlu1 %v2118_v7 }
 0xdc1   : > { %v2059_v9 = vpop.f32.mrf.mxu1 }
 0xdce   : > { %2205 = vrot.lane.b32.xlu0 %v5847_v12, %s6565_s27 }
 0xdd6   : > { %2226 = vrot.lane.b32.xlu0 %v2087_v24, %s6565_s27 }
 0xdde   : > { %2184 = vrot.lane.b32.xlu0 %v2039_v38, %s6565_s27 }
 0xe08   : > { %1840 = vadd.xlane.f32.xlu0 %v1839_v14 }
 0xe25   : > { %v2126_v17 = vpop.xlane.xlu0 %2125 }
 0xe26   : > { %v2130_v25 = vsub.f32 %v2114_v59, %v2126_v17 }
 0xe27   : > { %v2117_v15 = vpop.xlane.xlu2 %2116 }
 0xe28   : > { %v2127_v16 = vsub.f32 %v2111_v62, %v2117_v15  ;;  %v2137_v51 = vmul.f32 1.442695, %v2130_v25  ;;  %v2008_v62 = vld [vmem:[%s6514_s15 + $0xc] sm:$0xf] }
 0xe29   : > { %v2313_v0 = vsel %vm945_vm2, %v2008_v62, 0 }
 0xe2a   : > { %v2131_v20 = vmul.f32 1.442695, %v2127_v16 }
 0xe2c   : > { %5213 = vpow2.f32 %v2131_v20 }
 0xe2d   : > { %v2147_v26 = vpop.xlane.xlu0 %2146 }
 0xe2f   : > { %v2120_v12 = vpop.xlane.xlu1 %2119 }
 0xe30   : > { %v2128_v21 = vsub.f32 %v2112_v6, %v2120_v12 }
 0xe32   : > { %v5214_v23 = vpop.eup %5213  ;;  %v2133_v63 = vmul.f32 1.442695, %v2128_v21 }
 0xe33   : > { %v2139_v22 = vsel %vm800_vm1, %v5214_v23, 0.0 }
 0xe34   : > { %5215 = vpow2.f32 %v2133_v63  ;;  %2140 = vadd.xlane.f32.xlu1 %v2139_v22 }
 0xe35   : > { %5217 = vrcp.f32 %v2147_v26 }
 0xe36   : > { %5219 = vpow2.f32 %v2137_v51 }
 0xe3a   : > { %v5216_v27 = vpop.eup %5215 }
 0xe3b   : > { %v2142_v28 = vsel %vm800_vm1, %v5216_v27, 0.0  ;;  %v5218_v29 = vpop.eup %5217 }
 0xe3c   : > { %2143 = vadd.xlane.f32.xlu1 %v2142_v28  ;;  %v2157_v30 = vmul.f32 %v5218_v29, %v5212_v1  ;;  %v5220_v31 = vpop.eup %5219  ;;  %v2005_v1 = vld [vmem:[%s6514_s15] sm:$0xf] }
 0xe3d   : > { %v2148_v33 = vsel %vm800_vm1, %v5220_v31, 0.0  ;;  %v2274_v2 = vsel %vm945_vm2, %v2005_v1, 0 }
 0xe3e   : > { %v2161_v8 = vpack.c.bf16 %v2157_v30, %v2157_v30 }
 0xe40   : > { %v2206_v32 = vpop.permute.xlu0 %2205 }
 0xe41   : > { %v2211_v24 = vsel %vm945_vm2, %v2206_v32, 0 }
 0xe42   : > { %2220 = vmatpush.bf16.msrb.mxu2 %v2211_v24 }
 0xe44   : > { %2149 = vadd.xlane.f32.xlu1 %v2148_v33 }
 0xe45   : > { %4638 = vmatmul.msk.bf16.vlgmr.msrb.gmra.mxu2 %vm800_vm1, %v2161_v8 }
 0xe46   : > { %2302 = vmatpush.bf16.msra.mxu2 %v2293_v41  ;;  %v5046_v41 = vld [vmem:[%s6510_s11 + $0x38] sm:$0xff] }
 0xe48   : > { %v2227_v34 = vpop.permute.xlu0 %2226 }
 0xe49   : > { %v2232_v36 = vsel %vm945_vm2, %v2227_v34, 0 }
 0xe4a   : > { %2241 = vmatpush.bf16.msrb.mxu3 %v2232_v36 }
 0xe4e   : > { %2322 = vmatpush.bf16.msra.mxu3 %v2313_v0 }
 0xe50   : > { %v2185_v37 = vpop.permute.xlu0 %2184 }
 0xe51   : > { %v2190_v38 = vsel %vm945_vm2, %v2185_v37, 0 }
 0xe52   : > { %2199 = vmatpush.bf16.msrb.mxu1 %v2190_v38 }
 0xe56   : > { %2283 = vmatpush.bf16.msra.mxu1 %v2274_v2 }
 0xe5d   : > { %2163 = vrot.lane.b32.xlu1 %v5866_v35, %s6565_s27 }
 0xea7   : > { %v2141_v40 = vpop.xlane.xlu1 %2140 }
 0xeaf   : > { %v2144_v42 = vpop.xlane.xlu1 %2143 }
 0xeb0   : > { %5221 = vrcp.f32 %v2144_v42  ;;  %v5039_v42 = vld [vmem:[%s6510_s11] sm:$0xff] }
 0xeb6   : > { %v5222_v44 = vpop.eup %5221 }
 0xeb7   : > { %v2156_v45 = vmul.f32 %v5222_v44, %v5216_v27  ;;  %v2150_v46 = vpop.xlane.xlu1 %2149  ;;  %v5041_v44 = vld [vmem:[%s6510_s11 + $0x10] sm:$0xff] }
 0xeb8   : > { %5223 = vrcp.f32 %v2150_v46  ;;  %v5045_v46 = vld [vmem:[%s6510_s11 + $0x30] sm:$0xff] }
 0xeb9   : > { %v2160_v47 = vpack.c.bf16 %v2156_v45, %v2156_v45  ;;  %5225 = vrcp.f32 %v2141_v40  ;;  %v5042_v40 = vld [vmem:[%s6510_s11 + $0x18] sm:$0xff]  ;;  %v5043_v45 = vld [vmem:[%s6510_s11 + $0x20] sm:$0xff] }
 0xebb   : > { %4637 = vmatmul.msk.bf16.vlgmr.msrb.gmra.mxu1 %vm800_vm1, %v2160_v47 }
 0xebc   : > { %2437 = vmatpush.bf16.msrb.mxu1 %v5042_v40  ;;  %v5147_v40 = vld [vmem:[%s6511_s12] ss:$0 sm:$0xff] }
 0xebe   : > { %v5224_v48 = vpop.eup %5223 }
 0xebf   : > { %v2158_v49 = vmul.f32 %v5224_v48, %v5220_v31  ;;  %v5226_v54 = vpop.eup %5225  ;;  %v1841_v31 = vpop.xlane.xlu0 %1840 }
 0xec0   : > { %v2155_v55 = vmul.f32 %v5226_v54, %v5214_v23  ;;  %v5941_v23 = vld [vmem:[%s6518_s19] sm:$0xff]  ;;  %v1842_v8 = vmul.f32 %v1841_v31, %v5627_v18  ;;  %2438 = vmatpush.bf16.msrb.mxu1 %v5041_v44  ;;  %v5054_v54 = vld [vmem:[%s6512_s13 + $0x38] sm:$0xff] }
 0xec1   : > { %v2162_v35 = vpack.c.bf16 %v2158_v49, %v2158_v49  ;;  %v2329_v22 = vperm.slane %v5941_v23, 0  ;;  %v5153_v44 = vld [vmem:[%s6513_s14 + $0x2] ss:$0 sm:$0xff] }
 0xec2   : > { %v2159_v59 = vpack.c.bf16 %v2155_v55, %v2155_v55  ;;  %v5953_v36 = vsub.f32 %v5901_v13, %v1842_v8  ;;  %v5044_v13 = vld [vmem:[%s6510_s11 + $0x28] sm:$0xff]  ;;  %v5047_v55 = vld [vmem:[%s6512_s13] sm:$0xff] }
 0xec3   : > { %4639 = vmatmul.msk.bf16.vlgmr.msrb.gmra.mxu3 %vm800_vm1, %v2162_v35  ;;  %2462 = vmatpush.bf16.msrb.mxu2 %v5044_v13  ;;  %v5048_v35 = vld [vmem:[%s6512_s13 + $0x8] sm:$0xff]  ;;  %v5151_v8 = vld [vmem:[%s6513_s14] ss:$0 sm:$0xff] }
 0xec4   : > { %2487 = vmatpush.bf16.msrb.mxu3 %v5046_v41 }
 0xec7   : > { %2463 = vmatpush.bf16.msrb.mxu2 %v5043_v45  ;;  %v5154_v45 = vld [vmem:[%s6513_s14 + $0x3] ss:$0 sm:$0xff] }
 0xec8   : > { %v2222_v50 = vpop.f32.mrf.mxu2  ;;  %2488 = vmatpush.bf16.msrb.mxu3 %v5045_v46 }
 0xec9   : > { %v2249_v52 = vpack.c.bf16 %v2222_v50, %v2222_v50  ;;  %v5050_v50 = vld [vmem:[%s6512_s13 + $0x18] sm:$0xff] }
 0xecb   : > { %4642 = vmatmul.msk.bf16.vlgmr.msra.gmra.mxu2 %vm800_vm1, %v2249_v52  ;;  %v5052_v52 = vld [vmem:[%s6512_s13 + $0x28] sm:$0xff] }
 0xecc   : > { %2597 = vmatpush.bf16.msra.mxu2 %v5052_v52 }
 0xecf   : > { %v2164_v56 = vpop.permute.xlu1 %2163 }
 0xed0   : > { %v2169_v57 = vsel %vm945_vm2, %v2164_v56, 0  ;;  %v2224_v58 = vpop.f32.mrf.mxu2  ;;  %v5049_v56 = vld [vmem:[%s6512_s13 + $0x10] sm:$0xff] }
 0xed1   : > { %2178 = vmatpush.bf16.msrb.mxu0 %v2169_v57  ;;  %v5051_v58 = vld [vmem:[%s6512_s13 + $0x20] sm:$0xff] }
 0xed2   : > { %2598 = vmatpush.bf16.msra.mxu2 %v5051_v58  ;;  %v5150_v58 = vld [vmem:[%s6511_s12 + $0x3] ss:$0 sm:$0xff] }
 0xed4   : > { %4636 = vmatmul.msk.bf16.vlgmr.msrb.gmra.mxu0 %vm800_vm1, %v2159_v59  ;;  %v5053_v59 = vld [vmem:[%s6512_s13 + $0x30] sm:$0xff] }
 0xed5   : > { %2264 = vmatpush.bf16.msra.mxu0 %v2255_v61 }
 0xed9   : > { %2412 = vmatpush.bf16.msrb.mxu0 %v5040_v39 }
 0xedd   : > { %2413 = vmatpush.bf16.msrb.mxu0 %v5039_v42  ;;  %v5148_v42 = vld [vmem:[%s6511_s12 + $0x1] ss:$0 sm:$0xff] }
 0xf38   : > { %v2201_v3 = vpop.f32.mrf.mxu1 }
 0xf39   : > { %v2248_v4 = vpack.c.bf16 %v2201_v3, %v2201_v3 }
 0xf3b   : > { %4640 = vmatmul.msk.bf16.vlgmr.msra.gmra.mxu0 %vm800_vm1, %v2248_v4 }
 0xf3c   : > { %2547 = vmatpush.bf16.msra.mxu0 %v5048_v35 }
 0xf40   : > { %v2203_v5 = vpop.f32.mrf.mxu1  ;;  %2548 = vmatpush.bf16.msra.mxu0 %v5047_v55 }
 0xf46   : > { %v2243_v6 = vpop.f32.mrf.mxu3 }
 0xf47   : > { %v2250_v7 = vpack.c.bf16 %v2243_v6, %v2243_v6 }
 0xf49   : > { %4643 = vmatmul.msk.bf16.vlgmr.msra.gmra.mxu3 %vm800_vm1, %v2250_v7  ;;  %v2354_v7 = vperm.slane %v5941_v23, 3 }
 0xf4a   : > { %2622 = vmatpush.bf16.msra.mxu3 %v5054_v54 }
 0xf4e   : > { %v2245_v9 = vpop.f32.mrf.mxu3  ;;  %v2304_v10 = vpop.f32.mrf.mxu2  ;;  %2623 = vmatpush.bf16.msra.mxu3 %v5053_v59 }
 0xf51   : > { %v2180_v11 = vpop.f32.mrf.mxu0 }
 0xf52   : > { %v2247_v14 = vpack.c.bf16 %v2180_v11, %v2180_v11  ;;  %v2356_v11 = vperm.slane %v5941_v23, 4 }
 0xf54   : > { %4641 = vmatmul.msk.bf16.vlgmr.msra.gmra.mxu1 %vm800_vm1, %v2247_v14 }
 0xf55   : > { %2572 = vmatpush.bf16.msra.mxu1 %v5050_v50 }
 0xf56   : > { %v2306_v15 = vpop.f32.mrf.mxu2 }
 0xf59   : > { %v2182_v16 = vpop.f32.mrf.mxu0  ;;  %2573 = vmatpush.bf16.msra.mxu1 %v5049_v56 }
 0xfb8   : > { %v2266_v17 = vpop.f32.mrf.mxu0 }
 0xfc0   : > { %v2268_v20 = vpop.f32.mrf.mxu0 }
 0xfcc   : > { %v2324_v12 = vpop.f32.mrf.mxu3 }
 0xfd1   : > { %v2285_v21 = vpop.f32.mrf.mxu1 }
 0xfd2   : > { %v2286_v25 = vadd.f32 %v2285_v21, %v2266_v17 }
 0xfd4   : > { %v2308_v63 = vadd.f32 %v2304_v10, %v2286_v25  ;;  %v2326_v26 = vpop.f32.mrf.mxu3 }
 0xfd6   : > { %v2328_v51 = vadd.f32 %v2324_v12, %v2308_v63  ;;  %v1861_v63 = vperm.slane %v5771_v19, 4 }
 0xfd8   : > { %v2330_v27 = vadd.f32 %v2329_v22, %v2328_v51  ;;  %v1863_v22 = vperm.slane %v5771_v19, 5 }
 0xfd9   : > { %v2287_v28 = vpop.f32.mrf.mxu1 }
 0xfda   : > { %v2331_v29 = vadd.f32 %v2330_v27, %v5809_v53  ;;  %v1844_v53 = vmul.f32 %v5953_v36, %v5953_v36 }
 0xfdc   : > { %v2332_v30 = vsel %vm695_vm0, %v2331_v29, 0.0  ;;  %v1845_v38 = vsel %vm695_vm0, %v1844_v53, 0.0 }
 0xfdd   : > { %2333 = vadd.xlane.f32.xlu2 %v2332_v30 }
0x1050   : > { %v2334_v32 = vpop.xlane.xlu2 %2333 }
0x1051   : > { %v2335_v24 = vmul.f32 %v2334_v32, %v5627_v18 }
0x1053   : > { %v5948_v33 = vsub.f32 %v2331_v29, %v2335_v24 }
0x1055   : > { %v2337_v34 = vmul.f32 %v5948_v33, %v5948_v33 }
0x1057   : > { %v2338_v37 = vsel %vm695_vm0, %v2337_v34, 0.0 }
0x1058   : > { %2339 = vadd.xlane.f32.xlu2 %v2338_v37 }
0x1060   : > { %1846 = vadd.xlane.f32.xlu2 %v1845_v38 }
0x10cb   : > { %v2340_v47 = vpop.xlane.xlu2 %2339 }
0x10cc   : > { %v2341_v48 = vmul.f32 %v2340_v47, %v5627_v18 }
0x10ce   : > { %v2342_v49 = vadd.f32 1e-05, %v2341_v48 }
0x10d0   : > { %5227 = vrsqrt.f32 %v2342_v49  ;;  %vm2349_vm3 = vweird.f32 %v2342_v49 }
0x10d3   : > { %v1847_v57 = vpop.xlane.xlu2 %1846 }
0x10d4   : > { %v1848_v60 = vmul.f32 %v1847_v57, %v5627_v18  ;;  %v5149_v57 = vld [vmem:[%s6511_s12 + $0x2] ss:$0 sm:$0xff] }
0x10d6   : > { %v5228_v61 = vpop.eup %5227  ;;  %v1849_v62 = vadd.f32 1e-05, %v1848_v60 }
0x10d7   : > { %v2344_v0 = vmul.f32 %v5228_v61, %v2342_v49  ;;  %vm2350_vm15 = vweird.f32 %v5228_v61 }
0x10d8   : > { %5229 = vrsqrt.f32 %v1849_v62  ;;  %vm2351_vm4 = vmor %vm2349_vm3, %vm2350_vm15  ;;  %vm1856_vm6 = vweird.f32 %v1849_v62 }
0x10d9   : > { %v2345_v1 = vmul.f32 %v5228_v61, %v2344_v0 }
0x10db   : > { %v2346_v2 = vmul.f32 0.5, %v2345_v1 }
0x10dd   : > { %v2347_v3 = vsub.f32 1.5, %v2346_v2 }
0x10de   : > { %v5230_v4 = vpop.eup %5229 }
0x10df   : > { %v2348_v5 = vmul.f32 %v5228_v61, %v2347_v3  ;;  %v1851_v6 = vmul.f32 %v5230_v4, %v1849_v62  ;;  %vm1857_vm5 = vweird.f32 %v5230_v4 }
0x10e0   : > { %vm1858_vm8 = vmor %vm1856_vm6, %vm1857_vm5 }
0x10e1   : > { %v2352_v9 = vsel %vm2351_vm4, %v5228_v61, %v2348_v5  ;;  %v1852_v10 = vmul.f32 %v5230_v4, %v1851_v6 }
0x10e2   : > { %v2353_v14 = vmul.f32 %v2352_v9, %v5948_v33  ;;  %v5152_v33 = vld [vmem:[%s6513_s14 + $0x1] ss:$0 sm:$0xff] }
0x10e3   : > { %v1853_v15 = vmul.f32 0.5, %v1852_v10 }
0x10e4   : > { %v2355_v16 = vmul.f32 %v2354_v7, %v2353_v14 }
0x10e5   : > { %v1854_v17 = vsub.f32 1.5, %v1853_v15 }
0x10e6   : > { %v6012_v20 = vadd.f32 %v2356_v11, %v2355_v16 }
0x10e7   : > { %v1855_v12 = vmul.f32 %v5230_v4, %v1854_v17 }
0x10e8   : > { %v2358_v21 = vpack.c.bf16 %v6012_v20, %v6012_v20 }
0x10e9   : > { %v1859_v25 = vsel %vm1858_vm8, %v5230_v4, %v1855_v12 }
0x10ea   : > { %4652 = vmatmul.msk.bf16.vlgmr.msrb.gmra.mxu0 %vm695_vm0, %v2358_v21  ;;  %4661 = vmatmul.msk.bf16.vlgmr.msrb.gmra.mxu1 %vm695_vm0, %v2358_v21  ;;  %v1860_v26 = vmul.f32 %v1859_v25, %v5953_v36 }
0x10eb   : > { %4670 = vmatmul.msk.bf16.vlgmr.msrb.gmra.mxu2 %vm695_vm0, %v2358_v21  ;;  %4679 = vmatmul.msk.bf16.vlgmr.msrb.gmra.mxu3 %vm695_vm0, %v2358_v21 }
0x10ec   : > { %v1862_v51 = vmul.f32 %v1861_v63, %v1860_v26 }
0x10ee   : > { %v1864_v27 = vadd.f32 %v1863_v22, %v1862_v51 }
0x10f0   : > { %v6023_v28 = vpack.c.bf16 %v1864_v27, %v1864_v27 }
0x10fa   : > { %4688 = vmatmul.msk.bf16.vlgmr.msra.gmra.mxu0 %vm695_vm0, %v6023_v28  ;;  %4697 = vmatmul.msk.bf16.vlgmr.msra.gmra.mxu1 %vm695_vm0, %v6023_v28 }
0x10fb   : > { %4706 = vmatmul.msk.bf16.vlgmr.msra.gmra.mxu2 %vm695_vm0, %v6023_v28  ;;  %4715 = vmatmul.msk.bf16.vlgmr.msra.gmra.mxu3 %vm695_vm0, %v6023_v28 }
0x1167   : > { %v2415_v29 = vpop.f32.mrf.mxu0  ;;  %v2440_v30 = vpop.f32.mrf.mxu1 }
0x1168   : > { %v2416_v48 = vadd.f32 %v5147_v40, %v2415_v29  ;;  %v2441_v50 = vadd.f32 %v5148_v42, %v2440_v30 }
0x116a   : > { %v2634_v61 = vpack.c.bf16 %v2416_v48, %v2416_v48  ;;  %v2635_v62 = vpack.c.bf16 %v2441_v50, %v2441_v50 }
0x116e   : > { %v2465_v31 = vpop.f32.mrf.mxu2  ;;  %v2490_v19 = vpop.f32.mrf.mxu3 }
0x116f   : > { %v2417_v32 = vpop.f32.mrf.mxu0  ;;  %v2442_v24 = vpop.f32.mrf.mxu1  ;;  %v2466_v3 = vadd.f32 %v5149_v57, %v2465_v31  ;;  %v2491_v4 = vadd.f32 %v5150_v58, %v2490_v19 }
0x1171   : > { %v2636_v9 = vpack.c.bf16 %v2466_v3, %v2466_v3  ;;  %v2637_v10 = vpack.c.bf16 %v2491_v4, %v2491_v4 }
0x1176   : > { %v2467_v34 = vpop.f32.mrf.mxu2  ;;  %v2492_v36 = vpop.f32.mrf.mxu3 }
0x1177   : > { %v2550_v37 = vpop.f32.mrf.mxu0  ;;  %v2575_v53 = vpop.f32.mrf.mxu1 }
0x1178   : > { %v2551_v38 = vadd.f32 %v5151_v8, %v2550_v37  ;;  %v2576_v39 = vadd.f32 %v5152_v33, %v2575_v53 }
0x117a   : > { %v6042_v13 = vpack.c.bf16 %v2551_v38, %v2551_v38  ;;  %v6044_v41 = vpack.c.bf16 %v2576_v39, %v2576_v39 }
0x117c   : > { %v2646_v46 = vsel %vm800_vm1, %v6042_v13, 0  ;;  %v2665_v47 = vsel %vm800_vm1, %v6044_v41, 0 }
0x117d   : > { %2655 = vmatpush.bf16.xpose.msrb.mxu0 %v2646_v46  ;;  %2674 = vmatpush.bf16.xpose.msrb.mxu1 %v2665_v47 }
0x117e   : > { %v2600_v49 = vpop.f32.mrf.mxu2  ;;  %v2625_v35 = vpop.f32.mrf.mxu3 }
0x117f   : > { %v2601_v52 = vadd.f32 %v5153_v44, %v2600_v49  ;;  %v2626_v54 = vadd.f32 %v5154_v45, %v2625_v35  ;;  %v2552_v55 = vpop.f32.mrf.mxu0  ;;  %v2577_v56 = vpop.f32.mrf.mxu1  ;;  %v2791_v49 = vunpack.c.l.b16 %v6044_v41 }
0x1181   : > { %v2640_v59 = vpack.c.bf16 %v2601_v52, %v2601_v52  ;;  %v6065_v60 = vpack.c.bf16 %v2626_v54, %v2626_v54  ;;  %v2792_v35 = vpack.c.b16 %v2791_v49, %v2791_v49  ;;  %v2767_v54 = vunpack.c.l.b16 %v6042_v13 }
0x1183   : > { %v2684_v0 = vsel %vm800_vm1, %v2640_v59, 0  ;;  %v2815_v1 = vunpack.c.l.b16 %v2640_v59  ;;  %v2703_v2 = vsel %vm800_vm1, %v6065_v60, 0  ;;  %v2839_v50 = vunpack.c.l.b16 %v6065_v60 }
0x1184   : > { %2693 = vmatpush.bf16.xpose.msrb.mxu2 %v2684_v0  ;;  %2712 = vmatpush.bf16.xpose.msrb.mxu3 %v2703_v2  ;;  %v2768_v55 = vpack.c.b16 %v2767_v54, %v2767_v54 }
0x1185   : > { %v2816_v5 = vpack.c.b16 %v2815_v1, %v2815_v1  ;;  %4720 = vmatmul.msk.bf16.vlgmr.msrb.gmra.mxu0 %vm800_vm1, %v2634_v61  ;;  %4721 = vmatmul.msk.bf16.vlgmr.msrb.gmra.mxu1 %vm800_vm1, %v2635_v62  ;;  %v2840_v52 = vpack.c.b16 %v2839_v50, %v2839_v50 }
0x1186   : > { %v2602_v6 = vpop.f32.mrf.mxu2  ;;  %v2627_v7 = vpop.f32.mrf.mxu3 }
0x1187   : > { %2817 = vrot.lane.b32.xlu0 %v2816_v5, %s6564_s3 }
0x118b   : > { %4722 = vmatmul.msk.bf16.vlgmr.msrb.gmra.mxu2 %vm800_vm1, %v2636_v9  ;;  %4723 = vmatmul.msk.bf16.vlgmr.msrb.gmra.mxu3 %vm800_vm1, %v2637_v10 }
0x11f9   : > { %v2818_v11 = vpop.permute.xlu0 %2817 }
0x11fa   : > { %v2823_v14 = vsel %vm945_vm2, %v2818_v11, 0 }
0x11fb   : > { %2832 = vmatpush.bf16.msra.mxu2 %v2823_v14 }
0x1202   : > { %v2657_v15 = vpop.f32.mrf.mxu0  ;;  %v2676_v16 = vpop.f32.mrf.mxu1 }
0x1203   : > { %v2718_v17 = vsel %vm800_vm1, %v2657_v15, -inf  ;;  %v2721_v29 = vsel %vm800_vm1, %v2676_v16, -inf }
0x1204   : > { %2719 = vmax.xlane.f32.xlu2 %v2718_v17 }
0x120a   : > { %v2659_v12 = vpop.f32.mrf.mxu0  ;;  %v2678_v21 = vpop.f32.mrf.mxu1 }
0x120b   : > { %v4719_v12 = vld [vmem:[%s6514_s15 + $0x1c] sm:$0xf] }
0x120c   : > { %v2928_v21 = vsel %vm945_vm2, %v4719_v12, 0  ;;  %v5155_v12 = vld [vmem:[%s6516_s17] ss:$0 sm:$0xff] }
0x120e   : > { %v2695_v25 = vpop.f32.mrf.mxu2  ;;  %v2714_v63 = vpop.f32.mrf.mxu3 }
0x120f   : > { %v2724_v26 = vsel %vm800_vm1, %v2695_v25, -inf  ;;  %v2727_v22 = vsel %vm800_vm1, %v2714_v63, -inf }
0x1210   : > { %2725 = vmax.xlane.f32.xlu1 %v2724_v26  ;;  %2728 = vmax.xlane.f32.xlu2 %v2727_v22  ;;  %v4716_v26 = vld [vmem:[%s6514_s15 + $0x10] sm:$0xf] }
0x1211   : > { %v2889_v22 = vsel %vm945_vm2, %v4716_v26, 0 }
0x1216   : > { %v2697_v51 = vpop.f32.mrf.mxu2  ;;  %v2716_v27 = vpop.f32.mrf.mxu3 }
0x1218   : > { %2722 = vmax.xlane.f32.xlu2 %v2721_v29 }
0x1277   : > { %v2720_v30 = vpop.xlane.xlu2 %2719 }
0x1278   : > { %v2730_v31 = vsub.f32 %v2657_v15, %v2720_v30 }
0x127a   : > { %v2734_v19 = vmul.f32 1.442695, %v2730_v31 }
0x127c   : > { %5231 = vpow2.f32 %v2734_v19 }
0x1282   : > { %v5232_v32 = vpop.eup %5231 }
0x1283   : > { %v2726_v24 = vpop.xlane.xlu1 %2725  ;;  %v2729_v8 = vpop.xlane.xlu2 %2728  ;;  %v2742_v33 = vsel %vm800_vm1, %v5232_v32, 0.0 }
0x1284   : > { %v2732_v34 = vsub.f32 %v2695_v25, %v2726_v24  ;;  %v2733_v36 = vsub.f32 %v2714_v63, %v2729_v8  ;;  %2743 = vadd.xlane.f32.xlu2 %v2742_v33  ;;  %v4717_v25 = vld [vmem:[%s6514_s15 + $0x14] sm:$0xf] }
0x1285   : > { %v2870_v63 = vsel %vm945_vm2, %v4717_v25, 0 }
0x1286   : > { %v2738_v37 = vmul.f32 1.442695, %v2732_v34  ;;  %v2740_v53 = vmul.f32 1.442695, %v2733_v36 }
0x1288   : > { %5233 = vpow2.f32 %v2738_v37 }
0x1289   : > { %5235 = vpow2.f32 %v2740_v53 }
0x128b   : > { %v2723_v38 = vpop.xlane.xlu2 %2722 }
0x128c   : > { %v2731_v39 = vsub.f32 %v2676_v16, %v2723_v38  ;;  %v4718_v16 = vld [vmem:[%s6514_s15 + $0x18] sm:$0xf] }
0x128d   : > { %v2908_v17 = vsel %vm945_vm2, %v4718_v16, 0  ;;  %v5058_v16 = vld [vmem:[%s6517_s18 + $0x8] sm:$0xff] }
0x128e   : > { %v5234_v40 = vpop.eup %5233  ;;  %v2736_v42 = vmul.f32 1.442695, %v2731_v39  ;;  %2917 = vmatpush.bf16.msrb.mxu2 %v2908_v17  ;;  %v5057_v17 = vld [vmem:[%s6517_s18] sm:$0xff] }
0x128f   : > { %v5236_v44 = vpop.eup %5235  ;;  %v2748_v45 = vsel %vm800_vm1, %v5234_v40, 0.0 }
0x1290   : > { %5237 = vpow2.f32 %v2736_v42  ;;  %2749 = vadd.xlane.f32.xlu0 %v2748_v45  ;;  %v2751_v46 = vsel %vm800_vm1, %v5236_v44, 0.0 }
0x1291   : > { %2752 = vadd.xlane.f32.xlu2 %v2751_v46 }
0x1296   : > { %v5238_v47 = vpop.eup %5237 }
0x1297   : > { %v2745_v48 = vsel %vm800_vm1, %v5238_v47, 0.0 }
0x1298   : > { %2746 = vadd.xlane.f32.xlu1 %v2745_v48 }
0x12a4   : > { %2793 = vrot.lane.b32.xlu0 %v2792_v35, %s6564_s3 }
0x12a9   : > { %2841 = vrot.lane.b32.xlu2 %v2840_v52, %s6564_s3 }
0x12b1   : > { %2769 = vrot.lane.b32.xlu1 %v2768_v55, %s6564_s3 }
0x12f7   : > { %v2744_v56 = vpop.xlane.xlu2 %2743 }
0x1303   : > { %v2750_v57 = vpop.xlane.xlu0 %2749 }
0x1304   : > { %5239 = vrcp.f32 %v2750_v57  ;;  %v2753_v58 = vpop.xlane.xlu2 %2752 }
0x1305   : > { %5241 = vrcp.f32 %v2753_v58 }
0x130a   : > { %v5240_v59 = vpop.eup %5239 }
0x130b   : > { %v5242_v41 = vpop.eup %5241  ;;  %v2760_v61 = vmul.f32 %v5240_v59, %v5234_v40  ;;  %v2747_v62 = vpop.xlane.xlu1 %2746  ;;  %v5056_v59 = vld [vmem:[%s6515_s16 + $0x8] sm:$0xff] }
0x130c   : > { %v2761_v60 = vmul.f32 %v5242_v41, %v5236_v44  ;;  %5243 = vrcp.f32 %v2747_v62  ;;  %v2842_v0 = vpop.permute.xlu2 %2841  ;;  %v5060_v41 = vld [vmem:[%s6517_s18 + $0x18] sm:$0xff] }
0x130d   : > { %v2764_v1 = vpack.c.bf16 %v2760_v61, %v2760_v61  ;;  %v2847_v2 = vsel %vm945_vm2, %v2842_v0, 0  ;;  %5245 = vrcp.f32 %v2744_v56 }
0x130e   : > { %v2765_v3 = vpack.c.bf16 %v2761_v60, %v2761_v60  ;;  %2856 = vmatpush.bf16.msra.mxu3 %v2847_v2  ;;  %v5059_v60 = vld [vmem:[%s6517_s18 + $0x10] sm:$0xff] }
0x130f   : > { %4726 = vmatmul.msk.bf16.vlgmr.msra.gmra.mxu2 %vm800_vm1, %v2764_v1 }
0x1311   : > { %4727 = vmatmul.msk.bf16.vlgmr.msra.gmra.mxu3 %vm800_vm1, %v2765_v3 }
0x1312   : > { %v5244_v13 = vpop.eup %5243  ;;  %2937 = vmatpush.bf16.msrb.mxu3 %v2928_v21 }
0x1313   : > { %v2759_v4 = vmul.f32 %v5244_v13, %v5238_v47  ;;  %v5246_v9 = vpop.eup %5245  ;;  %v2944_v47 = vperm.slane %v5941_v23, 1 }
0x1314   : > { %v2758_v10 = vmul.f32 %v5246_v9, %v5232_v32  ;;  %v2971_v9 = vperm.slane %v5941_v23, 6 }
0x1315   : > { %v2763_v7 = vpack.c.bf16 %v2759_v4, %v2759_v4 }
0x1316   : > { %v2794_v5 = vpop.permute.xlu0 %2793  ;;  %v2762_v15 = vpack.c.bf16 %v2758_v10, %v2758_v10 }
0x1317   : > { %v2799_v6 = vsel %vm945_vm2, %v2794_v5, 0 }
0x1318   : > { %2808 = vmatpush.bf16.msra.mxu1 %v2799_v6  ;;  %v2969_v6 = vperm.slane %v5941_v23, 5 }
0x131b   : > { %4725 = vmatmul.msk.bf16.vlgmr.msra.gmra.mxu1 %vm800_vm1, %v2763_v7 }
0x131c   : > { %2898 = vmatpush.bf16.msrb.mxu1 %v2889_v22 }
0x1320   : > { %3052 = vmatpush.bf16.msra.mxu1 %v5060_v41 }
0x1323   : > { %v2770_v11 = vpop.permute.xlu1 %2769 }
0x1324   : > { %v2775_v14 = vsel %vm945_vm2, %v2770_v11, 0  ;;  %3053 = vmatpush.bf16.msra.mxu1 %v5059_v60 }
0x1325   : > { %2784 = vmatpush.bf16.msra.mxu0 %v2775_v14 }
0x1328   : > { %4724 = vmatmul.msk.bf16.vlgmr.msra.gmra.mxu0 %vm800_vm1, %v2762_v15  ;;  %3054 = vmatpush.bf16.msra.mxu1 %v5058_v16 }
0x1329   : > { %2879 = vmatpush.bf16.msrb.mxu0 %v2870_v63 }
0x132c   : > { %3055 = vmatpush.bf16.msra.mxu1 %v5057_v17 }
0x132d   : > { %3003 = vmatpush.bf16.msra.mxu0 %v5056_v59 }
0x1392   : > { %v2834_v51 = vpop.f32.mrf.mxu2 }
0x1393   : > { %v2864_v27 = vpack.c.bf16 %v2834_v51, %v2834_v51  ;;  %v3020_v51 = vperm.slane %v5941_v23, 2 }
0x1394   : > { %v2858_v29 = vpop.f32.mrf.mxu3 }
0x1395   : > { %v2865_v30 = vpack.c.bf16 %v2858_v29, %v2858_v29  ;;  %4730 = vmatmul.msk.bf16.vlgmr.msrb.gmra.mxu2 %vm800_vm1, %v2864_v27 }
0x1397   : > { %4731 = vmatmul.msk.bf16.vlgmr.msrb.gmra.mxu3 %vm800_vm1, %v2865_v30 }
0x1398   : > { %v2810_v31 = vpop.f32.mrf.mxu1 }
0x1399   : > { %v2863_v19 = vpack.c.bf16 %v2810_v31, %v2810_v31 }
0x139a   : > { %v2836_v32 = vpop.f32.mrf.mxu2 }
0x139b   : > { %4728 = vmatmul.msk.bf16.vlgmr.msrb.gmra.mxu0 %vm800_vm1, %v2863_v19 }
0x139c   : > { %v2860_v24 = vpop.f32.mrf.mxu3 }
0x13a0   : > { %v2812_v8 = vpop.f32.mrf.mxu1 }
0x13a5   : > { %v2786_v33 = vpop.f32.mrf.mxu0 }
0x13a6   : > { %v2862_v34 = vpack.c.bf16 %v2786_v33, %v2786_v33 }
0x13a8   : > { %4729 = vmatmul.msk.bf16.vlgmr.msrb.gmra.mxu1 %vm800_vm1, %v2862_v34 }
0x13ad   : > { %v2788_v36 = vpop.f32.mrf.mxu0 }
0x13ae   : > { %v5062_v36 = vld [vmem:[%s6508_s9 + $0x48] sm:$0xff] }
0x13af   : > { %3147 = vmatpush.bf16.msra.mxu2 %v5062_v36 }
0x1418   : > { %v2881_v37 = vpop.f32.mrf.mxu0  ;;  %v2919_v53 = vpop.f32.mrf.mxu2 }
0x141a   : > { %v2939_v38 = vpop.f32.mrf.mxu3 }
0x1420   : > { %v2883_v39 = vpop.f32.mrf.mxu0  ;;  %v2921_v40 = vpop.f32.mrf.mxu2 }
0x1421   : > { %v5061_v39 = vld [vmem:[%s6508_s9 + $0x40] sm:$0xff]  ;;  %v5063_v40 = vld [vmem:[%s6508_s9 + $0x50] sm:$0xff] }
0x1422   : > { %v2941_v42 = vpop.f32.mrf.mxu3  ;;  %3148 = vmatpush.bf16.msra.mxu2 %v5061_v39 }
0x1423   : > { %v5065_v42 = vld [vmem:[%s6508_s9 + $0x60] sm:$0xff] }
0x1425   : > { %v2900_v44 = vpop.f32.mrf.mxu1 }
0x1426   : > { %v2901_v45 = vadd.f32 %v2900_v44, %v2881_v37  ;;  %v5064_v37 = vld [vmem:[%s6508_s9 + $0x58] sm:$0xff]  ;;  %v5067_v44 = vld [vmem:[%s6508_s9 + $0x70] sm:$0xff] }
0x1427   : > { %3172 = vmatpush.bf16.msra.mxu3 %v5064_v37 }
0x1428   : > { %v2923_v46 = vadd.f32 %v2919_v53, %v2901_v45  ;;  %v5066_v53 = vld [vmem:[%s6508_s9 + $0x68] sm:$0xff] }
0x142a   : > { %v2943_v48 = vadd.f32 %v2939_v38, %v2923_v46  ;;  %v5068_v38 = vld [vmem:[%s6508_s9 + $0x78] sm:$0xff] }
0x142b   : > { %3222 = vmatpush.bf16.msrb.mxu1 %v5068_v38  ;;  %3173 = vmatpush.bf16.msra.mxu3 %v5063_v40 }
0x142c   : > { %v2945_v49 = vadd.f32 %v2944_v47, %v2943_v48 }
0x142d   : > { %v2902_v35 = vpop.f32.mrf.mxu1 }
0x142e   : > { %v2946_v50 = vadd.f32 %v2945_v49, %v6012_v20  ;;  %v5055_v20 = vld [vmem:[%s6515_s16] sm:$0xff] }
0x142f   : > { %3004 = vmatpush.bf16.msra.mxu0 %v5055_v20  ;;  %3223 = vmatpush.bf16.msrb.mxu1 %v5067_v44 }
0x1430   : > { %v2947_v52 = vsel %vm695_vm0, %v2946_v50, 0.0 }
0x1431   : > { %2948 = vadd.xlane.f32.xlu0 %v2947_v52 }
0x1433   : > { %3197 = vmatpush.bf16.msrb.mxu0 %v5066_v53 }
0x1437   : > { %3198 = vmatpush.bf16.msrb.mxu0 %v5065_v42 }
0x14a4   : > { %v2949_v54 = vpop.xlane.xlu0 %2948 }
0x14a5   : > { %v2950_v55 = vmul.f32 %v2949_v54, %v5627_v18 }
0x14a7   : > { %v2951_v56 = vsub.f32 %v2946_v50, %v2950_v55  ;;  %v3084_v55 = vperm.slane %v5941_v23, 7  ;;  %v5157_v23 = vld [vmem:[%s6509_s10 + $0x6] ss:$0 sm:$0xff] }
0x14a9   : > { %v2952_v57 = vmul.f32 %v2951_v56, %v2951_v56 }
0x14ab   : > { %v2953_v58 = vsel %vm695_vm0, %v2952_v57, 0.0  ;;  %v5156_v57 = vld [vmem:[%s6518_s19 + $0x8] ss:$0 sm:$0xff] }
0x14ac   : > { %2954 = vadd.xlane.f32.xlu2 %v2953_v58 }
0x151f   : > { %v2955_v61 = vpop.xlane.xlu2 %2954 }
0x1520   : > { %v2956_v62 = vmul.f32 %v2955_v61, %v5627_v18 }
0x1522   : > { %v2957_v0 = vadd.f32 1e-05, %v2956_v62 }
0x1524   : > { %5247 = vrsqrt.f32 %v2957_v0  ;;  %vm2964_vm10 = vweird.f32 %v2957_v0 }
0x152a   : > { %v5248_v1 = vpop.eup %5247 }
0x152b   : > { %v2959_v2 = vmul.f32 %v5248_v1, %v2957_v0  ;;  %vm2965_vm9 = vweird.f32 %v5248_v1  ;;  %v5159_v0 = vld [vmem:[%s6509_s10 + $0x4] ss:$0 sm:$0xff] }
0x152c   : > { %vm2966_vm11 = vmor %vm2964_vm10, %vm2965_vm9 }
0x152d   : > { %v2960_v3 = vmul.f32 %v5248_v1, %v2959_v2 }
0x152f   : > { %v2961_v13 = vmul.f32 0.5, %v2960_v3  ;;  %v5158_v3 = vld [vmem:[%s6509_s10 + $0x7] ss:$0 sm:$0xff] }
0x1531   : > { %v2962_v4 = vsub.f32 1.5, %v2961_v13 }
0x1533   : > { %v2963_v5 = vmul.f32 %v5248_v1, %v2962_v4 }
0x1535   : > { %v2967_v7 = vsel %vm2966_vm11, %v5248_v1, %v2963_v5  ;;  %v5160_v1 = vld [vmem:[%s6509_s10 + $0x5] ss:$0 sm:$0xff] }
0x1536   : > { %v2968_v10 = vmul.f32 %v2967_v7, %v2951_v56 }
0x1538   : > { %v2970_v11 = vmul.f32 %v2969_v6, %v2968_v10 }
0x153a   : > { %v2972_v14 = vadd.f32 %v2971_v9, %v2970_v11 }
0x153c   : > { %v2973_v15 = vpack.c.bf16 %v2972_v14, %v2972_v14 }
0x153e   : > { %4740 = vmatmul.msk.bf16.vlgmr.msra.gmra.mxu0 %vm695_vm0, %v2973_v15 }
0x15bb   : > { %v3006_v21 = vpop.f32.mrf.mxu0 }
0x15bc   : > { %v3007_v25 = vadd.f32 %v5155_v12, %v3006_v21 }
0x15be   : > { %v3010_v63 = vmax.f32 %v3007_v25, 0.0 }
0x15c0   : > { %v3011_v26 = vpack.c.bf16 %v3010_v63, %v3010_v63 }
0x15c2   : > { %4757 = vmatmul.msk.bf16.vlgmr.msra.gmra.mxu1 %vm1215_vm7, %v3011_v26 }
0x15c3   : > { %v3008_v22 = vpop.f32.mrf.mxu0 }
0x163f   : > { %v3057_v27 = vpop.f32.mrf.mxu1 }
0x1640   : > { %v3058_v29 = vadd.f32 %v3057_v27, %v3020_v51 }
0x1642   : > { %v3061_v30 = vadd.f32 %v3058_v29, %v2972_v14 }
0x1644   : > { %v3062_v31 = vsel %vm695_vm0, %v3061_v30, 0.0 }
0x1645   : > { %3063 = vadd.xlane.f32.xlu1 %v3062_v31 }
0x1647   : > { %v3059_v19 = vpop.f32.mrf.mxu1 }
0x16b8   : > { %v3064_v32 = vpop.xlane.xlu1 %3063 }
0x16b9   : > { %v3065_v24 = vmul.f32 %v3064_v32, %v5627_v18 }
0x16bb   : > { %v3066_v8 = vsub.f32 %v3061_v30, %v3065_v24 }
0x16bd   : > { %v3067_v33 = vmul.f32 %v3066_v8, %v3066_v8 }
0x16bf   : > { %v3068_v34 = vsel %vm695_vm0, %v3067_v33, 0.0 }
0x16c0   : > { %3069 = vadd.xlane.f32.xlu0 %v3068_v34 }
0x1733   : > { %v3070_v45 = vpop.xlane.xlu0 %3069 }
0x1734   : > { %v3071_v46 = vmul.f32 %v3070_v45, %v5627_v18 }
0x1736   : > { %v3072_v47 = vadd.f32 1e-05, %v3071_v46 }
0x1738   : > { %5249 = vrsqrt.f32 %v3072_v47  ;;  %vm3079_vm13 = vweird.f32 %v3072_v47 }
0x173e   : > { %v5250_v48 = vpop.eup %5249 }
0x173f   : > { %v3074_v49 = vmul.f32 %v5250_v48, %v3072_v47  ;;  %vm3080_vm12 = vweird.f32 %v5250_v48 }
0x1740   : > { %vm3081_vm15 = vmor %vm3079_vm13, %vm3080_vm12 }
0x1741   : > { %v3075_v35 = vmul.f32 %v5250_v48, %v3074_v49 }
0x1743   : > { %v3076_v50 = vmul.f32 0.5, %v3075_v35 }
0x1745   : > { %v3077_v52 = vsub.f32 1.5, %v3076_v50 }
0x1747   : > { %v3078_v54 = vmul.f32 %v5250_v48, %v3077_v52 }
0x1749   : > { %v3082_v56 = vsel %vm3081_vm15, %v5250_v48, %v3078_v54 }
0x174a   : > { %v3083_v58 = vmul.f32 %v3082_v56, %v3066_v8 }
0x174c   : > { %v3085_v59 = vmul.f32 %v3084_v55, %v3083_v58 }
0x174e   : > { %v6181_v20 = vadd.f32 %v5156_v57, %v3085_v59 }
0x1750   : > { %v3091_v41 = vpack.c.bf16 %v6181_v20, %v6181_v20 }
0x1752   : > { %4788 = vmatmul.msk.bf16.vlgmr.msra.gmra.mxu2 %vm695_vm0, %v3091_v41  ;;  %4797 = vmatmul.msk.bf16.vlgmr.msra.gmra.mxu3 %vm695_vm0, %v3091_v41 }
0x1753   : > { %4806 = vmatmul.msk.bf16.vlgmr.msrb.gmra.mxu0 %vm695_vm0, %v3091_v41  ;;  %4815 = vmatmul.msk.bf16.vlgmr.msrb.gmra.mxu1 %vm695_vm0, %v3091_v41 }
0x17d0   : > { %v3200_v61 = vpop.f32.mrf.mxu0  ;;  %v3225_v62 = vpop.f32.mrf.mxu1 }
0x17d1   : > { %v3201_v60 = vadd.f32 %v5157_v23, %v3200_v61  ;;  %v3226_v10 = vadd.f32 %v5158_v3, %v3225_v62 }
0x17d3   : > { %v3236_v2 = vpack.c.bf16 %v3201_v60, %v3201_v60  ;;  %v3237_v21 = vpack.c.bf16 %v3226_v10, %v3226_v10 }
0x17d5   : > { %v3287_v13 = vunpack.c.l.b16 %v3236_v2  ;;  %v3150_v4 = vpop.f32.mrf.mxu2  ;;  %v3175_v5 = vpop.f32.mrf.mxu3  ;;  %v3311_v51 = vunpack.c.l.b16 %v3237_v21 }
0x17d6   : > { %v3151_v6 = vadd.f32 %v5159_v0, %v3150_v4  ;;  %v3176_v7 = vadd.f32 %v5160_v1, %v3175_v5 }
0x17d7   : > { %v3288_v9 = vpack.c.b16 %v3287_v13, %v3287_v13  ;;  %v6207_v27 = vpack.c.b16 %v3311_v51, %v3311_v51 }
0x17d8   : > { %v3234_v11 = vpack.c.bf16 %v3151_v6, %v3151_v6  ;;  %v3235_v14 = vpack.c.bf16 %v3176_v7, %v3176_v7  ;;  %v3202_v15 = vpop.f32.mrf.mxu0  ;;  %v3227_v16 = vpop.f32.mrf.mxu1 }
0x17d9   : > { %3289 = vrot.lane.b32.xlu1 %v3288_v9, %s6564_s3 }
0x17da   : > { %v3239_v17 = vunpack.c.l.b16 %v3234_v11  ;;  %v3263_v12 = vunpack.c.l.b16 %v3235_v14 }
0x17dc   : > { %v3240_v25 = vpack.c.b16 %v3239_v17, %v3239_v17  ;;  %v6202_v63 = vpack.c.b16 %v3263_v12, %v3263_v12 }
0x17dd   : > { %v3152_v26 = vpop.f32.mrf.mxu2  ;;  %v3177_v22 = vpop.f32.mrf.mxu3 }
0x17de   : > { %3265 = vrot.lane.b32.xlu0 %v6202_v63, %s6564_s3  ;;  %3241 = vrot.lane.b32.xlu2 %v3240_v25, %s6564_s3 }
0x17e6   : > { %3313 = vrot.lane.b32.xlu0 %v6207_v27, %s6564_s3 }
0x1838   : > { %v3242_v29 = vpop.permute.xlu2 %3241 }
0x1839   : > { %v3247_v30 = vsel %vm800_vm1, %v3242_v29, 0 }
0x183a   : > { %3256 = vmatpush.bf16.xpose.msrb.mxu2 %v3247_v30 }
0x1841   : > { %4820 = vmatmul.msk.bf16.vlgmr.msrb.gmra.mxu2 %vm800_vm1, %v3234_v11 }
0x184b   : > { %v3290_v31 = vpop.permute.xlu1 %3289 }
0x184c   : > { %v3295_v19 = vsel %vm800_vm1, %v3290_v31, 0 }
0x184d   : > { %3304 = vmatpush.bf16.xpose.msra.mxu0 %v3295_v19 }
0x1850   : > { %v3266_v32 = vpop.permute.xlu0 %3265 }
0x1851   : > { %v3271_v24 = vsel %vm800_vm1, %v3266_v32, 0 }
0x1852   : > { %3280 = vmatpush.bf16.xpose.msrb.mxu3 %v3271_v24 }
0x1854   : > { %4822 = vmatmul.msk.bf16.vlgmr.msra.gmra.mxu0 %vm800_vm1, %v3236_v2 }
0x1858   : > { %v3314_v8 = vpop.permute.xlu0 %3313 }
0x1859   : > { %v3319_v33 = vsel %vm800_vm1, %v3314_v8, 0  ;;  %4821 = vmatmul.msk.bf16.vlgmr.msrb.gmra.mxu3 %vm800_vm1, %v3235_v14 }
0x185a   : > { %3328 = vmatpush.bf16.xpose.msra.mxu1 %v3319_v33  ;;  %v4816_v33 = vld [vmem:[%s6514_s15 + $0x20] sm:$0xf] }
0x1861   : > { %4823 = vmatmul.msk.bf16.vlgmr.msra.gmra.mxu1 %vm800_vm1, %v3237_v21 }
0x18c4   : > { %v3258_v34 = vpop.f32.mrf.mxu2 }
0x18c5   : > { %v3334_v36 = vsel %vm5871_vm14, %v3258_v34, -1e+09  ;;  %v3497_v34 = vsel %vm945_vm2, %v4816_v33, 0 }
0x18c6   : > { %v3338_v37 = vsel %vm800_vm1, %v3334_v36, -inf }
0x18c7   : > { %3339 = vmax.xlane.f32.xlu2 %v3338_v37 }
0x18cc   : > { %v3260_v53 = vpop.f32.mrf.mxu2 }
0x18cd   : > { %v4819_v53 = vld [vmem:[%s6514_s15 + $0x2c] sm:$0xf] }
0x18d1   : > { %v3306_v38 = vpop.f32.mrf.mxu0 }
0x18d2   : > { %v3336_v39 = vsel %vm5871_vm14, %v3306_v38, -1e+09  ;;  %v3536_v38 = vsel %vm945_vm2, %v4819_v53, 0 }
0x18d3   : > { %v3344_v40 = vsel %vm800_vm1, %v3336_v39, -inf }
0x18d4   : > { %3345 = vmax.xlane.f32.xlu0 %v3344_v40 }
0x18d9   : > { %v3308_v42 = vpop.f32.mrf.mxu0 }
0x18da   : > { %v4817_v42 = vld [vmem:[%s6514_s15 + $0x24] sm:$0xf] }
0x18dc   : > { %v3282_v44 = vpop.f32.mrf.mxu3 }
0x18dd   : > { %v3335_v45 = vsel %vm5871_vm14, %v3282_v44, -1e+09  ;;  %v3478_v44 = vsel %vm945_vm2, %v4817_v42, 0 }
0x18de   : > { %v3330_v46 = vpop.f32.mrf.mxu1  ;;  %v3341_v47 = vsel %vm800_vm1, %v3335_v45, -inf }
0x18df   : > { %v3337_v48 = vsel %vm5871_vm14, %v3330_v46, -1e+09  ;;  %3342 = vmax.xlane.f32.xlu1 %v3341_v47 }
0x18e0   : > { %v3347_v49 = vsel %vm800_vm1, %v3337_v48, -inf }
0x18e1   : > { %3348 = vmax.xlane.f32.xlu2 %v3347_v49 }
0x18e4   : > { %v3284_v35 = vpop.f32.mrf.mxu3 }
0x18e6   : > { %v3332_v50 = vpop.f32.mrf.mxu1 }
0x18e8   : > { %3386 = vrot.lane.b32.xlu0 %v3240_v25, %s6565_s27 }
0x18f0   : > { %3428 = vrot.lane.b32.xlu0 %v3288_v9, %s6565_s27 }
0x193a   : > { %v3340_v52 = vpop.xlane.xlu2 %3339 }
0x193b   : > { %v3350_v54 = vsub.f32 %v3334_v36, %v3340_v52  ;;  %v4818_v36 = vld [vmem:[%s6514_s15 + $0x28] sm:$0xf] }
0x193c   : > { %v3516_v37 = vsel %vm945_vm2, %v4818_v36, 0 }
0x193d   : > { %v3354_v55 = vmul.f32 1.442695, %v3350_v54 }
0x193f   : > { %5251 = vpow2.f32 %v3354_v55 }
0x1945   : > { %v5252_v56 = vpop.eup %5251 }
0x1946   : > { %v3362_v57 = vsel %vm800_vm1, %v5252_v56, 0.0 }
0x1947   : > { %v3346_v58 = vpop.xlane.xlu0 %3345  ;;  %3363 = vadd.xlane.f32.xlu1 %v3362_v57 }
0x1948   : > { %v3352_v43 = vsub.f32 %v3336_v39, %v3346_v58 }
0x194a   : > { %v3358_v59 = vmul.f32 1.442695, %v3352_v43 }
0x194c   : > { %5253 = vpow2.f32 %v3358_v59 }
0x1952   : > { %v5254_v41 = vpop.eup %5253  ;;  %v3343_v61 = vpop.xlane.xlu1 %3342 }
0x1953   : > { %v3368_v23 = vsel %vm800_vm1, %v5254_v41, 0.0  ;;  %v3351_v0 = vsub.f32 %v3335_v45, %v3343_v61  ;;  %v6272_v61 = vld [vmem:[%s6518_s19 + $0x10] sm:$0xff] }
0x1954   : > { %3369 = vadd.xlane.f32.xlu2 %v3368_v23  ;;  %v3349_v62 = vpop.xlane.xlu2 %3348  ;;  %v3577_v53 = vperm.slane %v6272_v61, 3 }
0x1955   : > { %v3353_v60 = vsub.f32 %v3337_v48, %v3349_v62  ;;  %v3356_v3 = vmul.f32 1.442695, %v3351_v0  ;;  %v3552_v0 = vperm.slane %v6272_v61, 0 }
0x1957   : > { %v3360_v1 = vmul.f32 1.442695, %v3353_v60 }
0x1959   : > { %5255 = vpow2.f32 %v3360_v1 }
0x195a   : > { %v3387_v2 = vpop.permute.xlu0 %3386  ;;  %5257 = vpow2.f32 %v3356_v3 }
0x195b   : > { %v3392_v13 = vsel %vm945_vm2, %v3387_v2, 0 }
0x195c   : > { %3401 = vmatpush.bf16.msra.mxu2 %v3392_v13 }
0x195f   : > { %v5256_v4 = vpop.eup %5255 }
0x1960   : > { %3407 = vrot.lane.b32.xlu1 %v6202_v63, %s6565_s27  ;;  %v3371_v5 = vsel %vm800_vm1, %v5256_v4, 0.0  ;;  %v5258_v9 = vpop.eup %5257  ;;  %3487 = vmatpush.bf16.msrb.mxu2 %v3478_v44 }
0x1961   : > { %3372 = vadd.xlane.f32.xlu2 %v3371_v5  ;;  %v3365_v10 = vsel %vm800_vm1, %v5258_v9, 0.0 }
0x1962   : > { %v3429_v6 = vpop.permute.xlu0 %3428 }
0x1963   : > { %v3434_v7 = vsel %vm945_vm2, %v3429_v6, 0 }
0x1964   : > { %3443 = vmatpush.bf16.msrb.mxu0 %v3434_v7 }
0x1968   : > { %3525 = vmatpush.bf16.msra.mxu0 %v3516_v37 }
0x1969   : > { %3366 = vadd.xlane.f32.xlu2 %v3365_v10 }
0x1981   : > { %3449 = vrot.lane.b32.xlu2 %v6207_v27, %s6565_s27  ;;  %s633_s27 = scalar_lea.vmem [#allocation2], %s4407_s4  ;;  %s5309_s4 = scalar_lea.hbm %s6571_s20, 16 }
0x1982   : > { %s4329_s6 = sshll.u32 %s633_s27, 4  ;;  %s4330_s6 = int_to_ptr.vmem [resolvable:$true] %s4329_s6 }
0x19ba   : > { %v3364_v11 = vpop.xlane.xlu1 %3363 }
0x19bb   : > { %5259 = vrcp.f32 %v3364_v11  ;;  %v5070_v11 = vld [vmem:[%s6510_s11 + $0x48] sm:$0xff] }
0x19c1   : > { %v5260_v14 = vpop.eup %5259 }
0x19c2   : > { %v3378_v15 = vmul.f32 %v5260_v14, %v5252_v56  ;;  %v5072_v14 = vld [vmem:[%s6510_s11 + $0x58] sm:$0xff] }
0x19c4   : > { %v3382_v16 = vpack.c.bf16 %v3378_v15, %v3378_v15  ;;  %v5076_v15 = vld [vmem:[%s6510_s11 + $0x78] sm:$0xff] }
0x19c6   : > { %4824 = vmatmul.msk.bf16.vlgmr.msra.gmra.mxu2 %vm800_vm1, %v3382_v16  ;;  %v5069_v16 = vld [vmem:[%s6510_s11 + $0x40] sm:$0xff] }
0x19c7   : > { %v3370_v17 = vpop.xlane.xlu2 %3369  ;;  %3637 = vmatpush.bf16.msra.mxu2 %v5070_v11 }
0x19c8   : > { %5261 = vrcp.f32 %v3370_v17  ;;  %v5071_v17 = vld [vmem:[%s6510_s11 + $0x50] sm:$0xff] }
0x19cb   : > { %3638 = vmatpush.bf16.msra.mxu2 %v5069_v16 }
0x19ce   : > { %v5262_v12 = vpop.eup %5261 }
0x19cf   : > { %v3380_v21 = vmul.f32 %v5262_v12, %v5254_v41  ;;  %v5073_v12 = vld [vmem:[%s6510_s11 + $0x60] sm:$0xff] }
0x19d1   : > { %v3384_v25 = vpack.c.bf16 %v3380_v21, %v3380_v21  ;;  %v5075_v21 = vld [vmem:[%s6510_s11 + $0x70] sm:$0xff] }
0x19d2   : > { %v3408_v63 = vpop.permute.xlu1 %3407 }
0x19d3   : > { %v3413_v26 = vsel %vm945_vm2, %v3408_v63, 0  ;;  %4826 = vmatmul.msk.bf16.vlgmr.msrb.gmra.mxu0 %vm800_vm1, %v3384_v25  ;;  %v5078_v63 = vld [vmem:[%s6512_s13 + $0x48] sm:$0xff] }
0x19d4   : > { %3422 = vmatpush.bf16.msra.mxu3 %v3413_v26  ;;  %v3373_v22 = vpop.xlane.xlu2 %3372  ;;  %v5080_v26 = vld [vmem:[%s6512_s13 + $0x58] sm:$0xff] }
0x19d5   : > { %5263 = vrcp.f32 %v3373_v22  ;;  %v5082_v22 = vld [vmem:[%s6512_s13 + $0x68] sm:$0xff] }
0x19d8   : > { %3506 = vmatpush.bf16.msrb.mxu3 %v3497_v34 }
0x19db   : > { %v5264_v27 = vpop.eup %5263 }
0x19dc   : > { %v3367_v51 = vpop.xlane.xlu2 %3366  ;;  %v3381_v30 = vmul.f32 %v5264_v27, %v5256_v4  ;;  %v5084_v27 = vld [vmem:[%s6512_s13 + $0x78] sm:$0xff] }
0x19dd   : > { %5265 = vrcp.f32 %v3367_v51 }
0x19de   : > { %v3385_v8 = vpack.c.bf16 %v3381_v30, %v3381_v30  ;;  %v5079_v30 = vld [vmem:[%s6512_s13 + $0x50] sm:$0xff] }
0x19e3   : > { %v5266_v29 = vpop.eup %5265 }
0x19e4   : > { %v3379_v31 = vmul.f32 %v5266_v29, %v5258_v9  ;;  %v3450_v19 = vpop.permute.xlu2 %3449  ;;  %v5077_v29 = vld [vmem:[%s6512_s13 + $0x40] sm:$0xff] }
0x19e5   : > { %v3455_v32 = vsel %vm945_vm2, %v3450_v19, 0  ;;  %v5081_v19 = vld [vmem:[%s6512_s13 + $0x60] sm:$0xff] }
0x19e6   : > { %v3383_v24 = vpack.c.bf16 %v3379_v31, %v3379_v31  ;;  %3464 = vmatpush.bf16.msrb.mxu1 %v3455_v32  ;;  %v5083_v32 = vld [vmem:[%s6512_s13 + $0x70] sm:$0xff] }
0x19e8   : > { %4825 = vmatmul.msk.bf16.vlgmr.msra.gmra.mxu3 %vm800_vm1, %v3383_v24 }
0x19e9   : > { %4827 = vmatmul.msk.bf16.vlgmr.msrb.gmra.mxu1 %vm800_vm1, %v3385_v8  ;;  %3662 = vmatpush.bf16.msra.mxu3 %v5072_v14 }
0x19ea   : > { %3545 = vmatpush.bf16.msra.mxu1 %v3536_v38 }
0x19ed   : > { %3663 = vmatpush.bf16.msra.mxu3 %v5071_v17 }
0x19ee   : > { %3712 = vmatpush.bf16.msrb.mxu1 %v5076_v15 }
0x19f2   : > { %3713 = vmatpush.bf16.msrb.mxu1 %v5075_v21 }
0x1a49   : > { %v3403_v39 = vpop.f32.mrf.mxu2 }
0x1a4a   : > { %v3470_v40 = vpack.c.bf16 %v3403_v39, %v3403_v39  ;;  %v3579_v39 = vperm.slane %v6272_v61, 4 }
0x1a4c   : > { %4829 = vmatmul.msk.bf16.vlgmr.msrb.gmra.mxu3 %vm800_vm1, %v3470_v40 }
0x1a4d   : > { %3796 = vmatpush.bf16.msrb.mxu3 %v5080_v26 }
0x1a50   : > { %v3445_v45 = vpop.f32.mrf.mxu0 }
0x1a51   : > { %v3472_v46 = vpack.c.bf16 %v3445_v45, %v3445_v45  ;;  %v3405_v47 = vpop.f32.mrf.mxu2  ;;  %3797 = vmatpush.bf16.msrb.mxu3 %v5079_v30 }
0x1a53   : > { %4830 = vmatmul.msk.bf16.vlgmr.msra.gmra.mxu0 %vm800_vm1, %v3472_v46 }
0x1a58   : > { %v3447_v48 = vpop.f32.mrf.mxu0 }
0x1a66   : > { %v3466_v49 = vpop.f32.mrf.mxu1 }
0x1a67   : > { %v3473_v35 = vpack.c.bf16 %v3466_v49, %v3466_v49 }
0x1a69   : > { %4831 = vmatmul.msk.bf16.vlgmr.msra.gmra.mxu1 %vm800_vm1, %v3473_v35 }
0x1a6a   : > { %3846 = vmatpush.bf16.msra.mxu1 %v5084_v27 }
0x1a6b   : > { %v3424_v50 = vpop.f32.mrf.mxu3 }
0x1a6c   : > { %v3471_v52 = vpack.c.bf16 %v3424_v50, %v3424_v50 }
0x1a6e   : > { %v3468_v54 = vpop.f32.mrf.mxu1  ;;  %4828 = vmatmul.msk.bf16.vlgmr.msrb.gmra.mxu2 %vm800_vm1, %v3471_v52  ;;  %3847 = vmatpush.bf16.msra.mxu1 %v5083_v32 }
0x1a6f   : > { %3771 = vmatpush.bf16.msrb.mxu2 %v5078_v63 }
0x1a73   : > { %v3426_v55 = vpop.f32.mrf.mxu3  ;;  %3772 = vmatpush.bf16.msrb.mxu2 %v5077_v29 }
0x1a74   : > { %v5165_v55 = vld [vmem:[%s6513_s14 + $0x6] ss:$0 sm:$0xff] }
0x1acf   : > { %v3508_v56 = vpop.f32.mrf.mxu3 }
0x1ad0   : > { %v3527_v57 = vpop.f32.mrf.mxu0 }
0x1ad7   : > { %v3510_v58 = vpop.f32.mrf.mxu3 }
0x1ad8   : > { %v3529_v43 = vpop.f32.mrf.mxu0 }
0x1ae6   : > { %v3547_v59 = vpop.f32.mrf.mxu1 }
0x1aee   : > { %v3549_v41 = vpop.f32.mrf.mxu1 }
0x1aef   : > { %v5168_v41 = vld [vmem:[%s6513_s14 + $0x5] ss:$0 sm:$0xff] }
0x1af1   : > { %v3489_v23 = vpop.f32.mrf.mxu2 }
0x1af2   : > { %v3509_v62 = vadd.f32 %v3508_v56, %v3489_v23  ;;  %v5166_v56 = vld [vmem:[%s6513_s14 + $0x7] ss:$0 sm:$0xff]  ;;  %v5161_v23 = vld [vmem:[%s6511_s12 + $0x6] ss:$0 sm:$0xff] }
0x1af4   : > { %v3531_v60 = vadd.f32 %v3527_v57, %v3509_v62  ;;  %v5162_v62 = vld [vmem:[%s6511_s12 + $0x7] ss:$0 sm:$0xff] }
0x1af6   : > { %v3551_v1 = vadd.f32 %v3547_v59, %v3531_v60  ;;  %v5167_v59 = vld [vmem:[%s6513_s14 + $0x4] ss:$0 sm:$0xff] }
0x1af8   : > { %v3553_v2 = vadd.f32 %v3552_v0, %v3551_v1 }
0x1af9   : > { %v3491_v3 = vpop.f32.mrf.mxu2 }
0x1afa   : > { %v3554_v13 = vadd.f32 %v3553_v2, %v6181_v20  ;;  %v5074_v20 = vld [vmem:[%s6510_s11 + $0x68] sm:$0xff] }
0x1afb   : > { %3687 = vmatpush.bf16.msrb.mxu0 %v5074_v20 }
0x1afc   : > { %v3555_v4 = vsel %vm695_vm0, %v3554_v13, 0.0 }
0x1afd   : > { %3556 = vadd.xlane.f32.xlu0 %v3555_v4 }
0x1aff   : > { %3688 = vmatpush.bf16.msrb.mxu0 %v5073_v12 }
0x1b03   : > { %3821 = vmatpush.bf16.msra.mxu0 %v5082_v22 }
0x1b07   : > { %3822 = vmatpush.bf16.msra.mxu0 %v5081_v19 }
0x1b70   : > { %v3557_v5 = vpop.xlane.xlu0 %3556 }
0x1b71   : > { %v3558_v6 = vmul.f32 %v3557_v5, %v5627_v18 }
0x1b73   : > { %v3559_v7 = vsub.f32 %v3554_v13, %v3558_v6 }
0x1b75   : > { %v3560_v9 = vmul.f32 %v3559_v7, %v3559_v7 }
0x1b77   : > { %v3561_v10 = vsel %vm695_vm0, %v3560_v9, 0.0  ;;  %v5163_v9 = vld [vmem:[%s6511_s12 + $0x4] ss:$0 sm:$0xff] }
0x1b78   : > { %3562 = vadd.xlane.f32.xlu1 %v3561_v10  ;;  %v5164_v10 = vld [vmem:[%s6511_s12 + $0x5] ss:$0 sm:$0xff] }
0x1beb   : > { %v3563_v25 = vpop.xlane.xlu1 %3562 }
0x1bec   : > { %v3564_v51 = vmul.f32 %v3563_v25, %v5627_v18 }
0x1bee   : > { %v3565_v31 = vadd.f32 1e-05, %v3564_v51 }
0x1bf0   : > { %5267 = vrsqrt.f32 %v3565_v31  ;;  %vm3572_vm3 = vweird.f32 %v3565_v31 }
0x1bf6   : > { %v5268_v24 = vpop.eup %5267 }
0x1bf7   : > { %v3567_v8 = vmul.f32 %v5268_v24, %v3565_v31  ;;  %vm3573_vm14 = vweird.f32 %v5268_v24 }
0x1bf8   : > { %vm3574_vm4 = vmor %vm3572_vm3, %vm3573_vm14 }
0x1bf9   : > { %v3568_v33 = vmul.f32 %v5268_v24, %v3567_v8 }
0x1bfb   : > { %v3569_v34 = vmul.f32 0.5, %v3568_v33 }
0x1bfd   : > { %v3570_v36 = vsub.f32 1.5, %v3569_v34 }
0x1bff   : > { %v3571_v37 = vmul.f32 %v5268_v24, %v3570_v36 }
0x1c01   : > { %v3575_v38 = vsel %vm3574_vm4, %v5268_v24, %v3571_v37 }
0x1c02   : > { %v3576_v40 = vmul.f32 %v3575_v38, %v3559_v7 }
0x1c04   : > { %v3578_v42 = vmul.f32 %v3577_v53, %v3576_v40 }
0x1c06   : > { %v6330_v44 = vadd.f32 %v3579_v39, %v3578_v42 }
0x1c08   : > { %v3581_v45 = vpack.c.bf16 %v6330_v44, %v6330_v44 }
0x1c0a   : > { %4860 = vmatmul.msk.bf16.vlgmr.msra.gmra.mxu2 %vm695_vm0, %v3581_v45  ;;  %4869 = vmatmul.msk.bf16.vlgmr.msra.gmra.mxu3 %vm695_vm0, %v3581_v45 }
0x1c0b   : > { %4878 = vmatmul.msk.bf16.vlgmr.msrb.gmra.mxu0 %vm695_vm0, %v3581_v45  ;;  %4887 = vmatmul.msk.bf16.vlgmr.msrb.gmra.mxu1 %vm695_vm0, %v3581_v45 }
0x1c1a   : > { %4916 = vmatmul.msk.bf16.vlgmr.msrb.gmra.mxu2 %vm695_vm0, %v6023_v28  ;;  %4925 = vmatmul.msk.bf16.vlgmr.msrb.gmra.mxu3 %vm695_vm0, %v6023_v28 }
0x1c1b   : > { %4934 = vmatmul.msk.bf16.vlgmr.msra.gmra.mxu0 %vm695_vm0, %v6023_v28  ;;  %4943 = vmatmul.msk.bf16.vlgmr.msra.gmra.mxu1 %vm695_vm0, %v6023_v28 }
0x1c88   : > { %v3690_v46 = vpop.f32.mrf.mxu0  ;;  %v3715_v47 = vpop.f32.mrf.mxu1 }
0x1c89   : > { %v3691_v6 = vadd.f32 %v5161_v23, %v3690_v46  ;;  %v3716_v7 = vadd.f32 %v5162_v62, %v3715_v47 }
0x1c8b   : > { %v3860_v12 = vpack.c.bf16 %v3691_v6, %v3691_v6  ;;  %v3861_v21 = vpack.c.bf16 %v3716_v7, %v3716_v7 }
0x1c8d   : > { %v3640_v48 = vpop.f32.mrf.mxu2  ;;  %v3665_v49 = vpop.f32.mrf.mxu3 }
0x1c8e   : > { %v3641_v25 = vadd.f32 %v5163_v9, %v3640_v48  ;;  %v3666_v63 = vadd.f32 %v5164_v10, %v3665_v49 }
0x1c90   : > { %v3692_v35 = vpop.f32.mrf.mxu0  ;;  %v3717_v50 = vpop.f32.mrf.mxu1  ;;  %v3858_v51 = vpack.c.bf16 %v3641_v25, %v3641_v25  ;;  %v3859_v27 = vpack.c.bf16 %v3666_v63, %v3666_v63 }
0x1c95   : > { %v3642_v52 = vpop.f32.mrf.mxu2  ;;  %v3667_v54 = vpop.f32.mrf.mxu3 }
0x1c98   : > { %v3824_v57 = vpop.f32.mrf.mxu0  ;;  %v3849_v58 = vpop.f32.mrf.mxu1 }
0x1c99   : > { %v3825_v43 = vadd.f32 %v5165_v55, %v3824_v57  ;;  %v3850_v28 = vadd.f32 %v5166_v56, %v3849_v58 }
0x1c9b   : > { %v6364_v60 = vpack.c.bf16 %v3825_v43, %v3825_v43  ;;  %v3865_v0 = vpack.c.bf16 %v3850_v28, %v3850_v28 }
0x1c9d   : > { %v3908_v1 = vsel %vm800_vm1, %v6364_v60, 0  ;;  %v3927_v2 = vsel %vm800_vm1, %v3865_v0, 0  ;;  %v3774_v3 = vpop.f32.mrf.mxu2  ;;  %v3799_v13 = vpop.f32.mrf.mxu3  ;;  %v4063_v40 = vunpack.c.l.b16 %v3865_v0  ;;  %v4039_v6 = vunpack.c.l.b16 %v6364_v60 }
0x1c9e   : > { %v3775_v4 = vadd.f32 %v5167_v59, %v3774_v3  ;;  %v3800_v5 = vadd.f32 %v5168_v41, %v3799_v13  ;;  %3917 = vmatpush.bf16.xpose.msrb.mxu0 %v3908_v1  ;;  %3936 = vmatpush.bf16.xpose.msrb.mxu1 %v3927_v2 }
0x1c9f   : > { %v4064_v42 = vpack.c.b16 %v4063_v40, %v4063_v40  ;;  %v4040_v7 = vpack.c.b16 %v4039_v6, %v4039_v6 }
0x1ca0   : > { %v3862_v11 = vpack.c.bf16 %v3775_v4, %v3775_v4  ;;  %v6375_v14 = vpack.c.bf16 %v3800_v5, %v3800_v5  ;;  %v3826_v20 = vpop.f32.mrf.mxu0  ;;  %v3851_v15 = vpop.f32.mrf.mxu1 }
0x1ca2   : > { %v3870_v16 = vsel %vm800_vm1, %v3862_v11, 0  ;;  %v3889_v17 = vsel %vm800_vm1, %v6375_v14, 0  ;;  %v3991_v38 = vunpack.c.l.b16 %v3862_v11  ;;  %v4015_v4 = vunpack.c.l.b16 %v6375_v14 }
0x1ca3   : > { %3879 = vmatpush.bf16.xpose.msra.mxu2 %v3870_v16  ;;  %3898 = vmatpush.bf16.xpose.msra.mxu3 %v3889_v17 }
0x1ca4   : > { %v3992_v39 = vpack.c.b16 %v3991_v38, %v3991_v38  ;;  %v4016_v5 = vpack.c.b16 %v4015_v4, %v4015_v4 }
0x1ca5   : > { %4950 = vmatmul.msk.bf16.vlgmr.msrb.gmra.mxu0 %vm800_vm1, %v3860_v12  ;;  %4951 = vmatmul.msk.bf16.vlgmr.msrb.gmra.mxu1 %vm800_vm1, %v3861_v21  ;;  %v3776_v26 = vpop.f32.mrf.mxu2  ;;  %v3801_v22 = vpop.f32.mrf.mxu3 }
0x1caa   : > { %4948 = vmatmul.msk.bf16.vlgmr.msra.gmra.mxu2 %vm800_vm1, %v3858_v51  ;;  %4949 = vmatmul.msk.bf16.vlgmr.msra.gmra.mxu3 %vm800_vm1, %v3859_v27 }
0x1d22   : > { %v3919_v29 = vpop.f32.mrf.mxu0  ;;  %v3938_v30 = vpop.f32.mrf.mxu1 }
0x1d23   : > { %v3948_v31 = vsel %vm800_vm1, %v3919_v29, -inf  ;;  %v3951_v53 = vsel %vm800_vm1, %v3938_v30, -inf }
0x1d24   : > { %3949 = vmax.xlane.f32.xlu1 %v3948_v31 }
0x1d2a   : > { %v3921_v19 = vpop.f32.mrf.mxu0  ;;  %v3940_v32 = vpop.f32.mrf.mxu1 }
0x1d2b   : > { %v4944_v19 = vld [vmem:[%s6514_s15 + $0x30] sm:$0xf] }
0x1d2c   : > { %v4113_v32 = vsel %vm945_vm2, %v4944_v19, 0  ;;  %v5169_v19 = vld [vmem:[%s6516_s17 + $0x1] ss:$0 sm:$0xff] }
0x1d2d   : > { %v3881_v24 = vpop.f32.mrf.mxu2  ;;  %v3900_v8 = vpop.f32.mrf.mxu3 }
0x1d2e   : > { %v3945_v33 = vsel %vm800_vm1, %v3900_v8, -inf  ;;  %v3942_v34 = vsel %vm800_vm1, %v3881_v24, -inf }
0x1d2f   : > { %3946 = vmax.xlane.f32.xlu0 %v3945_v33  ;;  %3943 = vmax.xlane.f32.xlu2 %v3942_v34  ;;  %v4945_v33 = vld [vmem:[%s6514_s15 + $0x34] sm:$0xf] }
0x1d30   : > { %v4094_v34 = vsel %vm945_vm2, %v4945_v33, 0 }
0x1d35   : > { %v3883_v36 = vpop.f32.mrf.mxu2  ;;  %v3902_v37 = vpop.f32.mrf.mxu3 }
0x1d36   : > { %v4946_v36 = vld [vmem:[%s6514_s15 + $0x38] sm:$0xf] }
0x1d37   : > { %3952 = vmax.xlane.f32.xlu0 %v3951_v53  ;;  %v4132_v37 = vsel %vm945_vm2, %v4946_v36, 0  ;;  %v4247_v36 = vperm.slane %v6272_v61, 2 }
0x1d47   : > { %3993 = vrot.lane.b32.xlu2 %v3992_v39, %s6564_s3 }
0x1d4f   : > { %4065 = vrot.lane.b32.xlu2 %v4064_v42, %s6564_s3 }
0x1d97   : > { %v3950_v45 = vpop.xlane.xlu1 %3949 }
0x1d98   : > { %v3956_v46 = vsub.f32 %v3919_v29, %v3950_v45 }
0x1d9a   : > { %v3962_v47 = vmul.f32 1.442695, %v3956_v46 }
0x1d9c   : > { %5269 = vpow2.f32 %v3962_v47 }
0x1da2   : > { %v5270_v48 = vpop.eup %5269  ;;  %v3947_v49 = vpop.xlane.xlu0 %3946 }
0x1da3   : > { %v3944_v35 = vpop.xlane.xlu2 %3943  ;;  %v3972_v52 = vsel %vm800_vm1, %v5270_v48, 0.0  ;;  %v3955_v43 = vsub.f32 %v3900_v8, %v3947_v49 }
0x1da4   : > { %v3954_v50 = vsub.f32 %v3881_v24, %v3944_v35  ;;  %3973 = vadd.xlane.f32.xlu0 %v3972_v52  ;;  %v4947_v24 = vld [vmem:[%s6514_s15 + $0x3c] sm:$0xf] }
0x1da5   : > { %v3960_v23 = vmul.f32 1.442695, %v3955_v43  ;;  %v4152_v8 = vsel %vm945_vm2, %v4947_v24, 0 }
0x1da6   : > { %v3958_v54 = vmul.f32 1.442695, %v3954_v50 }
0x1da8   : > { %5271 = vpow2.f32 %v3958_v54 }
0x1daa   : > { %v3953_v55 = vpop.xlane.xlu0 %3952 }
0x1dab   : > { %v3994_v56 = vpop.permute.xlu2 %3993  ;;  %v3957_v57 = vsub.f32 %v3938_v30, %v3953_v55 }
0x1dac   : > { %v3999_v58 = vsel %vm945_vm2, %v3994_v56, 0 }
0x1dad   : > { %4008 = vmatpush.bf16.msrb.mxu2 %v3999_v58  ;;  %v3964_v28 = vmul.f32 1.442695, %v3957_v57 }
0x1dae   : > { %v5272_v59 = vpop.eup %5271 }
0x1daf   : > { %5273 = vpow2.f32 %v3964_v28  ;;  %v3966_v41 = vsel %vm800_vm1, %v5272_v59, 0.0 }
0x1db0   : > { %3967 = vadd.xlane.f32.xlu1 %v3966_v41  ;;  %5275 = vpow2.f32 %v3960_v23 }
0x1db1   : > { %4103 = vmatpush.bf16.msra.mxu2 %v4094_v34 }
0x1db3   : > { %v4066_v62 = vpop.permute.xlu2 %4065 }
0x1db4   : > { %v4071_v0 = vsel %vm945_vm2, %v4066_v62, 0 }
0x1db5   : > { %4080 = vmatpush.bf16.msra.mxu1 %v4071_v0  ;;  %v5274_v1 = vpop.eup %5273 }
0x1db6   : > { %v3975_v2 = vsel %vm800_vm1, %v5274_v1, 0.0  ;;  %v5276_v3 = vpop.eup %5275 }
0x1db7   : > { %3976 = vadd.xlane.f32.xlu0 %v3975_v2  ;;  %v3969_v13 = vsel %vm800_vm1, %v5276_v3, 0.0 }
0x1db9   : > { %4161 = vmatpush.bf16.msrb.mxu1 %v4152_v8 }
0x1dbf   : > { %3970 = vadd.xlane.f32.xlu0 %v3969_v13 }
0x1dc9   : > { %4017 = vrot.lane.b32.xlu1 %v4016_v5, %s6564_s3 }
0x1dd3   : > { %4041 = vrot.lane.b32.xlu0 %v4040_v7, %s6564_s3  ;;  %v5086_v7 = vld [vmem:[%s6515_s16 + $0x18] sm:$0xff]  ;;  %s5000_s3 = sshll.u32 %s5482_s2, 3  ;;  %s4317_s2 = scalar_lea.sflag [#allocation3], %s631_s5 }
0x1dd4   : > { %s4327_s30 = scalar_lea.hbm %s6570_s1, %s5000_s3 }
0x1dd5   : > { %s4331_s7 = sshll.u32 %s4327_s30, 4  ;;  %s4332_s7 = int_to_ptr.hbm [resolvable:$true] %s4331_s7 }
0x1dd6   : > { %s5303_s8 = sshra.s32 %s4332_s7, 4  ;;  %s5304_s8 = int_to_ptr.hbm [resolvable:$true] %s5303_s8 }
0x1dd7   : > { %s5305_s3 = scalar_lea.hbm %s5304_s8, 8  ;;  %p5310_p0 = scmp.lt.s32.totalorder %s5304_s8, %s6571_s20 }
0x1dd8   : > { %p5306_p11 = scmp.ne.s32.totalorder %s5304_s8, %s5305_s3  ;;  %p5311_p1 = scmp.lt.s32.totalorder %s5309_s4, %s5305_s3 }
0x1dda   : > { %p5307_p12 = pnand %p5306_p11, %p5499_p5  ;;  %p5312_p2 = por %p5311_p1, %p5310_p0 }
0x1ddc   : > { %p5308_p13 = pneg %p5307_p12 }
0x1dde   : > { %p5313_p3 = pnand %p5312_p2, %p5308_p13 }
0x1e17   : > { %v3974_v9 = vpop.xlane.xlu0 %3973 }
0x1e23   : > { %v3968_v10 = vpop.xlane.xlu1 %3967 }
0x1e24   : > { %5277 = vrcp.f32 %v3968_v10 }
0x1e2a   : > { %v5278_v11 = vpop.eup %5277  ;;  %v3977_v20 = vpop.xlane.xlu0 %3976 }
0x1e2b   : > { %v3982_v15 = vmul.f32 %v5278_v11, %v5272_v59  ;;  %5279 = vrcp.f32 %v3977_v20  ;;  %v4168_v59 = vperm.slane %v6272_v61, 1  ;;  %v5089_v20 = vld [vmem:[%s6517_s18 + $0x30] sm:$0xff] }
0x1e2d   : > { %v3986_v16 = vpack.c.bf16 %v3982_v15, %v3982_v15 }
0x1e2f   : > { %4952 = vmatmul.msk.bf16.vlgmr.msrb.gmra.mxu2 %vm800_vm1, %v3986_v16 }
0x1e30   : > { %4229 = vmatpush.bf16.msrb.mxu2 %v5086_v7 }
0x1e31   : > { %v5280_v17 = vpop.eup %5279 }
0x1e32   : > { %v3985_v14 = vmul.f32 %v5280_v17, %v5274_v1  ;;  %v3971_v12 = vpop.xlane.xlu0 %3970 }
0x1e33   : > { %5281 = vrcp.f32 %v3971_v12 }
0x1e34   : > { %v3989_v21 = vpack.c.bf16 %v3985_v14, %v3985_v14  ;;  %5283 = vrcp.f32 %v3974_v9  ;;  %v5090_v9 = vld [vmem:[%s6517_s18 + $0x38] sm:$0xff] }
0x1e36   : > { %4955 = vmatmul.msk.bf16.vlgmr.msra.gmra.mxu1 %vm800_vm1, %v3989_v21 }
0x1e39   : > { %v5282_v60 = vpop.eup %5281 }
0x1e3a   : > { %v3983_v25 = vmul.f32 %v5282_v60, %v5276_v3  ;;  %v5284_v51 = vpop.eup %5283 }
0x1e3b   : > { %v4018_v63 = vpop.permute.xlu1 %4017  ;;  %v3984_v27 = vmul.f32 %v5284_v51, %v5270_v48 }
0x1e3c   : > { %v3987_v26 = vpack.c.bf16 %v3983_v25, %v3983_v25  ;;  %v4023_v22 = vsel %vm945_vm2, %v4018_v63, 0  ;;  %v4193_v25 = vperm.slane %v6272_v61, 5 }
0x1e3d   : > { %4032 = vmatpush.bf16.msrb.mxu3 %v4023_v22  ;;  %v3988_v31 = vpack.c.bf16 %v3984_v27, %v3984_v27 }
0x1e40   : > { %4953 = vmatmul.msk.bf16.vlgmr.msrb.gmra.mxu3 %vm800_vm1, %v3987_v26  ;;  %v4195_v26 = vperm.slane %v6272_v61, 6 }
0x1e41   : > { %4122 = vmatpush.bf16.msra.mxu3 %v4113_v32 }
0x1e45   : > { %v4042_v29 = vpop.permute.xlu0 %4041  ;;  %4279 = vmatpush.bf16.msrb.mxu3 %v5090_v9 }
0x1e46   : > { %v4047_v30 = vsel %vm945_vm2, %v4042_v29, 0 }
0x1e47   : > { %4056 = vmatpush.bf16.msra.mxu0 %v4047_v30  ;;  %v5088_v30 = vld [vmem:[%s6517_s18 + $0x28] sm:$0xff] }
0x1e49   : > { %4280 = vmatpush.bf16.msrb.mxu3 %v5089_v20 }
0x1e4a   : > { %4954 = vmatmul.msk.bf16.vlgmr.msra.gmra.mxu0 %vm800_vm1, %v3988_v31  ;;  %v5087_v31 = vld [vmem:[%s6517_s18 + $0x20] sm:$0xff] }
0x1e4b   : > { %4141 = vmatpush.bf16.msrb.mxu0 %v4132_v37 }
0x1e4d   : > { %4281 = vmatpush.bf16.msrb.mxu3 %v5088_v30 }
0x1e51   : > { %4282 = vmatpush.bf16.msrb.mxu3 %v5087_v31 }
0x1eb2   : > { %v4010_v53 = vpop.f32.mrf.mxu2 }
0x1eb3   : > { %v4086_v38 = vpack.c.bf16 %v4010_v53, %v4010_v53  ;;  %v4082_v39 = vpop.f32.mrf.mxu1 }
0x1eb4   : > { %v4089_v40 = vpack.c.bf16 %v4082_v39, %v4082_v39 }
0x1eb5   : > { %4957 = vmatmul.msk.bf16.vlgmr.msra.gmra.mxu3 %vm800_vm1, %v4086_v38 }
0x1eb6   : > { %4959 = vmatmul.msk.bf16.vlgmr.msrb.gmra.mxu1 %vm800_vm1, %v4089_v40 }
0x1eba   : > { %v4012_v42 = vpop.f32.mrf.mxu2 }
0x1ebb   : > { %v4084_v45 = vpop.f32.mrf.mxu1 }
0x1ec3   : > { %v4034_v46 = vpop.f32.mrf.mxu3 }
0x1ec4   : > { %v4087_v47 = vpack.c.bf16 %v4034_v46, %v4034_v46 }
0x1ec6   : > { %4956 = vmatmul.msk.bf16.vlgmr.msra.gmra.mxu2 %vm800_vm1, %v4087_v47 }
0x1ec7   : > { %v4058_v48 = vpop.f32.mrf.mxu0 }
0x1ec8   : > { %v4088_v49 = vpack.c.bf16 %v4058_v48, %v4058_v48 }
0x1eca   : > { %4958 = vmatmul.msk.bf16.vlgmr.msrb.gmra.mxu0 %vm800_vm1, %v4088_v49 }
0x1ecb   : > { %v4036_v35 = vpop.f32.mrf.mxu3 }
0x1ecf   : > { %v4060_v50 = vpop.f32.mrf.mxu0 }
0x1f33   : > { %v4163_v52 = vpop.f32.mrf.mxu1 }
0x1f38   : > { %v4124_v54 = vpop.f32.mrf.mxu3 }
0x1f3b   : > { %v4165_v55 = vpop.f32.mrf.mxu1 }
0x1f40   : > { %v4126_v56 = vpop.f32.mrf.mxu3 }
0x1f47   : > { %v4143_v57 = vpop.f32.mrf.mxu0 }
0x1f49   : > { %v4105_v58 = vpop.f32.mrf.mxu2 }
0x1f4a   : > { %v4125_v43 = vadd.f32 %v4124_v54, %v4105_v58 }
0x1f4c   : > { %v4147_v28 = vadd.f32 %v4143_v57, %v4125_v43  ;;  %v4311_v43 = vperm.slane %v6272_v61, 7 }
0x1f4e   : > { %v4167_v41 = vadd.f32 %v4163_v52, %v4147_v28 }
0x1f4f   : > { %v4145_v23 = vpop.f32.mrf.mxu0 }
0x1f50   : > { %v4169_v62 = vadd.f32 %v4168_v59, %v4167_v41  ;;  %v5170_v59 = vld [vmem:[%s6518_s19 + $0x18] ss:$0 sm:$0xff] }
0x1f51   : > { %v4107_v0 = vpop.f32.mrf.mxu2 }
0x1f52   : > { %v4170_v1 = vadd.f32 %v4169_v62, %v6330_v44  ;;  %v5085_v44 = vld [vmem:[%s6515_s16 + $0x10] sm:$0xff] }
0x1f53   : > { %4230 = vmatpush.bf16.msrb.mxu2 %v5085_v44 }
0x1f54   : > { %v4171_v2 = vsel %vm695_vm0, %v4170_v1, 0.0 }
0x1f55   : > { %4172 = vadd.xlane.f32.xlu1 %v4171_v2 }
0x1fc8   : > { %v4173_v3 = vpop.xlane.xlu1 %4172 }
0x1fc9   : > { %v4174_v13 = vmul.f32 %v4173_v3, %v5627_v18 }
0x1fcb   : > { %v4175_v4 = vsub.f32 %v4170_v1, %v4174_v13 }
0x1fcd   : > { %v4176_v5 = vmul.f32 %v4175_v4, %v4175_v4 }
0x1fcf   : > { %v4177_v6 = vsel %vm695_vm0, %v4176_v5, 0.0 }
0x1fd0   : > { %4178 = vadd.xlane.f32.xlu2 %v4177_v6 }
0x2043   : > { %v4179_v10 = vpop.xlane.xlu2 %4178 }
0x2044   : > { %v4180_v11 = vmul.f32 %v4179_v10, %v5627_v18 }
0x2046   : > { %v4181_v15 = vadd.f32 1e-05, %v4180_v11 }
0x2048   : > { %5285 = vrsqrt.f32 %v4181_v15  ;;  %vm4188_vm2 = vweird.f32 %v4181_v15 }
0x204e   : > { %v5286_v16 = vpop.eup %5285 }
0x204f   : > { %v4183_v17 = vmul.f32 %v5286_v16, %v4181_v15  ;;  %vm4189_vm1 = vweird.f32 %v5286_v16 }
0x2050   : > { %vm4190_vm5 = vmor %vm4188_vm2, %vm4189_vm1 }
0x2051   : > { %v4184_v14 = vmul.f32 %v5286_v16, %v4183_v17 }
0x2053   : > { %v4185_v12 = vmul.f32 0.5, %v4184_v14 }
0x2055   : > { %v4186_v21 = vsub.f32 1.5, %v4185_v12 }
0x2057   : > { %v4187_v60 = vmul.f32 %v5286_v16, %v4186_v21 }
0x2059   : > { %v4191_v63 = vsel %vm4190_vm5, %v5286_v16, %v4187_v60 }
0x205a   : > { %v4192_v22 = vmul.f32 %v4191_v63, %v4175_v4 }
0x205c   : > { %v4194_v51 = vmul.f32 %v4193_v25, %v4192_v22 }
0x205e   : > { %v4196_v27 = vadd.f32 %v4195_v26, %v4194_v51 }
0x2060   : > { %v4197_v29 = vpack.c.bf16 %v4196_v27, %v4196_v27 }
0x2062   : > { %4973 = vmatmul.msk.bf16.vlgmr.msrb.gmra.mxu2 %vm695_vm0, %v4197_v29 }
0x20e5   : > { %v4232_v32 = vpop.f32.mrf.mxu2 }
0x20e6   : > { %v4233_v24 = vadd.f32 %v5169_v19, %v4232_v32 }
0x20e8   : > { %v4236_v8 = vmax.f32 %v4233_v24, 0.0 }
0x20ea   : > { %v4237_v33 = vpack.c.bf16 %v4236_v8, %v4236_v8 }
0x20ec   : > { %4998 = vmatmul.msk.bf16.vlgmr.msrb.gmra.mxu3 %vm1215_vm7, %v4237_v33 }
0x20ed   : > { %v4234_v34 = vpop.f32.mrf.mxu2 }
0x216f   : > { %v4284_v37 = vpop.f32.mrf.mxu3 }
0x2170   : > { %v4285_v53 = vadd.f32 %v4284_v37, %v4247_v36 }
0x2172   : > { %v4288_v38 = vadd.f32 %v4285_v53, %v4196_v27 }
0x2174   : > { %v4289_v39 = vsel %vm695_vm0, %v4288_v38, 0.0 }
0x2175   : > { %4290 = vadd.xlane.f32.xlu0 %v4289_v39 }
0x2177   : > { %v4286_v40 = vpop.f32.mrf.mxu3 }
0x21e8   : > { %v4291_v42 = vpop.xlane.xlu0 %4290 }
0x21e9   : > { %v4292_v45 = vmul.f32 %v4291_v42, %v5627_v18 }
0x21eb   : > { %v4293_v46 = vsub.f32 %v4288_v38, %v4292_v45 }
0x21ed   : > { %v4294_v47 = vmul.f32 %v4293_v46, %v4293_v46 }
0x21ef   : > { %v4295_v48 = vsel %vm695_vm0, %v4294_v47, 0.0 }
0x21f0   : > { %4296 = vadd.xlane.f32.xlu1 %v4295_v48 }
0x2263   : > { %v4297_v49 = vpop.xlane.xlu1 %4296 }
0x2264   : > { %v4298_v35 = vmul.f32 %v4297_v49, %v5627_v18 }
0x2266   : > { %v4299_v50 = vadd.f32 1e-05, %v4298_v35 }
0x2268   : > { %5287 = vrsqrt.f32 %v4299_v50  ;;  %vm4306_vm6 = vweird.f32 %v4299_v50 }
0x226e   : > { %v5288_v52 = vpop.eup %5287 }
0x226f   : > { %v4301_v54 = vmul.f32 %v5288_v52, %v4299_v50  ;;  %vm4307_vm7 = vweird.f32 %v5288_v52 }
0x2270   : > { %vm4308_vm8 = vmor %vm4306_vm6, %vm4307_vm7 }
0x2271   : > { %v4302_v55 = vmul.f32 %v5288_v52, %v4301_v54 }
0x2273   : > { %v4303_v56 = vmul.f32 0.5, %v4302_v55 }
0x2275   : > { %v4304_v57 = vsub.f32 1.5, %v4303_v56 }
0x2277   : > { %v4305_v58 = vmul.f32 %v5288_v52, %v4304_v57 }
0x2279   : > { %v4309_v18 = vsel %vm4308_vm8, %v5288_v52, %v4305_v58 }
0x227a   : > { %v4310_v28 = vmul.f32 %v4309_v18, %v4293_v46 }
0x227c   : > { %v4312_v41 = vmul.f32 %v4311_v43, %v4310_v28 }
0x227e   : > { %v4314_v23 = vadd.f32 %v5170_v59, %v4312_v41 }
0x2280   : > { %4315 = vst.msk [vmem:[%s633_s27] sm:$0xff] %vm695_vm0, %v4314_v23 }
0x2281   : > { %5316 = shalt.err (!%p5313_p3)
}
0x2282   : > { %5091 = dma.vmem_to_hbm [thread:$0]  (%p5499_p5), %s4330_s6, 128, %s4332_s7, %s4317_s2  }
0x2283 PF: > { %s6573_s5 = sld [smem:[#allocation7_spill]] }
0x2284   : > { %s6574_s24 = sld [smem:[#allocation5_spill]] }
0x2289   : > { %p5097_p4 = scmp.ge.s32.totalorder %s6573_s5, 2 }
0x228a   : > { %s4343_s27 = sand.u32 1, %s6574_s24  }
0x228b   : > { %p5094_p7 = pnand %p5097_p4, %p5503_p6  ;;  %s4344_s0 = scalar_lea.sflag [#allocation3], %s4343_s27 }
0x228d   : > { %p5095_p8 = pneg %p5094_p7 }
0x228f   : > { %5334 = dma.done.wait (%p5095_p8), %s4344_s0, 128  }
0x2290   : > { %5336 = vsyncadd (%p5095_p8), %s4344_s0, 4294967168  ;;  %s6576_s24 = sld [smem:[#allocation8_spill]]  ;;  %s6579_s1 = smov %s5343_s22 }
0x2291   : > { %s6577_s8 = sld [smem:[#allocation6_spill]] }
0x2292   : > { %s6578_s23 = sld [smem:[#allocation9_spill]] }
0x2296   : > { %p30_p9 = scmp.ge.s32.totalorder %s6576_s24, 4  }
0x2297   : > { %s6580_s22 = smov %s6577_s8 }
0x2298   :  { %32 = sbr.rel (!%p30_p9) target bundleno = 14 (0xe), region = 158 }
0x229d   :  { %4350 = vsyncpa [#allocation3], 1 }
0x229e   :  { %4352 = vsyncpa [#allocation3 + $0x1], 1 }

</bundles_post_ra>
